<compile_context>
chip_gen: v7x
topology: tpu7x:2x2x1
jax: 0.10.0
libtpu: 0.0.40
codegen_flags: <defaults>
</compile_context>

<pallas_src>
import jax
import jax.numpy as jnp
from jax.experimental import pallas as pl
from jax.experimental.pallas import tpu as pltpu


def _encoder_part_kernel(x_ref, w1_ref, b1_ref, w2_ref, b2_ref, o_ref):
    """One grid step = `TB` batch elements.

    x_ref : (TB, H,  W,  Cin)        VMEM
    w1_ref: (9*Cin, C)               VMEM   (tap-major im2col weight layout)
    b1_ref: (1, C)                   VMEM
    w2_ref: (9*C, C)                 VMEM
    b2_ref: (1, C)                   VMEM
    o_ref : (TB, C, (H-4)*(W-4))     VMEM   (spatial on lanes -> dense stores)
    """
    TB, H, W, Cin = x_ref.shape
    C = w1_ref.shape[1]
    H1, W1 = H - 2, W - 2
    H2, W2 = H1 - 2, W1 - 2

    for t in range(TB):                        # static unroll over batch block
        x = x_ref[t].astype(jnp.float32)       # (H, W, Cin)

        # ---- conv1 (valid 3x3) + ReLU: one fused im2col matmul -------------
        col1 = jnp.concatenate(
            [x[di:di + H1, dj:dj + W1, :]
             for di in range(3) for dj in range(3)],
            axis=-1,                           # (H1, W1, 9*Cin)
        ).reshape(H1 * W1, 9 * Cin)            # single relayout-reshape
        h1 = jnp.maximum(
            jnp.dot(col1, w1_ref[...], preferred_element_type=jnp.float32)
            + b1_ref[...],
            0.0,
        ).reshape(H1, W1, C)

        # ---- conv2 (valid 3x3) + ReLU: one fused im2col matmul -------------
        col2 = jnp.concatenate(
            [h1[di:di + H2, dj:dj + W2, :]
             for di in range(3) for dj in range(3)],
            axis=-1,                           # (H2, W2, 9*C)
        ).reshape(H2 * W2, 9 * C)
        y2 = jnp.maximum(
            jnp.dot(col2, w2_ref[...], preferred_element_type=jnp.float32)
            + b2_ref[...],
            0.0,
        )                                      # (H2*W2, C)

        # Small XLU transpose -> lane-dense (C, H2*W2) store.
        o_ref[t] = y2.T.astype(o_ref.dtype)


def encoder_part(x_nchw, w1, b1, w2, b2, *, batch_block=1):
    """Forward pass matching the PyTorch EncoderPart.

    x_nchw: (B, Cin, H, W)  float32
    w1    : (C, Cin, 3, 3)  b1: (C,)
    w2    : (C, C,   3, 3)  b2: (C,)
    returns (B, C, H-4, W-4)
    """
    B, Cin, H, W = x_nchw.shape
    C = w1.shape[0]
    Ho, Wo = H - 4, W - 4
    assert B % batch_block == 0, "batch_block must divide the batch size"
    TB = batch_block

    # NCHW -> NHWC for the kernel input (channels on lanes for im2col).
    x_nhwc = jnp.transpose(x_nchw, (0, 2, 3, 1))
    # OIHW (C, Cin, 3, 3) -> (di, dj, Cin, C) -> (9*Cin, C); row index
    # (di*3 + dj)*Cin + cin matches the in-kernel im2col concat order.
    w1_k = jnp.transpose(w1, (2, 3, 1, 0)).reshape(9 * Cin, C)
    w2_k = jnp.transpose(w2, (2, 3, 1, 0)).reshape(9 * C, C)
    b1_k = b1.reshape(1, C)
    b2_k = b2.reshape(1, C)

    out_flat = pl.pallas_call(
        _encoder_part_kernel,
        out_shape=jax.ShapeDtypeStruct((B, C, Ho * Wo), x_nchw.dtype),
        grid_spec=pltpu.PrefetchScalarGridSpec(
            num_scalar_prefetch=0,
            grid=(B // TB,),
            in_specs=[
                pl.BlockSpec((TB, H, W, Cin), lambda b: (b, 0, 0, 0)),
                # Weights / biases are grid-invariant (constant index_map),
                # so the pipeline keeps them resident across steps.
                pl.BlockSpec((9 * Cin, C), lambda b: (0, 0)),
                pl.BlockSpec((1, C), lambda b: (0, 0)),
                pl.BlockSpec((9 * C, C), lambda b: (0, 0)),
                pl.BlockSpec((1, C), lambda b: (0, 0)),
            ],
            out_specs=pl.BlockSpec((TB, C, Ho * Wo), lambda b: (b, 0, 0)),
        ),
        compiler_params=pltpu.CompilerParams(
            dimension_semantics=("parallel",)),
    )(x_nhwc, w1_k, b1_k, w2_k, b2_k)

    # Free reshape (no transpose) back to the PyTorch NCHW layout.
    return out_flat.reshape(B, C, Ho, Wo)


def _reference(x_nchw, w1, b1, w2, b2):
    """Pure-JAX reference (lax conv) for correctness checking."""
    dn = jax.lax.conv_dimension_numbers(x_nchw.shape, w1.shape,
                                        ("NCHW", "OIHW", "NCHW"))
    y = jax.lax.conv_general_dilated(x_nchw, w1, (1, 1), "VALID",
                                     dimension_numbers=dn)
    y = jnp.maximum(y + b1[None, :, None, None], 0.0)
    dn2 = jax.lax.conv_dimension_numbers(y.shape, w2.shape,
                                         ("NCHW", "OIHW", "NCHW"))
    z = jax.lax.conv_general_dilated(y, w2, (1, 1), "VALID",
                                     dimension_numbers=dn2)
    z = jnp.maximum(z + b2[None, :, None, None], 0.0)
    return z


if __name__ == "__main__":
    # Small shapes consistent with the module: B=2, Cin=4, Cout=8, H=W=16.
    B, Cin, Cout, H, W = 2, 4, 8, 16, 16

    key = jax.random.PRNGKey(0)
    kx, kw1, kb1, kw2, kb2 = jax.random.split(key, 5)

    x = jax.random.normal(kx, (B, Cin, H, W), dtype=jnp.float32)

    # Deterministic parameter init (PyTorch-like uniform fan-in scaling).
    lim1 = 1.0 / (Cin * 9) ** 0.5
    w1 = jax.random.uniform(kw1, (Cout, Cin, 3, 3), jnp.float32, -lim1, lim1)
    b1 = jax.random.uniform(kb1, (Cout,), jnp.float32, -lim1, lim1)
    lim2 = 1.0 / (Cout * 9) ** 0.5
    w2 = jax.random.uniform(kw2, (Cout, Cout, 3, 3), jnp.float32, -lim2, lim2)
    b2 = jax.random.uniform(kb2, (Cout,), jnp.float32, -lim2, lim2)

    out = jax.block_until_ready(encoder_part(x, w1, b1, w2, b2))

    ref = _reference(x, w1, b1, w2, b2)
    assert out.shape == (B, Cout, H - 4, W - 4), out.shape
    assert jnp.allclose(out, ref, atol=1e-4, rtol=1e-4), (
        float(jnp.max(jnp.abs(out - ref))))

    print("KERNEL_OK")
</pallas_src>

<mosaic_0001>
module attributes {stable_mosaic.version = 11 : i64} {
  func.func @_encoder_part_kernel(%arg0: i32, %arg1: memref<1x16x16x4xf32, #tpu.memory_space<vmem>>, %arg2: memref<36x8xf32, #tpu.memory_space<vmem>>, %arg3: memref<1x8xf32, #tpu.memory_space<vmem>>, %arg4: memref<72x8xf32, #tpu.memory_space<vmem>>, %arg5: memref<1x8xf32, #tpu.memory_space<vmem>>, %arg6: memref<1x8x144xf32, #tpu.memory_space<vmem>>) attributes {dimension_semantics = [#tpu.dimension_semantics<parallel>], iteration_bounds = array<i64: 2>, scalar_prefetch = 0 : i64, scratch_operands = 0 : i64, tpu.core_type = #tpu.core_type<tc>, window_params = [{transform_indices = @transform_0, window_bounds = array<i64: 1, 16, 16, 4>}, {pipeline_mode = #tpu.pipeline_mode<synchronous>, transform_indices = @transform_1, window_bounds = array<i64: 36, 8>}, {pipeline_mode = #tpu.pipeline_mode<synchronous>, transform_indices = @transform_2, window_bounds = array<i64: 1, 8>}, {pipeline_mode = #tpu.pipeline_mode<synchronous>, transform_indices = @transform_3, window_bounds = array<i64: 72, 8>}, {pipeline_mode = #tpu.pipeline_mode<synchronous>, transform_indices = @transform_4, window_bounds = array<i64: 1, 8>}, {transform_indices = @transform_5, window_bounds = array<i64: 1, 8, 144>}]} {
    %c0 = arith.constant 0 : index
    %c0_0 = arith.constant 0 : index
    %c0_1 = arith.constant 0 : index
    %c0_2 = arith.constant 0 : index
    %0 = vector.load %arg1[%c0, %c0_0, %c0_1, %c0_2] : memref<1x16x16x4xf32, #tpu.memory_space<vmem>>, vector<1x16x16x4xf32>
    %1 = vector.shape_cast %0 : vector<1x16x16x4xf32> to vector<16x16x4xf32>
    %2 = vector.extract_strided_slice %1 {offsets = [0, 0, 0], sizes = [14, 14, 4], strides = [1, 1, 1]} : vector<16x16x4xf32> to vector<14x14x4xf32>
    %3 = vector.extract_strided_slice %1 {offsets = [0, 1, 0], sizes = [14, 14, 4], strides = [1, 1, 1]} : vector<16x16x4xf32> to vector<14x14x4xf32>
    %4 = vector.extract_strided_slice %1 {offsets = [0, 2, 0], sizes = [14, 14, 4], strides = [1, 1, 1]} : vector<16x16x4xf32> to vector<14x14x4xf32>
    %5 = vector.extract_strided_slice %1 {offsets = [1, 0, 0], sizes = [14, 14, 4], strides = [1, 1, 1]} : vector<16x16x4xf32> to vector<14x14x4xf32>
    %6 = vector.extract_strided_slice %1 {offsets = [1, 1, 0], sizes = [14, 14, 4], strides = [1, 1, 1]} : vector<16x16x4xf32> to vector<14x14x4xf32>
    %7 = vector.extract_strided_slice %1 {offsets = [1, 2, 0], sizes = [14, 14, 4], strides = [1, 1, 1]} : vector<16x16x4xf32> to vector<14x14x4xf32>
    %8 = vector.extract_strided_slice %1 {offsets = [2, 0, 0], sizes = [14, 14, 4], strides = [1, 1, 1]} : vector<16x16x4xf32> to vector<14x14x4xf32>
    %9 = vector.extract_strided_slice %1 {offsets = [2, 1, 0], sizes = [14, 14, 4], strides = [1, 1, 1]} : vector<16x16x4xf32> to vector<14x14x4xf32>
    %10 = vector.extract_strided_slice %1 {offsets = [2, 2, 0], sizes = [14, 14, 4], strides = [1, 1, 1]} : vector<16x16x4xf32> to vector<14x14x4xf32>
    %11 = tpu.concatenate %2, %3, %4, %5, %6, %7, %8, %9, %10 in 2 : vector<14x14x4xf32>, vector<14x14x4xf32>, vector<14x14x4xf32>, vector<14x14x4xf32>, vector<14x14x4xf32>, vector<14x14x4xf32>, vector<14x14x4xf32>, vector<14x14x4xf32>, vector<14x14x4xf32> -> vector<14x14x36xf32>
    %12 = vector.shape_cast %11 : vector<14x14x36xf32> to vector<196x36xf32>
    %c0_3 = arith.constant 0 : index
    %c0_4 = arith.constant 0 : index
    %13 = vector.load %arg2[%c0_3, %c0_4] : memref<36x8xf32, #tpu.memory_space<vmem>>, vector<36x8xf32>
    %cst = arith.constant dense<0.000000e+00> : vector<196x8xf32>
    %14 = tpu.matmul %12, %13, %cst {dimension_numbers = #tpu.dot_dimension_numbers<[1], [0], [0], [1], [0, 0, 1, 1], [], []>} : vector<196x36xf32>, vector<36x8xf32>, vector<196x8xf32> -> vector<196x8xf32>
    %c0_5 = arith.constant 0 : index
    %c0_6 = arith.constant 0 : index
    %15 = vector.load %arg3[%c0_5, %c0_6] : memref<1x8xf32, #tpu.memory_space<vmem>>, vector<1x8xf32>
    %16 = vector.broadcast %15 : vector<1x8xf32> to vector<196x8xf32>
    %17 = arith.addf %14, %16 : vector<196x8xf32>
    %cst_7 = arith.constant 0.000000e+00 : f32
    %18 = vector.broadcast %cst_7 : f32 to vector<196x8xf32>
    %19 = arith.maximumf %17, %18 : vector<196x8xf32>
    %20 = vector.shape_cast %19 : vector<196x8xf32> to vector<14x14x8xf32>
    %21 = vector.extract_strided_slice %20 {offsets = [0, 0, 0], sizes = [12, 12, 8], strides = [1, 1, 1]} : vector<14x14x8xf32> to vector<12x12x8xf32>
    %22 = vector.extract_strided_slice %20 {offsets = [0, 1, 0], sizes = [12, 12, 8], strides = [1, 1, 1]} : vector<14x14x8xf32> to vector<12x12x8xf32>
    %23 = vector.extract_strided_slice %20 {offsets = [0, 2, 0], sizes = [12, 12, 8], strides = [1, 1, 1]} : vector<14x14x8xf32> to vector<12x12x8xf32>
    %24 = vector.extract_strided_slice %20 {offsets = [1, 0, 0], sizes = [12, 12, 8], strides = [1, 1, 1]} : vector<14x14x8xf32> to vector<12x12x8xf32>
    %25 = vector.extract_strided_slice %20 {offsets = [1, 1, 0], sizes = [12, 12, 8], strides = [1, 1, 1]} : vector<14x14x8xf32> to vector<12x12x8xf32>
    %26 = vector.extract_strided_slice %20 {offsets = [1, 2, 0], sizes = [12, 12, 8], strides = [1, 1, 1]} : vector<14x14x8xf32> to vector<12x12x8xf32>
    %27 = vector.extract_strided_slice %20 {offsets = [2, 0, 0], sizes = [12, 12, 8], strides = [1, 1, 1]} : vector<14x14x8xf32> to vector<12x12x8xf32>
    %28 = vector.extract_strided_slice %20 {offsets = [2, 1, 0], sizes = [12, 12, 8], strides = [1, 1, 1]} : vector<14x14x8xf32> to vector<12x12x8xf32>
    %29 = vector.extract_strided_slice %20 {offsets = [2, 2, 0], sizes = [12, 12, 8], strides = [1, 1, 1]} : vector<14x14x8xf32> to vector<12x12x8xf32>
    %30 = tpu.concatenate %21, %22, %23, %24, %25, %26, %27, %28, %29 in 2 : vector<12x12x8xf32>, vector<12x12x8xf32>, vector<12x12x8xf32>, vector<12x12x8xf32>, vector<12x12x8xf32>, vector<12x12x8xf32>, vector<12x12x8xf32>, vector<12x12x8xf32>, vector<12x12x8xf32> -> vector<12x12x72xf32>
    %31 = vector.shape_cast %30 : vector<12x12x72xf32> to vector<144x72xf32>
    %c0_8 = arith.constant 0 : index
    %c0_9 = arith.constant 0 : index
    %32 = vector.load %arg4[%c0_8, %c0_9] : memref<72x8xf32, #tpu.memory_space<vmem>>, vector<72x8xf32>
    %cst_10 = arith.constant dense<0.000000e+00> : vector<144x8xf32>
    %33 = tpu.matmul %31, %32, %cst_10 {dimension_numbers = #tpu.dot_dimension_numbers<[1], [0], [0], [1], [0, 0, 1, 1], [], []>} : vector<144x72xf32>, vector<72x8xf32>, vector<144x8xf32> -> vector<144x8xf32>
    %c0_11 = arith.constant 0 : index
    %c0_12 = arith.constant 0 : index
    %34 = vector.load %arg5[%c0_11, %c0_12] : memref<1x8xf32, #tpu.memory_space<vmem>>, vector<1x8xf32>
    %35 = vector.broadcast %34 : vector<1x8xf32> to vector<144x8xf32>
    %36 = arith.addf %33, %35 : vector<144x8xf32>
    %cst_13 = arith.constant 0.000000e+00 : f32
    %37 = vector.broadcast %cst_13 : f32 to vector<144x8xf32>
    %38 = arith.maximumf %36, %37 : vector<144x8xf32>
    %39 = tpu.transpose %38, [1, 0] : vector<144x8xf32> -> vector<8x144xf32>
    %c0_14 = arith.constant 0 : index
    %c0_15 = arith.constant 0 : index
    %c0_16 = arith.constant 0 : index
    %40 = vector.load %arg6[%c0_14, %c0_15, %c0_16] : memref<1x8x144xf32, #tpu.memory_space<vmem>>, vector<1x8x144xf32>
    %41 = vector.shape_cast %40 : vector<1x8x144xf32> to vector<8x144xf32>
    %42 = vector.shape_cast %39 : vector<8x144xf32> to vector<1x8x144xf32>
    tpu.vector_store %arg6[%c0_14, %c0_15, %c0_16], %42 {strides = array<i32>} : memref<1x8x144xf32, #tpu.memory_space<vmem>>, vector<1x8x144xf32>,
    return
  }
  func.func @transform_0(%arg0: i32) -> (i32, i32, i32, i32) {
    %c0_i32 = arith.constant 0 : i32
    %c0_i32_0 = arith.constant 0 : i32
    %c0_i32_1 = arith.constant 0 : i32
    %c0_i32_2 = arith.constant 0 : i32
    return %arg0, %c0_i32, %c0_i32_0, %c0_i32_1 : i32, i32, i32, i32
  }
  func.func @transform_1(%arg0: i32) -> (i32, i32) {
    %c0_i32 = arith.constant 0 : i32
    %c0_i32_0 = arith.constant 0 : i32
    %c0_i32_1 = arith.constant 0 : i32
    return %c0_i32, %c0_i32_0 : i32, i32
  }
  func.func @transform_2(%arg0: i32) -> (i32, i32) {
    %c0_i32 = arith.constant 0 : i32
    %c0_i32_0 = arith.constant 0 : i32
    %c0_i32_1 = arith.constant 0 : i32
    return %c0_i32, %c0_i32_0 : i32, i32
  }
  func.func @transform_3(%arg0: i32) -> (i32, i32) {
    %c0_i32 = arith.constant 0 : i32
    %c0_i32_0 = arith.constant 0 : i32
    %c0_i32_1 = arith.constant 0 : i32
    return %c0_i32, %c0_i32_0 : i32, i32
  }
  func.func @transform_4(%arg0: i32) -> (i32, i32) {
    %c0_i32 = arith.constant 0 : i32
    %c0_i32_0 = arith.constant 0 : i32
    %c0_i32_1 = arith.constant 0 : i32
    return %c0_i32, %c0_i32_0 : i32, i32
  }
  func.func @transform_5(%arg0: i32) -> (i32, i32, i32) {
    %c0_i32 = arith.constant 0 : i32
    %c0_i32_0 = arith.constant 0 : i32
    %c0_i32_1 = arith.constant 0 : i32
    return %arg0, %c0_i32, %c0_i32_0 : i32, i32, i32
  }
}

</mosaic_0001>

<bundles_post_ra>
// kernel: tpu_custom_call.1
= control target key start
LH: loop header
LB: loop body
LE: loop exit
PB: predicated region body
PF: predicated region fallthrough
CT: control target
= control target key end

     0   :  { %10 = vsyncpa [#allocation3], 0  ;;  %s8475_s0 = inlined_call_operand.vmem [shape: f32[2,16,16,4], index: 0, kind: input, shape index: {}]   ;;  %s8476_s1 = inlined_call_operand.vmem [shape: f32[36,8], index: 1, kind: input, shape index: {}]   ;;  %s8477_s2 = inlined_call_operand.vmem [shape: f32[1,8], index: 2, kind: input, shape index: {}]   ;;  %s8478_s3 = inlined_call_operand.vmem [shape: f32[72,8], index: 3, kind: input, shape index: {}]   ;;  %s8479_s4 = inlined_call_operand.vmem [shape: f32[1,8], index: 4, kind: input, shape index: {}]   ;;  %s8480_s5 = inlined_call_operand.hbm [shape: f32[2,8,144], index: 5, kind: output, shape index: {}]  }
   0x1   :  { %12 = vsyncpa [#allocation3 + $0x1], 0  ;;  %s5443_s18 = smov 0   ;;  %s5445_s19 = smov 0  }
   0x2   :  { %s5447_s20 = smov 0   ;;  %s5449_s21 = smov 0  }
   0x3 LB: > { %s5464_s22 = sadd.s32 4294967295, %s5394_s21   ;;  %s4988_s23 = sadd.s32 4294967294, %s5394_s21   ;;  %s5394_s21 = sphi %s5449_s21, %s8946_s21   ;;  %s5390_s20 = sphi %s5447_s20, %s8945_s20   ;;  %s5386_s19 = sphi %s5445_s19, %s8944_s19   ;;  %s5382_s18 = sphi %s5443_s18, %s8943_s18  }
   0x4   : > { %s5468_s24 = sadd.s32 1, %s5394_s21   ;;  %s135_s25 = sadd.s32 1, %s5390_s20 }
   0x5   : > { %s132_s26 = ssub.s32 %s5394_s21, %s5468_s24  ;;  %p145_p0 = scmp.ne.s32.totalorder %s5390_s20, %s5386_s19 }
   0x6   : > { %p133_p1 = scmp.eq.s32.totalorder %s132_s26, 0  ;;  %p146_p2 = scmp.eq.s32.totalorder %s5464_s22, 1 }
   0x7   : > { %p151_p3 = scmp.ne.s32.totalorder %s5386_s19, %s5382_s18  ;;  %p152_p4 = scmp.eq.s32.totalorder %s4988_s23, 1 }
   0x8   : > { %s5479_s27 = scalar_select %p133_p1, %s5390_s20, %s135_s25  }
   0x9   : > { %p5481_p5 = por %p146_p2, %p145_p0  ;;  %p5485_p6 = por %p152_p4, %p151_p3 }
   0xa   : > { %p4991_p7 = scmp.ge.s32.totalorder %s5394_s21, 1  ;;  %p190_p8 = scmp.lt.s32.totalorder %s5394_s21, 3 }
   0xc   : > { %p191_p9 = pnand %p4991_p7, %p190_p8 }
   0xe   : > { %194 = sbr.rel (%p191_p9) target bundleno = 1618 (0x652), region = 40 }
  0x15   : > { %p218_p10 = scmp.lt.s32.totalorder %s5464_s22, 1  ;;  %vm283_vm0 = vcmask 1046528   ;;  %s5396_s10 = smov 4   ;;  %vm410_vm1 = vcmask 1045504   ;;  %vm2258_vm2 = vcmask 1043456   ;;  %vm5405_vm3 = vmmov 0  }
  0x16   : > { %s5397_s11 = smov 8   ;;  %s5398_s12 = smov 12   ;;  %vm1057_vm4 = vcmask 31744   ;;  %vm1086_vm5 = vcmask 64512   ;;  %vm1115_vm6 = vcmask 97280   ;;  %vm1144_vm7 = vcmask 130048  }
  0x17   : > { %s219_s30 = scalar_select %p218_p10, %s5464_s22, 1  ;;  %vm1173_vm8 = vcmask 162816   ;;  %vm1202_vm9 = vcmask 195584   ;;  %vm1231_vm10 = vcmask 228352   ;;  %vm1260_vm11 = vcmask 261120  }
  0x18   : > { %s5399_s13 = smov 16   ;;  %s5401_s23 = smov 20   ;;  %vm2207_vm12 = vcmask 293888   ;;  %vm4468_vm13 = vcmask 326656   ;;  %vm4493_vm14 = vcmask 392192   ;;  %vm4518_vm15 = vcmask 457728  }
  0x19   : > { %s5046_s6 = sshll.u32 %s219_s30, 8  ;;  %s5402_s7 = smov 28  }
  0x1a   : > { %s5496_s9 = scalar_lea.vmem %s8475_s0, %s5046_s6  ;;  %s5403_s8 = smov 24  }
  0x1b   : > { %v5499_v0 = vld [vmem:[%s5496_s9 + $0x18] sm:$0xff]  ;;  %v5502_v1 = vld [vmem:[%s5496_s9 + $0x8] sm:$0xff]  ;;  %v5512_v5 = vld [vmem:[%s5496_s9] sm:$0xff]  ;;  %s5406_s14 = smov 32   ;;  %s5410_s25 = smov 56  }
  0x1c   : > { %8642 = vst [vmem:[#allocation5_spill] sm:$0xff] %v5502_v1  ;;  %v5505_v2 = vld [vmem:[%s5496_s9 + $0x28] sm:$0xff]  ;;  %v5508_v3 = vrot.slane %v5499_v0, 1  ;;  %v285_v4 = vrot.slane %v5502_v1, 1  ;;  %8643 = vst [vmem:[#allocation6_spill] sm:$0xff] %v5512_v5  ;;  %v5515_v6 = vld [vmem:[%s5496_s9 + $0x10] sm:$0xff] }
  0x1d   : > { %8644 = vst [vmem:[#allocation7_spill] sm:$0xff] %v5515_v6  ;;  %v5518_v7 = vld [vmem:[%s5496_s9 + $0x20] sm:$0xff]  ;;  %v284_v8 = vrot.slane %v5512_v5, 1  ;;  %v5525_v9 = vrot.slane %v5505_v2, 1  ;;  %v287_v11 = vrot.slane %v5515_v6, 1  ;;  %v5531_v13 = vld [vmem:[%s5496_s9 + $0x38] sm:$0xff] }
  0x1e   : > { %332 = vrot.lane.b32.xlu1 %v5508_v3, %s5396_s10  ;;  %328 = vrot.lane.b32.xlu0 %v285_v4, %s5396_s10  ;;  %v290_v12 = vrot.slane %v5518_v7, 1  ;;  %v5534_v14 = vld [vmem:[%s5496_s9 + $0x30] sm:$0xff]  ;;  %v5548_v17 = vrot.slane %v5531_v13, 1  ;;  %v5552_v19 = vld [vmem:[%s5496_s9 + $0x48] sm:$0xff] }
  0x1f   : > { %v286_v10 = vsel %vm283_vm0, %v284_v8, %v285_v4  ;;  %v5541_v15 = vsel %vm283_vm0, %v287_v11, %v5508_v3  ;;  %v293_v18 = vrot.slane %v5534_v14, 1  ;;  %v5555_v20 = vld [vmem:[%s5496_s9 + $0x40] sm:$0xff]  ;;  %v5566_v22 = vrot.slane %v5552_v19, 1  ;;  %v5570_v24 = vld [vmem:[%s5496_s9 + $0x58] sm:$0xff]  ;;  %v5573_v25 = vld [vmem:[%s5496_s9 + $0x50] sm:$0xff] }
  0x20   : > { %v5545_v16 = vsel %vm283_vm0, %v290_v12, %v5525_v9  ;;  %v296_v23 = vrot.slane %v5555_v20, 1  ;;  %v5584_v27 = vrot.slane %v5570_v24, 1  ;;  %v299_v28 = vrot.slane %v5573_v25, 1  ;;  %v5588_v29 = vld [vmem:[%s5496_s9 + $0x68] sm:$0xff]  ;;  %v5591_v30 = vld [vmem:[%s5496_s9 + $0x60] sm:$0xff]  ;;  %v5606_v34 = vld [vmem:[%s5496_s9 + $0x78] sm:$0xff] }
  0x21   : > { %v5563_v21 = vsel %vm283_vm0, %v293_v18, %v5548_v17  ;;  %v5602_v32 = vrot.slane %v5588_v29, 1  ;;  %v302_v33 = vrot.slane %v5591_v30, 1  ;;  %v5609_v35 = vld [vmem:[%s5496_s9 + $0x70] sm:$0xff]  ;;  %v5620_v37 = vrot.slane %v5606_v34, 1  ;;  %v5624_v39 = vld [vmem:[%s5496_s9 + $0x88] sm:$0xff]  ;;  %v5627_v40 = vld [vmem:[%s5496_s9 + $0x80] sm:$0xff] }
  0x22   : > { %336 = vrot.lane.b32.xlu1 %v5525_v9, %s5396_s10  ;;  %326 = vrot.lane.b32.xlu0 %v286_v10, %s5396_s10  ;;  %v5581_v26 = vsel %vm283_vm0, %v296_v23, %v5566_v22  ;;  %v5599_v31 = vsel %vm283_vm0, %v299_v28, %v5584_v27  ;;  %v305_v38 = vrot.slane %v5609_v35, 1  ;;  %v5638_v42 = vrot.slane %v5624_v39, 1  ;;  %v5642_v44 = vld [vmem:[%s5496_s9 + $0x98] sm:$0xff]  ;;  %v5645_v45 = vld [vmem:[%s5496_s9 + $0x90] sm:$0xff] }
  0x23   : > { %8645 = vst [vmem:[#allocation8_spill] sm:$0xff] %v5602_v32  ;;  %v5617_v36 = vsel %vm283_vm0, %v302_v33, %v5602_v32  ;;  %8646 = vst [vmem:[#allocation9_spill] sm:$0xff] %v5620_v37  ;;  %v308_v43 = vrot.slane %v5627_v40, 1  ;;  %v5656_v47 = vrot.slane %v5642_v44, 1  ;;  %v311_v48 = vrot.slane %v5645_v45, 1  ;;  %v5660_v49 = vld [vmem:[%s5496_s9 + $0xa8] sm:$0xff] }
  0x24   : > { %v5635_v41 = vsel %vm283_vm0, %v305_v38, %v5620_v37  ;;  %8648 = vst [vmem:[#allocation11_spill] sm:$0xff] %v5638_v42  ;;  %v5663_v50 = vld [vmem:[%s5496_s9 + $0xa0] sm:$0xff]  ;;  %v5674_v52 = vrot.slane %v5660_v49, 1  ;;  %v5678_v54 = vld [vmem:[%s5496_s9 + $0xb8] sm:$0xff]  ;;  %v5681_v55 = vld [vmem:[%s5496_s9 + $0xb0] sm:$0xff]  ;;  %v412_v23 = vrot.slane %v5502_v1, 2 }
  0x25   : > { %8647 = vst [vmem:[#allocation10_spill] sm:$0xff] %v5635_v41  ;;  %v5653_v46 = vsel %vm283_vm0, %v308_v43, %v5638_v42  ;;  %8650 = vst [vmem:[#allocation13_spill] sm:$0xff] %v5656_v47  ;;  %v5671_v51 = vsel %vm283_vm0, %v311_v48, %v5656_v47  ;;  %v314_v53 = vrot.slane %v5663_v50, 1  ;;  %v5692_v57 = vrot.slane %v5678_v54, 1  ;;  %v5696_v59 = vld [vmem:[%s5496_s9 + $0xc8] sm:$0xff]  ;;  %v5699_v60 = vld [vmem:[%s5496_s9 + $0xc0] sm:$0xff] }
  0x26   : > { %330 = vrot.lane.b32.xlu1 %v5541_v15, %s5396_s10  ;;  %334 = vrot.lane.b32.xlu0 %v5545_v16, %s5396_s10  ;;  %8649 = vst [vmem:[#allocation12_spill] sm:$0xff] %v5653_v46  ;;  %8651 = vst [vmem:[#allocation14_spill] sm:$0xff] %v5671_v51  ;;  %v317_v58 = vrot.slane %v5681_v55, 1  ;;  %v5710_v62 = vrot.slane %v5696_v59, 1  ;;  %v320_v63 = vrot.slane %v5699_v60, 1  ;;  %v5714_v4 = vld [vmem:[%s5496_s9 + $0xd8] sm:$0xff] }
  0x27   : > { %8652 = vst [vmem:[#allocation15_spill] sm:$0xff] %v5674_v52  ;;  %8653 = vst [vmem:[#allocation16_spill] sm:$0xff] %v5678_v54  ;;  %v5689_v56 = vsel %vm283_vm0, %v314_v53, %v5674_v52  ;;  %v5717_v8 = vld [vmem:[%s5496_s9 + $0xd0] sm:$0xff]  ;;  %v5728_v11 = vrot.slane %v5714_v4, 1  ;;  %v411_v28 = vrot.slane %v5512_v5, 2  ;;  %v5747_v38 = vrot.slane %v5499_v0, 2 }
  0x28   : > { %8654 = vst [vmem:[#allocation17_spill] sm:$0xff] %v5681_v55  ;;  %8655 = vst [vmem:[#allocation18_spill] sm:$0xff] %v5689_v56  ;;  %v5707_v61 = vsel %vm283_vm0, %v317_v58, %v5692_v57  ;;  %v5725_v10 = vsel %vm283_vm0, %v320_v63, %v5710_v62  ;;  %v323_v12 = vrot.slane %v5717_v8, 1  ;;  %v414_v43 = vrot.slane %v5515_v6, 2 }
  0x29   : > { %8656 = vst [vmem:[#allocation19_spill] sm:$0xff] %v5692_v57  ;;  %8657 = vst [vmem:[#allocation20_spill] sm:$0xff] %v5696_v59  ;;  %v413_v33 = vsel %vm410_vm1, %v411_v28, %v412_v23  ;;  %v5757_v53 = vrot.slane %v5505_v2, 2  ;;  %v417_v58 = vrot.slane %v5518_v7, 2  ;;  %v5853_v1 = vrot.slane %v5660_v49, 2 }
  0x2a   : > { %340 = vrot.lane.b32.xlu1 %v5548_v17, %s5396_s10  ;;  %338 = vrot.lane.b32.xlu0 %v5563_v21, %s5396_s10  ;;  %8658 = vst [vmem:[#allocation21_spill] sm:$0xff] %v5699_v60  ;;  %8659 = vst [vmem:[#allocation22_spill] sm:$0xff] %v5707_v61  ;;  %v5737_v18 = vsel %vm283_vm0, %v323_v12, %v5728_v11  ;;  %v5754_v48 = vsel %vm410_vm1, %v414_v43, %v5747_v38  ;;  %v5769_v12 = vrot.slane %v5531_v13, 2 }
  0x2b   : > { %8660 = vst [vmem:[#allocation23_spill] sm:$0xff] %v5710_v62  ;;  %8661 = vst [vmem:[#allocation24_spill] sm:$0xff] %v5714_v4  ;;  %v5766_v63 = vsel %vm410_vm1, %v417_v58, %v5757_v53  ;;  %v423_v43 = vrot.slane %v5555_v20, 2 }
  0x2c   : > { %8662 = vst [vmem:[#allocation25_spill] sm:$0xff] %v5717_v8  ;;  %8663 = vst [vmem:[#allocation26_spill] sm:$0xff] %v5725_v10 }
  0x2d   : > { %8664 = vst [vmem:[#allocation27_spill] sm:$0xff] %v5728_v11  ;;  %8665 = vst [vmem:[#allocation28_spill] sm:$0xff] %v5737_v18 }
  0x2e   : > { %344 = vrot.lane.b32.xlu1 %v5566_v22, %s5396_s10  ;;  %342 = vrot.lane.b32.xlu0 %v5581_v26, %s5396_s10  ;;  %8673 = vst [vmem:[#allocation36_spill] sm:$0xff] %v5853_v1 }
  0x32   : > { %348 = vrot.lane.b32.xlu1 %v5584_v27, %s5396_s10  ;;  %346 = vrot.lane.b32.xlu0 %v5599_v31, %s5396_s10 }
  0x36   : > { %352 = vrot.lane.b32.xlu1 %v5602_v32, %s5396_s10  ;;  %350 = vrot.lane.b32.xlu0 %v5617_v36, %s5396_s10 }
  0x3a   : > { %356 = vrot.lane.b32.xlu1 %v5620_v37, %s5396_s10  ;;  %354 = vrot.lane.b32.xlu0 %v5635_v41, %s5396_s10  ;;  %v252_v41 = vld [vmem:[%s5496_s9 + $0xe8] sm:$0xff] }
  0x3e   : > { %360 = vrot.lane.b32.xlu1 %v5638_v42, %s5396_s10  ;;  %358 = vrot.lane.b32.xlu0 %v5653_v46, %s5396_s10  ;;  %v5865_v42 = vrot.slane %v5678_v54, 2 }
  0x40   : > { %8675 = vst [vmem:[#allocation38_spill] sm:$0xff] %v5865_v42 }
  0x42   : > { %364 = vrot.lane.b32.xlu1 %v5656_v47, %s5396_s10  ;;  %362 = vrot.lane.b32.xlu0 %v5671_v51, %s5396_s10 }
  0x46   : > { %368 = vrot.lane.b32.xlu1 %v5674_v52, %s5396_s10  ;;  %366 = vrot.lane.b32.xlu0 %v5689_v56, %s5396_s10  ;;  %v5841_v52 = vrot.slane %v5642_v44, 2 }
  0x48   : > { %8671 = vst [vmem:[#allocation34_spill] sm:$0xff] %v5841_v52 }
  0x4a   : > { %372 = vrot.lane.b32.xlu1 %v5692_v57, %s5396_s10  ;;  %370 = vrot.lane.b32.xlu0 %v5707_v61, %s5396_s10  ;;  %v5829_v57 = vrot.slane %v5624_v39, 2 }
  0x4c   : > { %8669 = vst [vmem:[#allocation32_spill] sm:$0xff] %v5829_v57 }
  0x4e   : > { %376 = vrot.lane.b32.xlu1 %v5710_v62, %s5396_s10  ;;  %374 = vrot.lane.b32.xlu0 %v5725_v10, %s5396_s10  ;;  %v5805_v62 = vrot.slane %v5588_v29, 2  ;;  %v5817_v10 = vrot.slane %v5606_v34, 2 }
  0x50   : > { %8666 = vst [vmem:[#allocation29_spill] sm:$0xff] %v5805_v62  ;;  %8667 = vst [vmem:[#allocation30_spill] sm:$0xff] %v5817_v10 }
  0x52   : > { %380 = vrot.lane.b32.xlu1 %v5728_v11, %s5396_s10  ;;  %378 = vrot.lane.b32.xlu0 %v5737_v18, %s5396_s10  ;;  %v5793_v11 = vrot.slane %v5570_v24, 2  ;;  %s5411_s10 = smov 64  }
  0x56   : > { %455 = vrot.lane.b32.xlu1 %v412_v23, %s5397_s11  ;;  %453 = vrot.lane.b32.xlu0 %v413_v33, %s5397_s11  ;;  %v420_v23 = vrot.slane %v5534_v14, 2  ;;  %v5781_v33 = vrot.slane %v5552_v19, 2 }
  0x58   : > { %v5778_v28 = vsel %vm410_vm1, %v420_v23, %v5769_v12  ;;  %v5790_v58 = vsel %vm410_vm1, %v423_v43, %v5781_v33  ;;  %v426_v23 = vrot.slane %v5573_v25, 2  ;;  %v429_v43 = vrot.slane %v5591_v30, 2 }
  0x5a   : > { %459 = vrot.lane.b32.xlu1 %v5747_v38, %s5397_s11  ;;  %457 = vrot.lane.b32.xlu0 %v5754_v48, %s5397_s11  ;;  %v5802_v18 = vsel %vm410_vm1, %v426_v23, %v5793_v11  ;;  %v5814_v56 = vsel %vm410_vm1, %v429_v43, %v5805_v62  ;;  %v432_v23 = vrot.slane %v5609_v35, 2  ;;  %v435_v43 = vrot.slane %v5627_v40, 2 }
  0x5c   : > { %v5826_v47 = vsel %vm410_vm1, %v432_v23, %v5817_v10  ;;  %v5838_v61 = vsel %vm410_vm1, %v435_v43, %v5829_v57  ;;  %v438_v23 = vrot.slane %v5645_v45, 2  ;;  %v441_v43 = vrot.slane %v5663_v50, 2 }
  0x5d   : > { %8668 = vst [vmem:[#allocation31_spill] sm:$0xff] %v5826_v47  ;;  %8670 = vst [vmem:[#allocation33_spill] sm:$0xff] %v5838_v61 }
  0x5e   : > { %463 = vrot.lane.b32.xlu1 %v5757_v53, %s5397_s11  ;;  %461 = vrot.lane.b32.xlu0 %v5766_v63, %s5397_s11  ;;  %v5850_v51 = vsel %vm410_vm1, %v438_v23, %v5841_v52  ;;  %v444_v23 = vrot.slane %v5681_v55, 2 }
  0x5f   : > { %8672 = vst [vmem:[#allocation35_spill] sm:$0xff] %v5850_v51 }
  0x62   : > { %467 = vrot.lane.b32.xlu1 %v5769_v12, %s5397_s11  ;;  %465 = vrot.lane.b32.xlu0 %v5778_v28, %s5397_s11 }
  0x66   : > { %471 = vrot.lane.b32.xlu1 %v5781_v33, %s5397_s11  ;;  %469 = vrot.lane.b32.xlu0 %v5790_v58, %s5397_s11 }
  0x6a   : > { %475 = vrot.lane.b32.xlu1 %v5793_v11, %s5397_s11  ;;  %473 = vrot.lane.b32.xlu0 %v5802_v18, %s5397_s11 }
  0x6e   : > { %479 = vrot.lane.b32.xlu1 %v5805_v62, %s5397_s11  ;;  %477 = vrot.lane.b32.xlu0 %v5814_v56, %s5397_s11 }
  0x72   : > { %483 = vrot.lane.b32.xlu1 %v5817_v10, %s5397_s11  ;;  %481 = vrot.lane.b32.xlu0 %v5826_v47, %s5397_s11 }
  0x76   : > { %487 = vrot.lane.b32.xlu1 %v5829_v57, %s5397_s11  ;;  %485 = vrot.lane.b32.xlu0 %v5838_v61, %s5397_s11  ;;  %v5862_v57 = vsel %vm410_vm1, %v441_v43, %v5853_v1  ;;  %v447_v43 = vrot.slane %v5699_v60, 2 }
  0x77   : > { %8674 = vst [vmem:[#allocation37_spill] sm:$0xff] %v5862_v57 }
  0x7a   : > { %491 = vrot.lane.b32.xlu1 %v5841_v52, %s5397_s11  ;;  %489 = vrot.lane.b32.xlu0 %v5850_v51, %s5397_s11  ;;  %v5874_v52 = vsel %vm410_vm1, %v444_v23, %v5865_v42  ;;  %v5877_v51 = vrot.slane %v5696_v59, 2  ;;  %v450_v23 = vrot.slane %v5717_v8, 2 }
  0x7b   : > { %8676 = vst [vmem:[#allocation39_spill] sm:$0xff] %v5874_v52 }
  0x7c   : > { %8677 = vst [vmem:[#allocation40_spill] sm:$0xff] %v5877_v51 }
  0x7e   : > { %495 = vrot.lane.b32.xlu1 %v5853_v1, %s5397_s11  ;;  %493 = vrot.lane.b32.xlu0 %v5862_v57, %s5397_s11  ;;  %v5886_v1 = vsel %vm410_vm1, %v447_v43, %v5877_v51  ;;  %v5889_v57 = vrot.slane %v5714_v4, 2 }
  0x7f   : > { %8678 = vst [vmem:[#allocation41_spill] sm:$0xff] %v5886_v1 }
  0x80   : > { %8679 = vst [vmem:[#allocation42_spill] sm:$0xff] %v5889_v57 }
  0x82   : > { %499 = vrot.lane.b32.xlu1 %v5865_v42, %s5397_s11  ;;  %497 = vrot.lane.b32.xlu0 %v5874_v52, %s5397_s11  ;;  %v5898_v42 = vsel %vm410_vm1, %v450_v23, %v5889_v57 }
  0x83   : > { %8680 = vst [vmem:[#allocation43_spill] sm:$0xff] %v5898_v42 }
  0x86   : > { %503 = vrot.lane.b32.xlu1 %v5877_v51, %s5397_s11  ;;  %501 = vrot.lane.b32.xlu0 %v5886_v1, %s5397_s11 }
  0x8a   : > { %507 = vrot.lane.b32.xlu1 %v5889_v57, %s5397_s11  ;;  %505 = vrot.lane.b32.xlu0 %v5898_v42, %s5397_s11 }
  0x8e   : > { %541 = vrot.lane.b32.xlu1 %v5499_v0, %s5398_s12  ;;  %539 = vrot.lane.b32.xlu0 %v5515_v6, %s5398_s12 }
  0x90   : > { %v5908_v43 = vpop.permute.xlu1 %332  ;;  %v5910_v51 = vpop.permute.xlu0 %328 }
  0x91   : > { %8681 = vst [vmem:[#allocation44_spill] sm:$0xff] %v5908_v43  ;;  %8682 = vst [vmem:[#allocation45_spill] sm:$0xff] %v5910_v51 }
  0x92   : > { %545 = vrot.lane.b32.xlu1 %v5505_v2, %s5398_s12  ;;  %543 = vrot.lane.b32.xlu0 %v5518_v7, %s5398_s12 }
  0x94   : > { %v5916_v23 = vpop.permute.xlu1 %336  ;;  %v5918_v57 = vpop.permute.xlu0 %326 }
  0x95   : > { %8683 = vst [vmem:[#allocation46_spill] sm:$0xff] %v5916_v23  ;;  %8684 = vst [vmem:[#allocation47_spill] sm:$0xff] %v5918_v57 }
  0x96   : > { %549 = vrot.lane.b32.xlu1 %v5531_v13, %s5398_s12  ;;  %547 = vrot.lane.b32.xlu0 %v5534_v14, %s5398_s12 }
  0x98   : > { %v5924_v0 = vpop.permute.xlu1 %330  ;;  %v5926_v42 = vpop.permute.xlu0 %334 }
  0x99   : > { %8685 = vst [vmem:[#allocation48_spill] sm:$0xff] %v5924_v0  ;;  %8686 = vst [vmem:[#allocation49_spill] sm:$0xff] %v5926_v42 }
  0x9a   : > { %553 = vrot.lane.b32.xlu1 %v5552_v19, %s5398_s12  ;;  %551 = vrot.lane.b32.xlu0 %v5555_v20, %s5398_s12 }
  0x9c   : > { %v5932_v1 = vpop.permute.xlu1 %340  ;;  %v5934_v23 = vpop.permute.xlu0 %338 }
  0x9d   : > { %8687 = vst [vmem:[#allocation50_spill] sm:$0xff] %v5932_v1  ;;  %8688 = vst [vmem:[#allocation51_spill] sm:$0xff] %v5934_v23 }
  0x9e   : > { %557 = vrot.lane.b32.xlu1 %v5570_v24, %s5398_s12  ;;  %555 = vrot.lane.b32.xlu0 %v5573_v25, %s5398_s12 }
  0xa0   : > { %v5940_v52 = vpop.permute.xlu1 %344  ;;  %v5942_v43 = vpop.permute.xlu0 %342 }
  0xa2   : > { %561 = vrot.lane.b32.xlu1 %v5588_v29, %s5398_s12  ;;  %559 = vrot.lane.b32.xlu0 %v5591_v30, %s5398_s12 }
  0xa4   : > { %v5948_v42 = vpop.permute.xlu1 %348  ;;  %v5950_v1 = vpop.permute.xlu0 %346 }
  0xa6   : > { %565 = vrot.lane.b32.xlu1 %v5606_v34, %s5398_s12  ;;  %563 = vrot.lane.b32.xlu0 %v5609_v35, %s5398_s12 }
  0xa8   : > { %v5956_v23 = vpop.permute.xlu1 %352  ;;  %v5958_v6 = vpop.permute.xlu0 %350 }
  0xaa   : > { %569 = vrot.lane.b32.xlu1 %v5624_v39, %s5398_s12  ;;  %567 = vrot.lane.b32.xlu0 %v5627_v40, %s5398_s12 }
  0xac   : > { %v5964_v0 = vpop.permute.xlu1 %356  ;;  %v5966_v51 = vpop.permute.xlu0 %354 }
  0xae   : > { %573 = vrot.lane.b32.xlu1 %v5642_v44, %s5398_s12  ;;  %571 = vrot.lane.b32.xlu0 %v5645_v45, %s5398_s12 }
  0xb0   : > { %v5972_v61 = vpop.permute.xlu1 %360  ;;  %v5974_v5 = vpop.permute.xlu0 %358 }
  0xb2   : > { %577 = vrot.lane.b32.xlu1 %v5660_v49, %s5398_s12  ;;  %575 = vrot.lane.b32.xlu0 %v5663_v50, %s5398_s12 }
  0xb4   : > { %v5980_v57 = vpop.permute.xlu1 %364  ;;  %v5982_v10 = vpop.permute.xlu0 %362 }
  0xb6   : > { %581 = vrot.lane.b32.xlu1 %v5678_v54, %s5398_s12  ;;  %579 = vrot.lane.b32.xlu0 %v5681_v55, %s5398_s12  ;;  %v251_v55 = vld [vmem:[%s5496_s9 + $0xe0] sm:$0xff] }
  0xb8   : > { %v5988_v46 = vpop.permute.xlu1 %368  ;;  %v5990_v37 = vpop.permute.xlu0 %366 }
  0xba   : > { %585 = vrot.lane.b32.xlu1 %v5696_v59, %s5398_s12  ;;  %583 = vrot.lane.b32.xlu0 %v5699_v60, %s5398_s12 }
  0xbc   : > { %v5996_v47 = vpop.permute.xlu1 %372  ;;  %v5998_v62 = vpop.permute.xlu0 %370 }
  0xbe   : > { %589 = vrot.lane.b32.xlu1 %v5714_v4, %s5398_s12  ;;  %587 = vrot.lane.b32.xlu0 %v5717_v8, %s5398_s12 }
  0xc0   : > { %v6006_v54 = vpop.permute.xlu1 %376  ;;  %v6008_v32 = vpop.permute.xlu0 %374 }
  0xc2   : > { %593 = vrot.lane.b32.xlu1 %v252_v41, %s5398_s12  ;;  %591 = vrot.lane.b32.xlu0 %v251_v55, %s5398_s12 }
  0xc4   : > { %v6012_v60 = vpop.permute.xlu1 %380  ;;  %v6014_v59 = vpop.permute.xlu0 %378 }
  0xc5   : > { %8689 = vst [vmem:[#allocation52_spill] sm:$0xff] %v6012_v60  ;;  %8690 = vst [vmem:[#allocation53_spill] sm:$0xff] %v6014_v59 }
  0xc6   : > { %628 = vrot.lane.b32.xlu1 %v5508_v3, %s5399_s13  ;;  %626 = vrot.lane.b32.xlu0 %v5541_v15, %s5399_s13  ;;  %v1779_v3 = vld [vmem:[%s8476_s1] sm:$0xff]  ;;  %v1780_v15 = vld [vmem:[%s8476_s1 + $0x8] sm:$0xff] }
  0xc8   : > { %v6020_v8 = vpop.permute.xlu1 %455  ;;  %v6022_v4 = vpop.permute.xlu0 %453 }
  0xc9   : > { %8691 = vst [vmem:[#allocation54_spill] sm:$0xff] %v6020_v8  ;;  %8692 = vst [vmem:[#allocation55_spill] sm:$0xff] %v6022_v4  ;;  %v5236_v8 = vpack.c.bf16 %v1780_v15, %v1779_v3  ;;  %v1781_v3 = vld [vmem:[%s8476_s1 + $0x10] sm:$0xff]  ;;  %v1782_v15 = vld [vmem:[%s8476_s1 + $0x18] sm:$0xff] }
  0xca   : > { %632 = vrot.lane.b32.xlu1 %v5525_v9, %s5399_s13  ;;  %630 = vrot.lane.b32.xlu0 %v5545_v16, %s5399_s13 }
  0xcc   : > { %v6028_v41 = vpop.permute.xlu1 %459  ;;  %v6030_v55 = vpop.permute.xlu0 %457 }
  0xcd   : > { %8693 = vst [vmem:[#allocation56_spill] sm:$0xff] %v6028_v41  ;;  %8694 = vst [vmem:[#allocation57_spill] sm:$0xff] %v6030_v55  ;;  %v5400_v55 = vmov 0.0|0.0  }
  0xce   : > { %636 = vrot.lane.b32.xlu1 %v5548_v17, %s5399_s13  ;;  %634 = vrot.lane.b32.xlu0 %v5563_v21, %s5399_s13 }
  0xcf   : > { %5235 = vmatprep.subr.bf16.mxu0 %v5400_v55  ;;  %5257 = vmatprep.subr.bf16.mxu1 %v5400_v55 }
  0xd0   : > { %v6042_v4 = vpop.permute.xlu1 %463  ;;  %v6044_v41 = vpop.permute.xlu0 %461  ;;  %5237 = vmatpush3.bf16.msra.mxu0 %v5236_v8  ;;  %5260 = vmatpush3.bf16.msra.mxu1 %v5236_v8 }
  0xd1   : > { %8695 = vst [vmem:[#allocation58_spill] sm:$0xff] %v6042_v4  ;;  %8696 = vst [vmem:[#allocation59_spill] sm:$0xff] %v6044_v41  ;;  %5238 = vmatprep.subr.bf16.mxu0 %v5400_v55  ;;  %v5239_v4 = vpack.c.bf16 %v1782_v15, %v1781_v3  ;;  %5258 = vmatprep.subr.bf16.mxu1 %v5400_v55 }
  0xd2   : > { %713 = vrot.lane.b32.xlu1 %v5754_v48, %s5401_s23  ;;  %638 = vrot.lane.b32.xlu0 %v5581_v26, %s5399_s13  ;;  %v8552_v48 = vmov 0.0  }
  0xd3   : > { %5115 = vmatprep.mubr.msk.f32.mxu0 %vm5405_vm3, %v8552_v48  ;;  %5166 = vmatprep.mubr.msk.f32.mxu1 %vm5405_vm3, %v8552_v48 }
  0xd4   : > { %v6056_v41 = vpop.permute.xlu1 %467  ;;  %v6058_v8 = vpop.permute.xlu0 %465  ;;  %5240 = vmatpush3.bf16.msra.mxu0 %v5239_v4  ;;  %5261 = vmatpush3.bf16.msra.mxu1 %v5239_v4  ;;  %v1783_v4 = vld [vmem:[%s8476_s1 + $0x20] sm:$0xf] }
  0xd5   : > { %8697 = vst [vmem:[#allocation60_spill] sm:$0xff] %v6056_v41  ;;  %8698 = vst [vmem:[#allocation61_spill] sm:$0xff] %v6058_v8  ;;  %5113 = vmatprep.subr.mxu0 %v8552_v48  ;;  %5259 = vmatprep.subr.mxu1 %v8552_v48 }
  0xd6   : > { %886 = vrot.lane.b32.xlu1 %v5545_v16, %s5402_s7  ;;  %799 = vrot.lane.b32.xlu0 %v5518_v7, %s5403_s8 }
  0xd8   : > { %v6066_v55 = vpop.permute.xlu1 %471  ;;  %v6068_v3 = vpop.permute.xlu0 %469  ;;  %5114 = vmatpush3.msk.msra.mxu0 %vm2258_vm2, %v1783_v4  ;;  %5262 = vmatpush3.msk.msra.mxu1 %vm2258_vm2, %v1783_v4 }
  0xda   : > { %715 = vrot.lane.b32.xlu1 %v5747_v38, %s5401_s23  ;;  %973 = vrot.lane.b32.xlu0 %v5766_v63, %s5406_s14 }
  0xdc   : > { %v6081_v7 = vpop.permute.xlu1 %475  ;;  %v6083_v16 = vpop.permute.xlu0 %473 }
  0xde   : > { %717 = vrot.lane.b32.xlu1 %v5766_v63, %s5401_s23  ;;  %801 = vrot.lane.b32.xlu0 %v5505_v2, %s5403_s8 }
  0xe0   : > { %v6089_v15 = vpop.permute.xlu1 %479  ;;  %v6091_v38 = vpop.permute.xlu0 %477 }
  0xe2   : > { %803 = vrot.lane.b32.xlu1 %v5534_v14, %s5403_s8  ;;  %888 = vrot.lane.b32.xlu0 %v5525_v9, %s5402_s7 }
  0xe4   : > { %v6097_v4 = vpop.permute.xlu1 %483  ;;  %v6099_v48 = vpop.permute.xlu0 %481 }
  0xe6   : > { %890 = vrot.lane.b32.xlu1 %v5563_v21, %s5402_s7  ;;  %975 = vrot.lane.b32.xlu0 %v5757_v53, %s5406_s14 }
  0xe8   : > { %v6105_v2 = vpop.permute.xlu1 %487  ;;  %v6107_v63 = vpop.permute.xlu0 %485 }
  0xea   : > { %719 = vrot.lane.b32.xlu1 %v5757_v53, %s5401_s23  ;;  %977 = vrot.lane.b32.xlu0 %v5778_v28, %s5406_s14 }
  0xec   : > { %v6113_v9 = vpop.permute.xlu1 %491  ;;  %v6115_v14 = vpop.permute.xlu0 %489 }
  0xee   : > { %721 = vrot.lane.b32.xlu1 %v5778_v28, %s5401_s23  ;;  %805 = vrot.lane.b32.xlu0 %v5531_v13, %s5403_s8 }
  0xf0   : > { %v6121_v21 = vpop.permute.xlu1 %495  ;;  %v6123_v41 = vpop.permute.xlu0 %493 }
  0xf2   : > { %807 = vrot.lane.b32.xlu1 %v5555_v20, %s5403_s8  ;;  %892 = vrot.lane.b32.xlu0 %v5548_v17, %s5402_s7 }
  0xf4   : > { %v6129_v53 = vpop.permute.xlu1 %499  ;;  %v6131_v8 = vpop.permute.xlu0 %497 }
  0xf6   : > { %894 = vrot.lane.b32.xlu1 %v5581_v26, %s5402_s7  ;;  %979 = vrot.lane.b32.xlu0 %v5769_v12, %s5406_s14 }
  0xf8   : > { %v6137_v13 = vpop.permute.xlu1 %503  ;;  %v6139_v28 = vpop.permute.xlu0 %501 }
  0xfa   : > { %723 = vrot.lane.b32.xlu1 %v5769_v12, %s5401_s23  ;;  %981 = vrot.lane.b32.xlu0 %v5790_v58, %s5406_s14 }
  0xfc   : > { %v6145_v17 = vpop.permute.xlu1 %507  ;;  %v6147_v59 = vpop.permute.xlu0 %505 }
  0xfd   : > { %8699 = vst [vmem:[#allocation62_spill] sm:$0xff] %v6145_v17  ;;  %8700 = vst [vmem:[#allocation63_spill] sm:$0xff] %v6147_v59 }
  0xfe   : > { %896 = vrot.lane.b32.xlu1 %v5566_v22, %s5402_s7  ;;  %809 = vrot.lane.b32.xlu0 %v5552_v19, %s5403_s8 }
 0x100   : > { %v6153_v26 = vpop.permute.xlu1 %541  ;;  %v6155_v60 = vpop.permute.xlu0 %539 }
 0x101   : > { %8701 = vst [vmem:[#allocation64_spill] sm:$0xff] %v6153_v26 }
 0x102   : > { %725 = vrot.lane.b32.xlu1 %v5790_v58, %s5401_s23  ;;  %983 = vrot.lane.b32.xlu0 %v5781_v33, %s5406_s14 }
 0x104   : > { %v6161_v12 = vpop.permute.xlu1 %545  ;;  %v6163_v17 = vpop.permute.xlu0 %543 }
 0x105   : > { %8702 = vst [vmem:[#allocation65_spill] sm:$0xff] %v6161_v12  ;;  %8703 = vst [vmem:[#allocation66_spill] sm:$0xff] %v6163_v17 }
 0x106   : > { %898 = vrot.lane.b32.xlu1 %v5599_v31, %s5402_s7  ;;  %811 = vrot.lane.b32.xlu0 %v5573_v25, %s5403_s8 }
 0x108   : > { %v6169_v59 = vpop.permute.xlu1 %549  ;;  %v6171_v26 = vpop.permute.xlu0 %547 }
 0x109   : > { %8704 = vst [vmem:[#allocation67_spill] sm:$0xff] %v6169_v59  ;;  %8705 = vst [vmem:[#allocation68_spill] sm:$0xff] %v6171_v26  ;;  %v1067_v59 = vsel %vm1057_vm4, %v5552_v19, %v5940_v52  ;;  %v1066_v26 = vsel %vm1057_vm4, %v5555_v20, %v5942_v43  ;;  %v1069_v19 = vsel %vm1057_vm4, %v5570_v24, %v5948_v42 }
 0x10a   : > { %985 = vrot.lane.b32.xlu1 %v5802_v18, %s5406_s14  ;;  %640 = vrot.lane.b32.xlu0 %v5566_v22, %s5399_s13  ;;  %v1096_v22 = vsel %vm1086_vm5, %v1067_v59, %v6066_v55  ;;  %v1068_v20 = vsel %vm1057_vm4, %v5573_v25, %v5950_v1  ;;  %v1098_v52 = vsel %vm1086_vm5, %v1069_v19, %v6081_v7 }
 0x10b   : > { %v1097_v59 = vsel %vm1086_vm5, %v1068_v20, %v6083_v16  ;;  %v1071_v1 = vsel %vm1057_vm4, %v5588_v29, %v5956_v23 }
 0x10c   : > { %v6177_v58 = vpop.permute.xlu1 %553  ;;  %v6179_v12 = vpop.permute.xlu0 %551  ;;  %v1100_v25 = vsel %vm1086_vm5, %v1071_v1, %v6089_v15 }
 0x10d   : > { %8706 = vst [vmem:[#allocation69_spill] sm:$0xff] %v6177_v58  ;;  %8707 = vst [vmem:[#allocation70_spill] sm:$0xff] %v6179_v12  ;;  %v1095_v58 = vsel %vm1086_vm5, %v1066_v26, %v6068_v3 }
 0x10e   : > { %642 = vrot.lane.b32.xlu1 %v5599_v31, %s5399_s13  ;;  %727 = vrot.lane.b32.xlu0 %v5781_v33, %s5401_s23 }
 0x110   : > { %v558_v31 = vpop.permute.xlu1 %557  ;;  %v556_v12 = vpop.permute.xlu0 %555 }
 0x111   : > { %v6196_v33 = vsel %vm1115_vm6, %v1096_v22, %v558_v31  ;;  %v6199_v17 = vsel %vm1115_vm6, %v1095_v58, %v556_v12 }
 0x112   : > { %729 = vrot.lane.b32.xlu1 %v5802_v18, %s5401_s23  ;;  %813 = vrot.lane.b32.xlu0 %v5570_v24, %s5403_s8  ;;  %v1070_v24 = vsel %vm1057_vm4, %v5591_v30, %v5958_v6  ;;  %v1073_v6 = vsel %vm1057_vm4, %v5606_v34, %v5964_v0  ;;  %v1074_v0 = vsel %vm1057_vm4, %v5627_v40, %v5974_v5 }
 0x113   : > { %v1099_v42 = vsel %vm1086_vm5, %v1070_v24, %v6091_v38  ;;  %v1102_v23 = vsel %vm1086_vm5, %v1073_v6, %v6097_v4  ;;  %v1103_v4 = vsel %vm1086_vm5, %v1074_v0, %v6107_v63  ;;  %v1077_v5 = vsel %vm1057_vm4, %v5642_v44, %v5980_v57  ;;  %v8717_v0 = vld [vmem:[#allocation24_spill] sm:$0xff] }
 0x114   : > { %v562_v43 = vpop.permute.xlu1 %561  ;;  %v560_v55 = vpop.permute.xlu0 %559  ;;  %v1079_v57 = vsel %vm1057_vm4, %v5660_v49, %v5988_v46  ;;  %v8708_v46 = vld [vmem:[#allocation8_spill] sm:$0xff] }
 0x115   : > { %v6216_v18 = vsel %vm1115_vm6, %v1098_v52, %v562_v43  ;;  %v6219_v3 = vsel %vm1115_vm6, %v1097_v59, %v560_v55 }
 0x116   : > { %815 = vrot.lane.b32.xlu1 %v5591_v30, %s5403_s8  ;;  %900 = vrot.lane.b32.xlu0 %v5584_v27, %s5402_s7  ;;  %v1072_v30 = vsel %vm1057_vm4, %v5609_v35, %v5966_v51  ;;  %v1075_v51 = vsel %vm1057_vm4, %v5624_v39, %v5972_v61  ;;  %v1076_v61 = vsel %vm1057_vm4, %v5645_v45, %v5982_v10 }
 0x117   : > { %v1101_v15 = vsel %vm1086_vm5, %v1072_v30, %v6099_v48  ;;  %v1104_v48 = vsel %vm1086_vm5, %v1075_v51, %v6105_v2  ;;  %v1106_v2 = vsel %vm1086_vm5, %v1077_v5, %v6113_v9  ;;  %v1105_v63 = vsel %vm1086_vm5, %v1076_v61, %v6115_v14  ;;  %v8721_v5 = vld [vmem:[#allocation63_spill] sm:$0xff] }
 0x118   : > { %v566_v7 = vpop.permute.xlu1 %565  ;;  %v564_v16 = vpop.permute.xlu0 %563  ;;  %v1078_v10 = vsel %vm1057_vm4, %v5663_v50, %v5990_v37  ;;  %v1108_v9 = vsel %vm1086_vm5, %v1079_v57, %v6121_v21  ;;  %v8709_v37 = vld [vmem:[#allocation16_spill] sm:$0xff]  ;;  %v8710_v50 = vld [vmem:[#allocation17_spill] sm:$0xff] }
 0x119   : > { %v6236_v26 = vsel %vm1115_vm6, %v1100_v25, %v566_v7  ;;  %v6239_v12 = vsel %vm1115_vm6, %v1099_v42, %v564_v16  ;;  %v1107_v14 = vsel %vm1086_vm5, %v1078_v10, %v6123_v41  ;;  %v1081_v49 = vsel %vm1057_vm4, %v8709_v37, %v5996_v47  ;;  %v8711_v47 = vld [vmem:[#allocation10_spill] sm:$0xff]  ;;  %v8712_v16 = vld [vmem:[#allocation29_spill] sm:$0xff] }
 0x11a   : > { %902 = vrot.lane.b32.xlu1 %v5617_v36, %s5402_s7  ;;  %987 = vrot.lane.b32.xlu0 %v5793_v11, %s5406_s14  ;;  %v1080_v41 = vsel %vm1057_vm4, %v8710_v50, %v5998_v62  ;;  %v1110_v21 = vsel %vm1086_vm5, %v1081_v49, %v6129_v53  ;;  %v8713_v62 = vld [vmem:[#allocation20_spill] sm:$0xff]  ;;  %v8724_v50 = vld [vmem:[#allocation30_spill] sm:$0xff] }
 0x11b   : > { %v1109_v24 = vsel %vm1086_vm5, %v1080_v41, %v6131_v8  ;;  %v1083_v53 = vsel %vm1057_vm4, %v8713_v62, %v6006_v54  ;;  %v8714_v8 = vld [vmem:[#allocation21_spill] sm:$0xff]  ;;  %v8715_v54 = vld [vmem:[#allocation31_spill] sm:$0xff]  ;;  %v8723_v49 = vld [vmem:[#allocation12_spill] sm:$0xff] }
 0x11c   : > { %v570_v38 = vpop.permute.xlu1 %569  ;;  %v568_v58 = vpop.permute.xlu0 %567  ;;  %v1082_v6 = vsel %vm1057_vm4, %v8714_v8, %v6008_v32  ;;  %v1112_v30 = vsel %vm1086_vm5, %v1083_v53, %v6137_v13  ;;  %v8716_v32 = vld [vmem:[#allocation52_spill] sm:$0xff] }
 0x11d   : > { %v6256_v22 = vsel %vm1115_vm6, %v1102_v23, %v570_v38  ;;  %v6259_v31 = vsel %vm1115_vm6, %v1101_v15, %v568_v58  ;;  %v1111_v23 = vsel %vm1086_vm5, %v1082_v6, %v6139_v28  ;;  %v1085_v13 = vsel %vm1057_vm4, %v8717_v0, %v8716_v32  ;;  %v8719_v28 = vld [vmem:[#allocation25_spill] sm:$0xff] }
 0x11e   : > { %644 = vrot.lane.b32.xlu1 %v5584_v27, %s5399_s13  ;;  %989 = vrot.lane.b32.xlu0 %v5814_v56, %s5406_s14  ;;  %v8728_v6 = vld [vmem:[#allocation33_spill] sm:$0xff] }
 0x120   : > { %v574_v19 = vpop.permute.xlu1 %573  ;;  %v572_v20 = vpop.permute.xlu0 %571 }
 0x121   : > { %v6276_v27 = vsel %vm1115_vm6, %v1104_v48, %v574_v19  ;;  %v6279_v52 = vsel %vm1115_vm6, %v1103_v4, %v572_v20  ;;  %v8718_v48 = vld [vmem:[#allocation53_spill] sm:$0xff]  ;;  %v8720_v19 = vld [vmem:[#allocation62_spill] sm:$0xff] }
 0x122   : > { %646 = vrot.lane.b32.xlu1 %v5617_v36, %s5399_s13  ;;  %731 = vrot.lane.b32.xlu0 %v5793_v11, %s5401_s23  ;;  %v1084_v4 = vsel %vm1057_vm4, %v8719_v28, %v8718_v48  ;;  %v1114_v20 = vsel %vm1086_vm5, %v1085_v13, %v8720_v19 }
 0x123   : > { %v1113_v61 = vsel %vm1086_vm5, %v1084_v4, %v8721_v5 }
 0x124   : > { %v578_v59 = vpop.permute.xlu1 %577  ;;  %v576_v43 = vpop.permute.xlu0 %575 }
 0x125   : > { %v6296_v36 = vsel %vm1115_vm6, %v1106_v2, %v578_v59  ;;  %v6299_v11 = vsel %vm1115_vm6, %v1105_v63, %v576_v43 }
 0x126   : > { %733 = vrot.lane.b32.xlu1 %v5814_v56, %s5401_s23  ;;  %817 = vrot.lane.b32.xlu0 %v5588_v29, %s5403_s8 }
 0x128   : > { %v582_v55 = vpop.permute.xlu1 %581  ;;  %v580_v1 = vpop.permute.xlu0 %579 }
 0x129   : > { %v6316_v56 = vsel %vm1115_vm6, %v1108_v9, %v582_v55  ;;  %v6319_v29 = vsel %vm1115_vm6, %v1107_v14, %v580_v1  ;;  %v8722_v55 = vld [vmem:[#allocation9_spill] sm:$0xff] }
 0x12a   : > { %819 = vrot.lane.b32.xlu1 %v5609_v35, %s5403_s8  ;;  %904 = vrot.lane.b32.xlu0 %v8708_v46, %s5402_s7 }
 0x12c   : > { %v586_v25 = vpop.permute.xlu1 %585  ;;  %v584_v42 = vpop.permute.xlu0 %583 }
 0x12d   : > { %v6336_v35 = vsel %vm1115_vm6, %v1110_v21, %v586_v25  ;;  %v6339_v7 = vsel %vm1115_vm6, %v1109_v24, %v584_v42  ;;  %v1321_v21 = vlaneseq  ;;  %v8725_v24 = vld [vmem:[#allocation47_spill] sm:$0xff]  ;;  %v8726_v25 = vld [vmem:[#allocation6_spill] sm:$0xff] }
 0x12e   : > { %906 = vrot.lane.b32.xlu1 %v8711_v47, %s5402_s7  ;;  %991 = vrot.lane.b32.xlu0 %v8712_v16, %s5406_s14 }
 0x130   : > { %v590_v15 = vpop.permute.xlu1 %589  ;;  %v588_v38 = vpop.permute.xlu0 %587 }
 0x131   : > { %v6356_v58 = vsel %vm1115_vm6, %v1112_v30, %v590_v15  ;;  %v6359_v51 = vsel %vm1115_vm6, %v1111_v23, %v588_v38  ;;  %v1322_v23 = vshrl.u32 %v1321_v21, 7  ;;  %v8732_v21 = vld [vmem:[#allocation32_spill] sm:$0xff] }
 0x132   : > { %993 = vrot.lane.b32.xlu1 %v8715_v54, %s5406_s14  ;;  %648 = vrot.lane.b32.xlu0 %v8708_v46, %s5399_s13 }
 0x134   : > { %v594_v2 = vpop.permute.xlu1 %593  ;;  %v592_v63 = vpop.permute.xlu0 %591 }
 0x135   : > { %v6376_v59 = vsel %vm1115_vm6, %v1114_v20, %v594_v2  ;;  %v6379_v43 = vsel %vm1115_vm6, %v1113_v61, %v592_v63 }
 0x136   : > { %650 = vrot.lane.b32.xlu1 %v8711_v47, %s5399_s13  ;;  %735 = vrot.lane.b32.xlu0 %v8712_v16, %s5401_s23  ;;  %v8727_v16 = vld [vmem:[#allocation55_spill] sm:$0xff] }
 0x138   : > { %v629_v57 = vpop.permute.xlu1 %628  ;;  %v627_v10 = vpop.permute.xlu0 %626 }
 0x13a   : > { %737 = vrot.lane.b32.xlu1 %v8715_v54, %s5401_s23  ;;  %821 = vrot.lane.b32.xlu0 %v5606_v34, %s5403_s8  ;;  %v5407_v34 = vmov 1983009808  }
 0x13b   : > { %v1319_v41 = vunpack.c.l.s4 %v5407_v34 }
 0x13c   : > { %v6389_v9 = vpop.permute.xlu1 %632  ;;  %v6391_v14 = vpop.permute.xlu0 %630 }
 0x13d   : > { %v1320_v30 = vunpack.c.0.s8 %v1319_v41 }
 0x13e   : > { %823 = vrot.lane.b32.xlu1 %v5627_v40, %s5403_s8  ;;  %908 = vrot.lane.b32.xlu0 %v8722_v55, %s5402_s7  ;;  %v1058_v40 = vsel %vm1057_vm4, %v8726_v25, %v8725_v24  ;;  %v8734_v25 = vld [vmem:[#allocation64_spill] sm:$0xff] }
 0x13f   : > { %v1087_v62 = vsel %vm1086_vm5, %v1058_v40, %v8727_v16 }
 0x140   : > { %v6397_v1 = vpop.permute.xlu1 %636  ;;  %v6399_v46 = vpop.permute.xlu0 %634  ;;  %v1116_v53 = vsel %vm1115_vm6, %v1087_v62, %v6155_v60  ;;  %v6425_v60 = vsub.s32 %v1320_v30, %v1322_v23  ;;  %v8736_v30 = vld [vmem:[#allocation7_spill] sm:$0xff] }
 0x141   : > { %v1145_v15 = vsel %vm1144_vm7, %v1116_v53, %v627_v10  ;;  %v8730_v10 = vld [vmem:[#allocation45_spill] sm:$0xff]  ;;  %v8735_v53 = vld [vmem:[#allocation48_spill] sm:$0xff] }
 0x142   : > { %910 = vrot.lane.b32.xlu1 %v8723_v49, %s5402_s7  ;;  %995 = vrot.lane.b32.xlu0 %v8724_v50, %s5406_s14  ;;  %v1060_v23 = vsel %vm1057_vm4, %v8736_v30, %v8735_v53 }
 0x144   : > { %v714_v42 = vpop.permute.xlu1 %713  ;;  %v6408_v47 = vpop.permute.xlu0 %638 }
 0x145   : > { %v1174_v38 = vsel %vm1173_vm8, %v1145_v15, %v714_v42 }
 0x146   : > { %997 = vrot.lane.b32.xlu1 %v8728_v6, %s5406_s14  ;;  %652 = vrot.lane.b32.xlu0 %v8722_v55, %s5399_s13  ;;  %v8731_v55 = vld [vmem:[#allocation5_spill] sm:$0xff] }
 0x148   : > { %v887_v54 = vpop.permute.xlu1 %886  ;;  %v800_v32 = vpop.permute.xlu0 %799 }
 0x149   : > { %v1203_v0 = vsel %vm1202_vm9, %v1174_v38, %v800_v32  ;;  %v8737_v32 = vld [vmem:[#allocation14_spill] sm:$0xff] }
 0x14a   : > { %825 = vrot.lane.b32.xlu1 %v5624_v39, %s5403_s8  ;;  %739 = vrot.lane.b32.xlu0 %v8724_v50, %s5401_s23  ;;  %v1232_v48 = vsel %vm1231_vm10, %v1203_v0, %v887_v54  ;;  %v8729_v39 = vld [vmem:[#allocation11_spill] sm:$0xff]  ;;  %v1059_v50 = vsel %vm1057_vm4, %v8731_v55, %v8730_v10  ;;  %v8738_v0 = vld [vmem:[#allocation57_spill] sm:$0xff] }
 0x14c   : > { %v716_v13 = vpop.permute.xlu1 %715  ;;  %v974_v28 = vpop.permute.xlu0 %973 }
 0x14d   : > { %v1261_v4 = vsel %vm1260_vm11, %v1232_v48, %v974_v28  ;;  %v1089_v48 = vsel %vm1086_vm5, %v1060_v23, %v8738_v0 }
 0x14e   : > { %v1317_v19 = vcombine.high %v1261_v4, %v1261_v4  ;;  %v1324_v20 = vrot.slane %v1261_v4, %v6425_v60  ;;  %654 = vrot.lane.b32.xlu1 %v8723_v49, %s5399_s13  ;;  %912 = vrot.lane.b32.xlu0 %v8729_v39, %s5402_s7  ;;  %v8733_v49 = vld [vmem:[#allocation54_spill] sm:$0xff] }
 0x14f   : > { %v1088_v24 = vsel %vm1086_vm5, %v1059_v50, %v8733_v49  ;;  %v8739_v4 = vld [vmem:[#allocation66_spill] sm:$0xff] }
 0x150   : > { %v1331_v5 = vrot.slane %v1317_v19, %v6425_v60  ;;  %v1332_v61 = vcombine.high %v1324_v20, %v1324_v20  ;;  %v718_v2 = vpop.permute.xlu1 %717  ;;  %v802_v63 = vpop.permute.xlu0 %801  ;;  %v1117_v40 = vsel %vm1115_vm6, %v1088_v24, %v8734_v25 }
 0x151   : > { %v1146_v15 = vsel %vm1144_vm7, %v1117_v40, %v629_v57  ;;  %v1118_v57 = vsel %vm1115_vm6, %v1089_v48, %v8739_v4  ;;  %v8746_v4 = vld [vmem:[#allocation56_spill] sm:$0xff] }
 0x152   : > { %v1333_v34 = vcombine.high %v1331_v5, %v1331_v5  ;;  %v1791_v41 = vcombine.low %v1324_v20, %v1332_v61  ;;  %741 = vrot.lane.b32.xlu1 %v8728_v6, %s5401_s23  ;;  %999 = vrot.lane.b32.xlu0 %v8732_v21, %s5406_s14  ;;  %v1175_v6 = vsel %vm1173_vm8, %v1146_v15, %v716_v13 }
 0x153   : > { %v1204_v28 = vsel %vm1202_vm9, %v1175_v6, %v802_v63  ;;  %v1147_v61 = vsel %vm1144_vm7, %v1118_v57, %v6391_v14  ;;  %v8740_v63 = vld [vmem:[#allocation15_spill] sm:$0xff]  ;;  %v5318_v6 = vld [vmem:[%s5496_s9 + $0x18] sm:$0xff] }
 0x154   : > { %v1792_v42 = vcombine.low %v1331_v5, %v1333_v34  ;;  %v804_v16 = vpop.permute.xlu1 %803  ;;  %v889_v62 = vpop.permute.xlu0 %888  ;;  %v1799_v38 = vrot.slane %v1791_v41, %v6425_v60 }
 0x155   : > { %v1233_v13 = vsel %vm1231_vm10, %v1204_v28, %v889_v62  ;;  %v8743_v62 = vld [vmem:[#allocation22_spill] sm:$0xff]  ;;  %v8745_v28 = vld [vmem:[#allocation36_spill] sm:$0xff] }
 0x156   : > { %v1806_v54 = vrot.slane %v1792_v42, %v6425_v60  ;;  %914 = vrot.lane.b32.xlu1 %v8737_v32, %s5402_s7  ;;  %827 = vrot.lane.b32.xlu0 %v5645_v45, %s5403_s8  ;;  %v1176_v45 = vsel %vm1173_vm8, %v1147_v61, %v718_v2  ;;  %v8741_v2 = vmov 0.0  }
 0x157   : > { %v1205_v34 = vsel %vm1202_vm9, %v1176_v45, %v804_v16  ;;  %v8742_v16 = vld [vmem:[#allocation35_spill] sm:$0xff]  ;;  %v8748_v45 = vld [vmem:[#allocation49_spill] sm:$0xff] }
 0x158   : > { %v891_v19 = vpop.permute.xlu1 %890  ;;  %v976_v20 = vpop.permute.xlu0 %975  ;;  %v1807_v5 = vcombine.low %v1799_v38, %v1806_v54  ;;  %v8744_v38 = vld [vmem:[#allocation44_spill] sm:$0xff] }
 0x159   : > { %v1262_v10 = vsel %vm1260_vm11, %v1233_v13, %v976_v20  ;;  %v1234_v14 = vsel %vm1231_vm10, %v1205_v34, %v891_v19  ;;  %v1061_v54 = vsel %vm1057_vm4, %v5318_v6, %v8744_v38  ;;  %v8747_v13 = vld [vmem:[#allocation65_spill] sm:$0xff] }
 0x15a   : > { %v1334_v55 = vcombine.high %v1262_v10, %v1262_v10  ;;  %v1341_v50 = vrot.slane %v1262_v10, %v6425_v60  ;;  %664 = vrot.lane.b32.xlu1 %v8740_v63, %s5399_s13  ;;  %656 = vrot.lane.b32.xlu0 %v8729_v39, %s5399_s13  ;;  %v1090_v57 = vsel %vm1086_vm5, %v1061_v54, %v8746_v4  ;;  %v5319_v10 = vld [vmem:[%s5496_s9 + $0x20] sm:$0xff]  ;;  %v8753_v54 = vld [vmem:[#allocation58_spill] sm:$0xff] }
 0x15b   : > { %5116 = vmatmul.mubr.msk.f32.vlgmr.msra.gmra.mrb[0].mxu0 %vm2207_vm12, %v1807_v5  ;;  %v1119_v19 = vsel %vm1115_vm6, %v1090_v57, %v8747_v13 }
 0x15c   : > { %v1349_v41 = vcombine.high %v1341_v50, %v1341_v50  ;;  %v720_v49 = vpop.permute.xlu1 %719  ;;  %v978_v24 = vpop.permute.xlu0 %977  ;;  %5118 = vmatprep.mubr.msk.f32.mxu0 %vm5405_vm3, %v8741_v2  ;;  %v1348_v40 = vrot.slane %v1334_v55, %v6425_v60  ;;  %v1062_v55 = vsel %vm1057_vm4, %v5319_v10, %v8748_v45 }
 0x15d   : > { %v1263_v25 = vsel %vm1260_vm11, %v1234_v14, %v978_v24  ;;  %v8749_v14 = vld [vmem:[#allocation59_spill] sm:$0xff] }
 0x15e   : > { %v1808_v42 = vcombine.low %v1341_v50, %v1349_v41  ;;  %v1357_v39 = vrot.slane %v1263_v25, %v6425_v60  ;;  %1001 = vrot.lane.b32.xlu1 %v8742_v16, %s5406_s14  ;;  %666 = vrot.lane.b32.xlu0 %v8743_v62, %s5399_s13  ;;  %v1350_v15 = vcombine.high %v1263_v25, %v1263_v25  ;;  %v8750_v25 = vld [vmem:[#allocation39_spill] sm:$0xff] }
 0x15f   : > { %v1148_v50 = vsel %vm1144_vm7, %v1119_v19, %v6389_v9  ;;  %v1091_v41 = vsel %vm1086_vm5, %v1062_v55, %v8749_v14  ;;  %v5320_v9 = vld [vmem:[%s5496_s9 + $0x28] sm:$0xff] }
 0x160   : > { %v1809_v53 = vcombine.low %v1348_v40, %v1357_v39  ;;  %v722_v30 = vpop.permute.xlu1 %721  ;;  %v806_v23 = vpop.permute.xlu0 %805  ;;  %v1816_v0 = vrot.slane %v1808_v42, %v6425_v60  ;;  %v1364_v34 = vrot.slane %v1350_v15, %v6425_v60  ;;  %v1177_v24 = vsel %vm1173_vm8, %v1148_v50, %v720_v49  ;;  %v8751_v40 = vld [vmem:[#allocation68_spill] sm:$0xff] }
 0x161   : > { %v1120_v42 = vsel %vm1115_vm6, %v1091_v41, %v8751_v40 }
 0x162   : > { %v1823_v48 = vrot.slane %v1809_v53, %v6425_v60  ;;  %751 = vrot.lane.b32.xlu1 %v8745_v28, %s5401_s23  ;;  %743 = vrot.lane.b32.xlu0 %v8732_v21, %s5401_s23  ;;  %v1365_v21 = vcombine.high %v1357_v39, %v1357_v39  ;;  %v1206_v53 = vsel %vm1202_vm9, %v1177_v24, %v806_v23  ;;  %v8752_v39 = vld [vmem:[#allocation46_spill] sm:$0xff] }
 0x163   : > { %v1063_v15 = vsel %vm1057_vm4, %v5320_v9, %v8752_v39  ;;  %v1149_v49 = vsel %vm1144_vm7, %v1120_v42, %v6399_v46  ;;  %v1366_v57 = vcombine.high %v1364_v34, %v1364_v34  ;;  %v8754_v46 = vld [vmem:[#allocation67_spill] sm:$0xff] }
 0x164   : > { %v808_v20 = vpop.permute.xlu1 %807  ;;  %v893_v5 = vpop.permute.xlu0 %892  ;;  %v1824_v61 = vcombine.low %v1816_v0, %v1823_v48  ;;  %v1092_v0 = vsel %vm1086_vm5, %v1063_v15, %v8753_v54  ;;  %v1825_v23 = vcombine.low %v1365_v21, %v1364_v34  ;;  %v1178_v48 = vsel %vm1173_vm8, %v1149_v49, %v722_v30 }
 0x165   : > { %v1235_v6 = vsel %vm1231_vm10, %v1206_v53, %v893_v5  ;;  %v1121_v5 = vsel %vm1115_vm6, %v1092_v0, %v8754_v46 }
 0x166   : > { %658 = vrot.lane.b32.xlu1 %v8737_v32, %s5399_s13  ;;  %753 = vrot.lane.b32.xlu0 %v8750_v25, %s5401_s23  ;;  %v1150_v21 = vsel %vm1144_vm7, %v1121_v5, %v6397_v1  ;;  %v8759_v5 = vld [vmem:[#allocation70_spill] sm:$0xff] }
 0x167   : > { %5119 = vmatmul.mubr.msk.f32.gmra.mrb[2].mxu0 %vm2207_vm12, %v1824_v61  ;;  %v1207_v61 = vsel %vm1202_vm9, %v1178_v48, %v808_v20 }
 0x168   : > { %v895_v32 = vpop.permute.xlu1 %894  ;;  %v980_v38 = vpop.permute.xlu0 %979  ;;  %5121 = vmatprep.mubr.msk.f32.mxu0 %vm5405_vm3, %v8741_v2 }
 0x169   : > { %v1264_v4 = vsel %vm1260_vm11, %v1235_v6, %v980_v38  ;;  %v1236_v10 = vsel %vm1231_vm10, %v1207_v61, %v895_v32  ;;  %v8755_v6 = vld [vmem:[#allocation19_spill] sm:$0xff] }
 0x16a   : > { %v1367_v13 = vcombine.high %v1264_v4, %v1264_v4  ;;  %v1374_v19 = vrot.slane %v1264_v4, %v6425_v60  ;;  %837 = vrot.lane.b32.xlu1 %v8709_v37, %s5403_s8  ;;  %829 = vrot.lane.b32.xlu0 %v5642_v44, %s5403_s8  ;;  %v1833_v44 = vrot.slane %v1825_v23, %v6425_v60  ;;  %v8756_v32 = vld [vmem:[#allocation51_spill] sm:$0xff] }
 0x16c   : > { %v1381_v30 = vrot.slane %v1367_v13, %v6425_v60  ;;  %v1382_v45 = vcombine.high %v1374_v19, %v1374_v19  ;;  %v1826_v55 = vcombine.low %v1366_v57, %v1374_v19  ;;  %v724_v50 = vpop.permute.xlu1 %723  ;;  %v982_v34 = vpop.permute.xlu0 %981  ;;  %v8758_v13 = vld [vmem:[#allocation61_spill] sm:$0xff] }
 0x16d   : > { %v1265_v37 = vsel %vm1260_vm11, %v1236_v10, %v982_v34  ;;  %v1179_v24 = vsel %vm1173_vm8, %v1150_v21, %v724_v50 }
 0x16e   : > { %v1840_v14 = vrot.slane %v1826_v55, %v6425_v60  ;;  %v1383_v41 = vcombine.high %v1265_v37, %v1265_v37  ;;  %v1390_v20 = vrot.slane %v1265_v37, %v6425_v60  ;;  %745 = vrot.lane.b32.xlu1 %v8742_v16, %s5401_s23  ;;  %839 = vrot.lane.b32.xlu0 %v8714_v8, %s5403_s8  ;;  %v5321_v16 = vld [vmem:[%s5496_s9 + $0x30] sm:$0xff]  ;;  %v8757_v8 = vld [vmem:[#allocation13_spill] sm:$0xff]  ;;  %v8760_v55 = vld [vmem:[#allocation26_spill] sm:$0xff] }
 0x16f   : > { %v1842_v40 = vcombine.low %v1382_v45, %v1381_v30  ;;  %v1064_v38 = vsel %vm1057_vm4, %v5321_v16, %v8756_v32  ;;  %v8762_v16 = vld [vmem:[#allocation41_spill] sm:$0xff] }
 0x170   : > { %v1397_v1 = vrot.slane %v1383_v41, %v6425_v60  ;;  %v1398_v42 = vcombine.high %v1390_v20, %v1390_v20  ;;  %v897_v53 = vpop.permute.xlu1 %896  ;;  %v810_v9 = vpop.permute.xlu0 %809  ;;  %v1841_v39 = vcombine.low %v1833_v44, %v1840_v14  ;;  %v1093_v19 = vsel %vm1086_vm5, %v1064_v38, %v8758_v13  ;;  %v8763_v38 = vld [vmem:[#allocation38_spill] sm:$0xff] }
 0x171   : > { %v1208_v15 = vsel %vm1202_vm9, %v1179_v24, %v810_v9  ;;  %v1850_v54 = vrot.slane %v1842_v40, %v6425_v60  ;;  %v1122_v61 = vsel %vm1115_vm6, %v1093_v19, %v8759_v5  ;;  %v5322_v24 = vld [vmem:[%s5496_s9 + $0xa0] sm:$0xff]  ;;  %v8764_v13 = vld [vmem:[#allocation18_spill] sm:$0xff] }
 0x172   : > { %v1843_v49 = vcombine.low %v1390_v20, %v1398_v42  ;;  %924 = vrot.lane.b32.xlu1 %v8755_v6, %s5402_s7  ;;  %5122 = vmatmul.mubr.msk.f32.gmra.mrb[4].mxu0 %vm2207_vm12, %v1841_v39  ;;  %v1399_v0 = vcombine.high %v1397_v1, %v1397_v1  ;;  %v1237_v4 = vsel %vm1231_vm10, %v1208_v15, %v897_v53 }
 0x173   : > { %916 = vrot.lane.b32.xlu0 %v8757_v8, %s5402_s7  ;;  %5124 = vmatprep.mubr.msk.f32.mxu0 %vm5405_vm3, %v8741_v2  ;;  %v1151_v45 = vsel %vm1144_vm7, %v1122_v61, %v6408_v47  ;;  %v8761_v47 = vld [vmem:[#allocation34_spill] sm:$0xff] }
 0x174   : > { %v1857_v23 = vrot.slane %v1843_v49, %v6425_v60  ;;  %v726_v48 = vpop.permute.xlu1 %725  ;;  %v984_v57 = vpop.permute.xlu0 %983  ;;  %v1859_v50 = vcombine.low %v1397_v1, %v1399_v0 }
 0x175   : > { %v1266_v46 = vsel %vm1260_vm11, %v1237_v4, %v984_v57  ;;  %v1180_v34 = vsel %vm1173_vm8, %v1151_v45, %v726_v48 }
 0x176   : > { %v1407_v10 = vrot.slane %v1266_v46, %v6425_v60  ;;  %668 = vrot.lane.b32.xlu1 %v8755_v6, %s5399_s13  ;;  %v1858_v30 = vcombine.low %v1850_v54, %v1857_v23  ;;  %v1400_v41 = vcombine.high %v1266_v46, %v1266_v46  ;;  %v1867_v40 = vrot.slane %v1859_v50, %v6425_v60  ;;  %v8766_v50 = vld [vmem:[#allocation37_spill] sm:$0xff] }
 0x177   : > { %926 = vrot.lane.b32.xlu0 %v8760_v55, %s5402_s7 }
 0x178   : > { %v1415_v21 = vcombine.high %v1407_v10, %v1407_v10  ;;  %v899_v37 = vpop.permute.xlu1 %898  ;;  %5125 = vmatmul.mubr.msk.f32.gmra.mrb[6].mxu0 %vm2207_vm12, %v1858_v30  ;;  %v812_v44 = vpop.permute.xlu0 %811  ;;  %v1414_v15 = vrot.slane %v1400_v41, %v6425_v60  ;;  %v8765_v30 = vld [vmem:[#allocation50_spill] sm:$0xff] }
 0x179   : > { %v1209_v14 = vsel %vm1202_vm9, %v1180_v34, %v812_v44  ;;  %5127 = vmatprep.mubr.msk.f32.mxu0 %vm5405_vm3, %v8741_v2  ;;  %v5324_v44 = vld [vmem:[%s5496_s9 + $0xc8] sm:$0xff] }
 0x17a   : > { %v1860_v20 = vcombine.low %v1407_v10, %v1415_v21  ;;  %1003 = vrot.lane.b32.xlu1 %v8761_v47, %s5406_s14  ;;  %v1238_v53 = vsel %vm1231_vm10, %v1209_v14, %v899_v37  ;;  %v5323_v10 = vld [vmem:[%s5496_s9 + $0x38] sm:$0xff]  ;;  %v8768_v14 = vld [vmem:[#allocation69_spill] sm:$0xff] }
 0x17b   : > { %831 = vrot.lane.b32.xlu0 %v5322_v24, %s5403_s8  ;;  %v1065_v45 = vsel %vm1057_vm4, %v5323_v10, %v8765_v30  ;;  %v8767_v21 = vld [vmem:[#allocation60_spill] sm:$0xff] }
 0x17c   : > { %v1874_v1 = vrot.slane %v1860_v20, %v6425_v60  ;;  %v986_v42 = vpop.permute.xlu1 %985  ;;  %v641_v9 = vpop.permute.xlu0 %640  ;;  %v1094_v37 = vsel %vm1086_vm5, %v1065_v45, %v8767_v21 }
 0x17d   : > { %v1267_v39 = vsel %vm1260_vm11, %v1238_v53, %v986_v42  ;;  %v1123_v41 = vsel %vm1115_vm6, %v1094_v37, %v8768_v14  ;;  %v8769_v53 = vld [vmem:[#allocation23_spill] sm:$0xff] }
 0x17e   : > { %v1416_v49 = vcombine.high %v1267_v39, %v1267_v39  ;;  %v1423_v6 = vrot.slane %v1267_v39, %v6425_v60  ;;  %1013 = vrot.lane.b32.xlu1 %v8762_v16, %s5406_s14  ;;  %v1875_v32 = vcombine.low %v1867_v40, %v1874_v1  ;;  %v1152_v40 = vsel %vm1144_vm7, %v1123_v41, %v641_v9 }
 0x17f   : > { %1011 = vrot.lane.b32.xlu0 %v8763_v38, %s5406_s14 }
 0x180   : > { %v1430_v54 = vrot.slane %v1416_v49, %v6425_v60  ;;  %v1431_v0 = vcombine.high %v1423_v6, %v1423_v6  ;;  %v1876_v23 = vcombine.low %v1414_v15, %v1423_v6  ;;  %v643_v48 = vpop.permute.xlu1 %642  ;;  %5128 = vmatmul.mubr.msk.f32.gmra.mrb[8].mxu0 %vm2207_vm12, %v1875_v32  ;;  %v728_v4 = vpop.permute.xlu0 %727 }
 0x181   : > { %5130 = vmatprep.mubr.msk.f32.mxu0 %vm5405_vm3, %v8741_v2  ;;  %v1181_v1 = vsel %vm1173_vm8, %v1152_v40, %v728_v4  ;;  %v1153_v9 = vsel %vm1144_vm7, %v6199_v17, %v643_v48 }
 0x182   : > { %v1877_v57 = vcombine.low %v1431_v0, %v1430_v54  ;;  %918 = vrot.lane.b32.xlu1 %v8764_v13, %s5402_s7  ;;  %v1884_v19 = vrot.slane %v1876_v23, %v6425_v60  ;;  %v8770_v23 = vld [vmem:[#allocation40_spill] sm:$0xff] }
 0x183   : > { %755 = vrot.lane.b32.xlu0 %v8763_v38, %s5401_s23  ;;  %v1432_v38 = vcombine.high %v1430_v54, %v1430_v54 }
 0x184   : > { %v1891_v46 = vrot.slane %v1877_v57, %v6425_v60  ;;  %v730_v5 = vpop.permute.xlu1 %729  ;;  %v814_v61 = vpop.permute.xlu0 %813 }
 0x185   : > { %v1210_v42 = vsel %vm1202_vm9, %v1181_v1, %v814_v61  ;;  %v1182_v32 = vsel %vm1173_vm8, %v1153_v9, %v730_v5 }
 0x186   : > { %1005 = vrot.lane.b32.xlu1 %v8766_v50, %s5406_s14  ;;  %v1892_v34 = vcombine.low %v1884_v19, %v1891_v46 }
 0x187   : > { %841 = vrot.lane.b32.xlu0 %v5324_v44, %s5403_s8 }
 0x188   : > { %v816_v20 = vpop.permute.xlu1 %815  ;;  %5131 = vmatmul.mubr.msk.f32.gmra.mrb[10].mxu0 %vm2207_vm12, %v1892_v34  ;;  %v901_v24 = vpop.permute.xlu0 %900 }
 0x189   : > { %5133 = vmatprep.mubr.msk.f32.mxu0 %vm5405_vm3, %v8741_v2  ;;  %v1239_v39 = vsel %vm1231_vm10, %v1210_v42, %v901_v24  ;;  %v1211_v4 = vsel %vm1202_vm9, %v1182_v32, %v816_v20  ;;  %v5325_v20 = vld [vmem:[%s5496_s9 + $0xa8] sm:$0xff]  ;;  %v8771_v32 = vld [vmem:[#allocation28_spill] sm:$0xff] }
 0x18a   : > { %660 = vrot.lane.b32.xlu1 %v8757_v8, %s5399_s13 }
 0x18b   : > { %928 = vrot.lane.b32.xlu0 %v8769_v53, %s5402_s7 }
 0x18c   : > { %v903_v15 = vpop.permute.xlu1 %902  ;;  %v988_v49 = vpop.permute.xlu0 %987 }
 0x18d   : > { %v1268_v6 = vsel %vm1260_vm11, %v1239_v39, %v988_v49  ;;  %v1240_v57 = vsel %vm1231_vm10, %v1211_v4, %v903_v15  ;;  %v5326_v39 = vld [vmem:[%s5496_s9 + $0xd0] sm:$0xff] }
 0x18e   : > { %v1433_v0 = vcombine.high %v1268_v6, %v1268_v6  ;;  %v1440_v8 = vrot.slane %v1268_v6, %v6425_v60  ;;  %1015 = vrot.lane.b32.xlu1 %v8770_v23, %s5406_s14 }
 0x18f   : > { %670 = vrot.lane.b32.xlu0 %v8760_v55, %s5399_s13 }
 0x190   : > { %v1447_v17 = vrot.slane %v1433_v0, %v6425_v60  ;;  %v1448_v48 = vcombine.high %v1440_v8, %v1440_v8  ;;  %v1893_v19 = vcombine.low %v1432_v38, %v1440_v8  ;;  %v645_v46 = vpop.permute.xlu1 %644  ;;  %v990_v54 = vpop.permute.xlu0 %989 }
 0x191   : > { %v1269_v5 = vsel %vm1260_vm11, %v1240_v57, %v990_v54  ;;  %v1154_v9 = vsel %vm1144_vm7, %v6196_v33, %v645_v46 }
 0x192   : > { %v1894_v61 = vcombine.low %v1448_v48, %v1447_v17  ;;  %v1449_v10 = vcombine.high %v1269_v5, %v1269_v5  ;;  %v1456_v30 = vrot.slane %v1269_v5, %v6425_v60  ;;  %757 = vrot.lane.b32.xlu1 %v8762_v16, %s5401_s23  ;;  %v1901_v55 = vrot.slane %v1893_v19, %v6425_v60  ;;  %v5327_v19 = vld [vmem:[%s5496_s9 + $0xb0] sm:$0xff] }
 0x193   : > { %747 = vrot.lane.b32.xlu0 %v8761_v47, %s5401_s23 }
 0x194   : > { %v1908_v45 = vrot.slane %v1894_v61, %v6425_v60  ;;  %v1463_v34 = vrot.slane %v1449_v10, %v6425_v60  ;;  %v1464_v21 = vcombine.high %v1456_v30, %v1456_v30  ;;  %v647_v37 = vpop.permute.xlu1 %646  ;;  %v732_v44 = vpop.permute.xlu0 %731 }
 0x195   : > { %v1183_v6 = vsel %vm1173_vm8, %v1154_v9, %v732_v44  ;;  %v1155_v33 = vsel %vm1144_vm7, %v6219_v3, %v647_v37 }
 0x196   : > { %v1465_v14 = vcombine.high %v1463_v34, %v1463_v34  ;;  %v1910_v41 = vcombine.low %v1456_v30, %v1464_v21  ;;  %833 = vrot.lane.b32.xlu1 %v5325_v20, %s5403_s8  ;;  %v1909_v24 = vcombine.low %v1901_v55, %v1908_v45  ;;  %v8772_v45 = vld [vmem:[#allocation43_spill] sm:$0xff] }
 0x197   : > { %662 = vrot.lane.b32.xlu0 %v8764_v13, %s5399_s13 }
 0x198   : > { %v1911_v47 = vcombine.low %v1463_v34, %v1465_v14  ;;  %v734_v16 = vpop.permute.xlu1 %733  ;;  %5134 = vmatmul.mubr.msk.f32.gmra.mrb[12].mxu0 %vm2207_vm12, %v1909_v24  ;;  %v818_v40 = vpop.permute.xlu0 %817  ;;  %v1918_v1 = vrot.slane %v1910_v41, %v6425_v60 }
 0x199   : > { %5136 = vmatprep.mubr.msk.f32.mxu0 %vm5405_vm3, %v8741_v2  ;;  %v1212_v38 = vsel %vm1202_vm9, %v1183_v6, %v818_v40  ;;  %v1184_v57 = vsel %vm1173_vm8, %v1155_v33, %v734_v16 }
 0x19a   : > { %v1925_v42 = vrot.slane %v1911_v47, %v6425_v60  ;;  %749 = vrot.lane.b32.xlu1 %v8766_v50, %s5401_s23 }
 0x19b   : > { %843 = vrot.lane.b32.xlu0 %v5326_v39, %s5403_s8 }
 0x19c   : > { %v820_v15 = vpop.permute.xlu1 %819  ;;  %v905_v13 = vpop.permute.xlu0 %904  ;;  %v1926_v49 = vcombine.low %v1918_v1, %v1925_v42  ;;  %v6709_v42 = vld [vmem:[%s5496_s9 + $0xe8] sm:$0xff] }
 0x19d   : > { %v1241_v50 = vsel %vm1231_vm10, %v1212_v38, %v905_v13  ;;  %v6712_v39 = vrot.slane %v6709_v42, 1 }
 0x19e   : > { %930 = vrot.lane.b32.xlu1 %v8771_v32, %s5402_s7  ;;  %5137 = vmatmul.mubr.msk.f32.gmra.mrb[14].mxu0 %vm2207_vm12, %v1926_v49 }
 0x19f   : > { %920 = vrot.lane.b32.xlu0 %v8740_v63, %s5402_s7  ;;  %5139 = vmatprep.mubr.msk.f32.mxu0 %vm5405_vm3, %v8741_v2  ;;  %v1213_v63 = vsel %vm1202_vm9, %v1184_v57, %v820_v15  ;;  %v5330_v15 = vld [vmem:[%s5496_s9 + $0xe0] sm:$0xff] }
 0x1a0   : > { %v907_v0 = vpop.permute.xlu1 %906  ;;  %v992_v8 = vpop.permute.xlu0 %991  ;;  %v623_v13 = vrot.slane %v5330_v15, 1  ;;  %v710_v57 = vrot.slane %v5330_v15, 2 }
 0x1a1   : > { %v1270_v4 = vsel %vm1260_vm11, %v1241_v50, %v992_v8  ;;  %v1242_v46 = vsel %vm1231_vm10, %v1213_v63, %v907_v0 }
 0x1a2   : > { %v1466_v17 = vcombine.high %v1270_v4, %v1270_v4  ;;  %v1473_v48 = vrot.slane %v1270_v4, %v6425_v60  ;;  %835 = vrot.lane.b32.xlu1 %v5327_v19, %s5403_s8 }
 0x1a3   : > { %672 = vrot.lane.b32.xlu0 %v8769_v53, %s5399_s13 }
 0x1a4   : > { %v1481_v54 = vcombine.high %v1473_v48, %v1473_v48  ;;  %v994_v5 = vpop.permute.xlu1 %993  ;;  %v649_v3 = vpop.permute.xlu0 %648  ;;  %v1480_v10 = vrot.slane %v1466_v17, %v6425_v60 }
 0x1a5   : > { %v1271_v61 = vsel %vm1260_vm11, %v1242_v46, %v994_v5  ;;  %v1156_v40 = vsel %vm1144_vm7, %v6216_v18, %v649_v3 }
 0x1a6   : > { %v1927_v30 = vcombine.low %v1473_v48, %v1481_v54  ;;  %v1489_v55 = vrot.slane %v1271_v61, %v6425_v60  ;;  %1017 = vrot.lane.b32.xlu1 %v8772_v45, %s5406_s14  ;;  %v1482_v24 = vcombine.high %v1271_v61, %v1271_v61  ;;  %v8773_v48 = vld [vmem:[#allocation27_spill] sm:$0xff] }
 0x1a7   : > { %1007 = vrot.lane.b32.xlu0 %v8745_v28, %s5406_s14  ;;  %v5328_v28 = vld [vmem:[%s5496_s9 + $0xd8] sm:$0xff] }
 0x1a8   : > { %v1928_v53 = vcombine.low %v1480_v10, %v1489_v55  ;;  %v651_v34 = vpop.permute.xlu1 %650  ;;  %v736_v21 = vpop.permute.xlu0 %735  ;;  %v1935_v37 = vrot.slane %v1927_v30, %v6425_v60  ;;  %v1497_v16 = vcombine.high %v1489_v55, %v1489_v55 }
 0x1a9   : > { %v1185_v1 = vsel %vm1173_vm8, %v1156_v40, %v736_v21  ;;  %v1157_v38 = vsel %vm1144_vm7, %v6239_v12, %v651_v34  ;;  %v625_v12 = vsel %vm283_vm0, %v623_v13, %v6712_v39 }
 0x1aa   : > { %v1942_v44 = vrot.slane %v1928_v53, %v6425_v60  ;;  %922 = vrot.lane.b32.xlu1 %v8743_v62, %s5402_s7 }
 0x1ab   : > { %759 = vrot.lane.b32.xlu0 %v8770_v23, %s5401_s23  ;;  %v1496_v23 = vrot.slane %v1482_v24, %v6425_v60 }
 0x1ac   : > { %v738_v14 = vpop.permute.xlu1 %737  ;;  %v822_v41 = vpop.permute.xlu0 %821  ;;  %v1943_v20 = vcombine.low %v1935_v37, %v1942_v44 }
 0x1ad   : > { %v1214_v49 = vsel %vm1202_vm9, %v1185_v1, %v822_v41  ;;  %v1186_v0 = vsel %vm1173_vm8, %v1157_v38, %v738_v14  ;;  %v1498_v8 = vcombine.high %v1496_v23, %v1496_v23 }
 0x1ae   : > { %845 = vrot.lane.b32.xlu1 %v5328_v28, %s5403_s8  ;;  %5140 = vmatmul.mubr.msk.f32.gmra.mrb[16].mxu0 %vm2207_vm12, %v1943_v20 }
 0x1af   : > { %674 = vrot.lane.b32.xlu0 %v8771_v32, %s5399_s13  ;;  %5142 = vmatprep.mubr.msk.f32.mxu0 %vm5405_vm3, %v8741_v2  ;;  %v1944_v32 = vcombine.low %v1497_v16, %v1496_v23 }
 0x1b0   : > { %v824_v62 = vpop.permute.xlu1 %823  ;;  %v909_v47 = vpop.permute.xlu0 %908 }
 0x1b1   : > { %v1243_v9 = vsel %vm1231_vm10, %v1214_v49, %v909_v47  ;;  %v1215_v17 = vsel %vm1202_vm9, %v1186_v0, %v824_v62  ;;  %v1952_v10 = vrot.slane %v1944_v32, %v6425_v60 }
 0x1b2   : > { %761 = vrot.lane.b32.xlu1 %v8772_v45, %s5401_s23  ;;  %v8774_v45 = vld [vmem:[#allocation42_spill] sm:$0xff] }
 0x1b3   : > { %1009 = vrot.lane.b32.xlu0 %v8750_v25, %s5406_s14  ;;  %v6726_v25 = vrot.slane %v6709_v42, 2 }
 0x1b4   : > { %v911_v18 = vpop.permute.xlu1 %910  ;;  %v996_v6 = vpop.permute.xlu0 %995 }
 0x1b5   : > { %v1272_v50 = vsel %vm1260_vm11, %v1243_v9, %v996_v6  ;;  %v1244_v19 = vsel %vm1231_vm10, %v1215_v17, %v911_v18  ;;  %v712_v53 = vsel %vm410_vm1, %v710_v57, %v6726_v25  ;;  %v253_v18 = vld [vmem:[%s5496_s9 + $0xf0] sm:$0xff]  ;;  %v254_v6 = vld [vmem:[%s5496_s9 + $0xf8] sm:$0xff] }
 0x1b6   : > { %v1499_v33 = vcombine.high %v1272_v50, %v1272_v50  ;;  %v1506_v4 = vrot.slane %v1272_v50, %v6425_v60  ;;  %847 = vrot.lane.b32.xlu1 %v5330_v15, %s5403_s8  ;;  %v883_v50 = vrot.slane %v253_v18, 1  ;;  %v884_v0 = vrot.slane %v254_v6, 1 }
 0x1b7   : > { %932 = vrot.lane.b32.xlu0 %v8773_v48, %s5402_s7 }
 0x1b8   : > { %v1513_v63 = vrot.slane %v1499_v33, %v6425_v60  ;;  %v1514_v46 = vcombine.high %v1506_v4, %v1506_v4  ;;  %v1945_v54 = vcombine.low %v1498_v8, %v1506_v4  ;;  %v998_v5 = vpop.permute.xlu1 %997  ;;  %v653_v3 = vpop.permute.xlu0 %652 }
 0x1b9   : > { %v1273_v61 = vsel %vm1260_vm11, %v1244_v19, %v998_v5  ;;  %v1158_v24 = vsel %vm1144_vm7, %v6236_v26, %v653_v3  ;;  %v885_v19 = vsel %vm283_vm0, %v883_v50, %v884_v0 }
 0x1ba   : > { %v1959_v30 = vrot.slane %v1945_v54, %v6425_v60  ;;  %v1522_v55 = vrot.slane %v1273_v61, %v6425_v60  ;;  %934 = vrot.lane.b32.xlu1 %v625_v12, %s5402_s7  ;;  %v1961_v34 = vcombine.low %v1514_v46, %v1513_v63  ;;  %v1515_v21 = vcombine.high %v1273_v61, %v1273_v61 }
 0x1bb   : > { %1019 = vrot.lane.b32.xlu0 %v8774_v45, %s5406_s14  ;;  %v971_v63 = vrot.slane %v254_v6, 2 }
 0x1bc   : > { %v1530_v37 = vcombine.high %v1522_v55, %v1522_v55  ;;  %v826_v44 = vpop.permute.xlu1 %825  ;;  %v740_v14 = vpop.permute.xlu0 %739  ;;  %v1960_v41 = vcombine.low %v1952_v10, %v1959_v30  ;;  %v1969_v28 = vrot.slane %v1961_v34, %v6425_v60  ;;  %v1529_v62 = vrot.slane %v1515_v21, %v6425_v60 }
 0x1bd   : > { %v1187_v23 = vsel %vm1173_vm8, %v1158_v24, %v740_v14 }
 0x1be   : > { %v1962_v20 = vcombine.low %v1522_v55, %v1530_v37  ;;  %676 = vrot.lane.b32.xlu1 %v8773_v48, %s5399_s13  ;;  %5143 = vmatmul.mubr.msk.f32.gmra.mrb[18].mxu0 %vm2207_vm12, %v1960_v41  ;;  %v1216_v1 = vsel %vm1202_vm9, %v1187_v23, %v826_v44  ;;  %v1531_v15 = vcombine.high %v1529_v62, %v1529_v62 }
 0x1bf   : > { %1021 = vrot.lane.b32.xlu0 %v712_v53, %s5406_s14  ;;  %5145 = vmatprep.mubr.msk.f32.mxu0 %vm5405_vm3, %v8741_v2 }
 0x1c0   : > { %v1976_v47 = vrot.slane %v1962_v20, %v6425_v60  ;;  %v655_v16 = vpop.permute.xlu1 %654  ;;  %v913_v40 = vpop.permute.xlu0 %912  ;;  %v1978_v8 = vcombine.low %v1529_v62, %v1531_v15 }
 0x1c1   : > { %v1245_v13 = vsel %vm1231_vm10, %v1216_v1, %v913_v40  ;;  %v1159_v48 = vsel %vm1144_vm7, %v6259_v31, %v655_v16 }
 0x1c2   : > { %678 = vrot.lane.b32.xlu1 %v625_v12, %s5399_s13  ;;  %v1977_v26 = vcombine.low %v1969_v28, %v1976_v47  ;;  %v970_v12 = vrot.slane %v253_v18, 2 }
 0x1c3   : > { %763 = vrot.lane.b32.xlu0 %v8774_v45, %s5401_s23 }
 0x1c4   : > { %v742_v49 = vpop.permute.xlu1 %741  ;;  %5146 = vmatmul.mubr.msk.f32.gmra.mrb[20].mxu0 %vm2207_vm12, %v1977_v26  ;;  %v1000_v9 = vpop.permute.xlu0 %999  ;;  %v972_v30 = vsel %vm410_vm1, %v970_v12, %v971_v63  ;;  %vm4638_vm1 = vcmask 588800  }
 0x1c5   : > { %v1274_v32 = vsel %vm1260_vm11, %v1245_v13, %v1000_v9  ;;  %5148 = vmatprep.mubr.msk.f32.mxu0 %vm5405_vm3, %v8741_v2  ;;  %v1188_v46 = vsel %vm1173_vm8, %v1159_v48, %v742_v49 }
 0x1c6   : > { %v1539_v38 = vrot.slane %v1274_v32, %v6425_v60  ;;  %765 = vrot.lane.b32.xlu1 %v712_v53, %s5401_s23  ;;  %v1532_v10 = vcombine.high %v1274_v32, %v1274_v32 }
 0x1c7   : > { %849 = vrot.lane.b32.xlu0 %v6709_v42, %s5403_s8  ;;  %v1986_v42 = vrot.slane %v1978_v8, %v6425_v60 }
 0x1c8   : > { %v1547_v33 = vcombine.high %v1539_v38, %v1539_v38  ;;  %v915_v4 = vpop.permute.xlu1 %914  ;;  %v828_v57 = vpop.permute.xlu0 %827  ;;  %v1546_v21 = vrot.slane %v1532_v10, %v6425_v60 }
 0x1c9   : > { %v1217_v61 = vsel %vm1202_vm9, %v1188_v46, %v828_v57 }
 0x1ca   : > { %v1979_v17 = vcombine.low %v1539_v38, %v1547_v33  ;;  %851 = vrot.lane.b32.xlu1 %v253_v18, %s5403_s8  ;;  %v1246_v45 = vsel %vm1231_vm10, %v1217_v61, %v915_v4 }
 0x1cb   : > { %936 = vrot.lane.b32.xlu0 %v6712_v39, %s5402_s7 }
 0x1cc   : > { %v1993_v54 = vrot.slane %v1979_v17, %v6425_v60  ;;  %v665_v5 = vpop.permute.xlu1 %664  ;;  %v657_v3 = vpop.permute.xlu0 %656 }
 0x1cd   : > { %v1160_v18 = vsel %vm1144_vm7, %v6256_v22, %v657_v3  ;;  %v1164_v8 = vsel %vm1144_vm7, %v6296_v36, %v665_v5 }
 0x1ce   : > { %938 = vrot.lane.b32.xlu1 %v885_v19, %s5402_s7  ;;  %v1994_v31 = vcombine.low %v1986_v42, %v1993_v54 }
 0x1cf   : > { %1023 = vrot.lane.b32.xlu0 %v6726_v25, %s5406_s14 }
 0x1d0   : > { %v1002_v55 = vpop.permute.xlu1 %1001  ;;  %5149 = vmatmul.mubr.msk.f32.gmra.mrb[22].mxu0 %vm2207_vm12, %v1994_v31  ;;  %v667_v53 = vpop.permute.xlu0 %666 }
 0x1d1   : > { %v1275_v34 = vsel %vm1260_vm11, %v1246_v45, %v1002_v55  ;;  %5151 = vmatprep.mubr.msk.f32.mxu0 %vm5405_vm3, %v8741_v2  ;;  %v1165_v33 = vsel %vm1144_vm7, %v6319_v29, %v667_v53 }
 0x1d2   : > { %v1548_v37 = vcombine.high %v1275_v34, %v1275_v34  ;;  %v1555_v44 = vrot.slane %v1275_v34, %v6425_v60  ;;  %1025 = vrot.lane.b32.xlu1 %v972_v30, %s5406_s14 }
 0x1d3   : > { %680 = vrot.lane.b32.xlu0 %v6712_v39, %s5399_s13 }
 0x1d4   : > { %v1562_v14 = vrot.slane %v1548_v37, %v6425_v60  ;;  %v1563_v41 = vcombine.high %v1555_v44, %v1555_v44  ;;  %v1995_v20 = vcombine.low %v1546_v21, %v1555_v44  ;;  %v752_v24 = vpop.permute.xlu1 %751  ;;  %v744_v28 = vpop.permute.xlu0 %743 }
 0x1d5   : > { %v1189_v32 = vsel %vm1173_vm8, %v1160_v18, %v744_v28  ;;  %v1193_v19 = vsel %vm1173_vm8, %v1164_v8, %v752_v24 }
 0x1d6   : > { %v1996_v62 = vcombine.low %v1563_v41, %v1562_v14  ;;  %853 = vrot.lane.b32.xlu1 %v254_v6, %s5403_s8  ;;  %v2003_v47 = vrot.slane %v1995_v20, %v6425_v60  ;;  %v1564_v22 = vcombine.high %v1562_v14, %v1562_v14 }
 0x1d7   : > { %767 = vrot.lane.b32.xlu0 %v6726_v25, %s5401_s23  ;;  %s5409_s23 = smov 48  }
 0x1d8   : > { %v2010_v23 = vrot.slane %v1996_v62, %v6425_v60  ;;  %v659_v16 = vpop.permute.xlu1 %658  ;;  %v754_v40 = vpop.permute.xlu0 %753 }
 0x1d9   : > { %v1194_v17 = vsel %vm1173_vm8, %v1165_v33, %v754_v40  ;;  %v1161_v37 = vsel %vm1144_vm7, %v6279_v52, %v659_v16 }
 0x1da   : > { %1027 = vrot.lane.b32.xlu1 %v971_v63, %s5406_s14  ;;  %v2011_v39 = vcombine.low %v2003_v47, %v2010_v23 }
 0x1db   : > { %940 = vrot.lane.b32.xlu0 %v884_v0, %s5402_s7 }
 0x1dc   : > { %v838_v26 = vpop.permute.xlu1 %837  ;;  %5152 = vmatmul.mubr.msk.f32.gmra.mrb[24].mxu0 %vm2207_vm12, %v2011_v39  ;;  %v830_v1 = vpop.permute.xlu0 %829 }
 0x1dd   : > { %5154 = vmatprep.mubr.msk.f32.mxu0 %vm5405_vm3, %v8741_v2  ;;  %v1218_v38 = vsel %vm1202_vm9, %v1189_v32, %v830_v1  ;;  %v1222_v5 = vsel %vm1202_vm9, %v1193_v19, %v838_v26 }
 0x1e0   : > { %v746_v15 = vpop.permute.xlu1 %745  ;;  %v840_v25 = vpop.permute.xlu0 %839 }
 0x1e1   : > { %v1223_v63 = vsel %vm1202_vm9, %v1194_v17, %v840_v25  ;;  %v1190_v20 = vsel %vm1173_vm8, %v1161_v37, %v746_v15 }
 0x1e4   : > { %v925_v13 = vpop.permute.xlu1 %924 }
 0x1e5   : > { %v917_v49 = vpop.permute.xlu0 %916  ;;  %v1251_v10 = vsel %vm1231_vm10, %v1222_v5, %v925_v13 }
 0x1e6   : > { %v1247_v50 = vsel %vm1231_vm10, %v1218_v38, %v917_v49 }
 0x1e8   : > { %v669_v9 = vpop.permute.xlu1 %668 }
 0x1e9   : > { %v927_v6 = vpop.permute.xlu0 %926 }
 0x1ea   : > { %v1252_v42 = vsel %vm1231_vm10, %v1223_v63, %v927_v6 }
 0x1ec   : > { %v1004_v0 = vpop.permute.xlu1 %1003 }
 0x1ed   : > { %v1276_v4 = vsel %vm1260_vm11, %v1247_v50, %v1004_v0  ;;  %v832_v57 = vpop.permute.xlu0 %831  ;;  %v1166_v50 = vsel %vm1144_vm7, %v6316_v56, %v669_v9 }
 0x1ee   : > { %v1565_v48 = vcombine.high %v1276_v4, %v1276_v4  ;;  %v1572_v12 = vrot.slane %v1276_v4, %v6425_v60  ;;  %v1219_v62 = vsel %vm1202_vm9, %v1190_v20, %v832_v57 }
 0x1f0   : > { %v1579_v36 = vrot.slane %v1565_v48, %v6425_v60  ;;  %v1580_v46 = vcombine.high %v1572_v12, %v1572_v12  ;;  %v2012_v54 = vcombine.low %v1564_v22, %v1572_v12  ;;  %v1014_v29 = vpop.permute.xlu1 %1013 }
 0x1f1   : > { %v1281_v3 = vsel %vm1260_vm11, %v1252_v42, %v1014_v29  ;;  %v1012_v61 = vpop.permute.xlu0 %1011 }
 0x1f2   : > { %v2013_v31 = vcombine.low %v1580_v46, %v1579_v36  ;;  %v1654_v30 = vrot.slane %v1281_v3, %v6425_v60  ;;  %v1280_v55 = vsel %vm1260_vm11, %v1251_v10, %v1012_v61  ;;  %v2020_v44 = vrot.slane %v2012_v54, %v6425_v60 }
 0x1f3   : > { %v1631_v34 = vcombine.high %v1280_v55, %v1280_v55  ;;  %v6832_v14 = vrot.slane %v1280_v55, %v6425_v60  ;;  %v1647_v40 = vcombine.high %v1281_v3, %v1281_v3 }
 0x1f4   : > { %v2027_v45 = vrot.slane %v2013_v31, %v6425_v60  ;;  %v1662_v53 = vcombine.high %v1654_v30, %v1654_v30  ;;  %v919_v21 = vpop.permute.xlu1 %918 }
 0x1f5   : > { %v756_v41 = vpop.permute.xlu0 %755  ;;  %v1645_v28 = vrot.slane %v1631_v34, %v6425_v60  ;;  %v1646_v47 = vcombine.high %v6832_v14, %v6832_v14  ;;  %v1248_v52 = vsel %vm1231_vm10, %v1219_v62, %v919_v21  ;;  %v1661_v18 = vrot.slane %v1647_v40, %v6425_v60 }
 0x1f6   : > { %v2081_v24 = vcombine.low %v1654_v30, %v1662_v53  ;;  %v2028_v23 = vcombine.low %v2020_v44, %v2027_v45  ;;  %v1195_v33 = vsel %vm1173_vm8, %v1166_v50, %v756_v41 }
 0x1f7   : > { %v2080_v26 = vcombine.low %v1646_v47, %v1645_v28  ;;  %v1663_v22 = vcombine.high %v1661_v18, %v1661_v18 }
 0x1f8   : > { %v1006_v16 = vpop.permute.xlu1 %1005  ;;  %v2095_v39 = vrot.slane %v2081_v24, %v6425_v60  ;;  %5155 = vmatmul.mubr.msk.f32.gmra.mrb[26].mxu0 %vm2207_vm12, %v2028_v23 }
 0x1f9   : > { %v1277_v1 = vsel %vm1260_vm11, %v1248_v52, %v1006_v16  ;;  %v842_v15 = vpop.permute.xlu0 %841  ;;  %5157 = vmatprep.mubr.msk.f32.mxu0 %vm5405_vm3, %v8741_v2  ;;  %v2088_v49 = vrot.slane %v2080_v26, %v6425_v60  ;;  %v2097_v46 = vcombine.low %v1661_v18, %v1663_v22 }
 0x1fa   : > { %v1581_v25 = vcombine.high %v1277_v1, %v1277_v1  ;;  %v1588_v13 = vrot.slane %v1277_v1, %v6425_v60  ;;  %v1224_v17 = vsel %vm1202_vm9, %v1195_v33, %v842_v15 }
 0x1fb   : > { %v2096_v0 = vcombine.low %v2088_v49, %v2095_v39  ;;  %v2105_v10 = vrot.slane %v2097_v46, %v6425_v60 }
 0x1fc   : > { %v1595_v6 = vrot.slane %v1581_v25, %v6425_v60  ;;  %v1596_v32 = vcombine.high %v1588_v13, %v1588_v13  ;;  %v661_v38 = vpop.permute.xlu1 %660 }
 0x1fd   : > { %v929_v8 = vpop.permute.xlu0 %928  ;;  %5167 = vmatmul.mubr.msk.f32.vlgmr.msra.gmra.mrb[0].mxu1 %vm2207_vm12, %v2096_v0  ;;  %v1162_v47 = vsel %vm1144_vm7, %v6276_v27, %v661_v38 }
 0x1fe   : > { %v1597_v4 = vcombine.high %v1595_v6, %v1595_v6  ;;  %v2029_v57 = vcombine.low %v1588_v13, %v1596_v32  ;;  %v1253_v12 = vsel %vm1231_vm10, %v1224_v17, %v929_v8  ;;  %5169 = vmatprep.mubr.msk.f32.mxu1 %vm5405_vm3, %v8741_v2 }
 0x200   : > { %v2030_v48 = vcombine.low %v1595_v6, %v1597_v4  ;;  %v1016_v19 = vpop.permute.xlu1 %1015  ;;  %v2037_v63 = vrot.slane %v2029_v57, %v6425_v60 }
 0x201   : > { %v1282_v56 = vsel %vm1260_vm11, %v1253_v12, %v1016_v19  ;;  %v671_v9 = vpop.permute.xlu0 %670 }
 0x202   : > { %v2044_v42 = vrot.slane %v2030_v48, %v6425_v60  ;;  %v1671_v36 = vrot.slane %v1282_v56, %v6425_v60  ;;  %v1167_v41 = vsel %vm1144_vm7, %v6339_v7, %v671_v9  ;;  %v1664_v24 = vcombine.high %v1282_v56, %v1282_v56 }
 0x204   : > { %v1679_v54 = vcombine.high %v1671_v36, %v1671_v36  ;;  %v758_v29 = vpop.permute.xlu1 %757  ;;  %v2045_v5 = vcombine.low %v2037_v63, %v2044_v42  ;;  %v1678_v26 = vrot.slane %v1664_v24, %v6425_v60 }
 0x205   : > { %v748_v3 = vpop.permute.xlu0 %747  ;;  %v1196_v28 = vsel %vm1173_vm8, %v1167_v41, %v758_v29  ;;  %v6913_v41 = vld [vmem:[%s8477_s2] ss:$0 sm:$0xff] }
 0x206   : > { %v2098_v61 = vcombine.low %v1671_v36, %v1679_v54  ;;  %5158 = vmatmul.mubr.msk.f32.gmra.mrb[28].mxu0 %vm2207_vm12, %v2045_v5  ;;  %v1191_v52 = vsel %vm1173_vm8, %v1162_v47, %v748_v3 }
 0x207   : > { %5160 = vmatprep.mubr.msk.f32.mxu0 %vm5405_vm3, %v8741_v2 }
 0x208   : > { %v2112_v31 = vrot.slane %v2098_v61, %v6425_v60  ;;  %v834_v30 = vpop.permute.xlu1 %833 }
 0x209   : > { %v663_v55 = vpop.permute.xlu0 %662  ;;  %v1220_v7 = vsel %vm1202_vm9, %v1191_v52, %v834_v30 }
 0x20a   : > { %v2113_v45 = vcombine.low %v2105_v10, %v2112_v31  ;;  %v1163_v57 = vsel %vm1144_vm7, %v6299_v11, %v663_v55 }
 0x20c   : > { %v750_v53 = vpop.permute.xlu1 %749  ;;  %5170 = vmatmul.mubr.msk.f32.gmra.mrb[2].mxu1 %vm2207_vm12, %v2113_v45 }
 0x20d   : > { %v844_v34 = vpop.permute.xlu0 %843  ;;  %5172 = vmatprep.mubr.msk.f32.mxu1 %vm5405_vm3, %v8741_v2  ;;  %v1192_v22 = vsel %vm1173_vm8, %v1163_v57, %v750_v53 }
 0x20e   : > { %v1225_v62 = vsel %vm1202_vm9, %v1196_v28, %v844_v34 }
 0x210   : > { %v931_v21 = vpop.permute.xlu1 %930 }
 0x211   : > { %v921_v37 = vpop.permute.xlu0 %920  ;;  %v1254_v23 = vsel %vm1231_vm10, %v1225_v62, %v931_v21 }
 0x212   : > { %v1249_v25 = vsel %vm1231_vm10, %v1220_v7, %v921_v37 }
 0x214   : > { %v836_v44 = vpop.permute.xlu1 %835 }
 0x215   : > { %v673_v20 = vpop.permute.xlu0 %672  ;;  %v1221_v19 = vsel %vm1202_vm9, %v1192_v22, %v836_v44 }
 0x216   : > { %v1168_v31 = vsel %vm1144_vm7, %v6336_v35, %v673_v20 }
 0x218   : > { %v1018_v40 = vpop.permute.xlu1 %1017 }
 0x219   : > { %v1283_v16 = vsel %vm1260_vm11, %v1254_v23, %v1018_v40  ;;  %v1008_v39 = vpop.permute.xlu0 %1007 }
 0x21a   : > { %v1680_v1 = vcombine.high %v1283_v16, %v1283_v16  ;;  %v1687_v15 = vrot.slane %v1283_v16, %v6425_v60  ;;  %v1278_v18 = vsel %vm1260_vm11, %v1249_v25, %v1008_v39 }
 0x21b   : > { %v1605_v50 = vrot.slane %v1278_v18, %v6425_v60  ;;  %v1598_v48 = vcombine.high %v1278_v18, %v1278_v18 }
 0x21c   : > { %v6883_v13 = vrot.slane %v1680_v1, %v6425_v60  ;;  %v1695_v27 = vcombine.high %v1687_v15, %v1687_v15  ;;  %v2114_v49 = vcombine.low %v1678_v26, %v1687_v15  ;;  %v923_v6 = vpop.permute.xlu1 %922 }
 0x21d   : > { %v760_v32 = vpop.permute.xlu0 %759  ;;  %v1613_v12 = vcombine.high %v1605_v50, %v1605_v50  ;;  %v1250_v9 = vsel %vm1231_vm10, %v1221_v19, %v923_v6  ;;  %v1612_v11 = vrot.slane %v1598_v48, %v6425_v60 }
 0x21e   : > { %v2115_v38 = vcombine.low %v1695_v27, %v6883_v13  ;;  %v2122_v0 = vrot.slane %v2114_v49, %v6425_v60  ;;  %v1197_v55 = vsel %vm1173_vm8, %v1168_v31, %v760_v32 }
 0x21f   : > { %v2046_v36 = vcombine.low %v1605_v50, %v1613_v12 }
 0x220   : > { %v2129_v8 = vrot.slane %v2115_v38, %v6425_v60  ;;  %v846_v33 = vpop.permute.xlu1 %845 }
 0x221   : > { %v675_v4 = vpop.permute.xlu0 %674  ;;  %v2054_v30 = vrot.slane %v2046_v36, %v6425_v60  ;;  %v1226_v34 = vsel %vm1202_vm9, %v1197_v55, %v846_v33 }
 0x222   : > { %v2130_v17 = vcombine.low %v2122_v0, %v2129_v8  ;;  %v1169_v21 = vsel %vm1144_vm7, %v6359_v51, %v675_v4  ;;  %v1696_v51 = vcombine.high %v6883_v13, %v6883_v13 }
 0x224   : > { %v762_v56 = vpop.permute.xlu1 %761  ;;  %5173 = vmatmul.mubr.msk.f32.gmra.mrb[4].mxu1 %vm2207_vm12, %v2130_v17 }
 0x225   : > { %v1010_v63 = vpop.permute.xlu0 %1009  ;;  %5175 = vmatprep.mubr.msk.f32.mxu1 %vm5405_vm3, %v8741_v2  ;;  %v1198_v35 = vsel %vm1173_vm8, %v1169_v21, %v762_v56 }
 0x226   : > { %v1279_v42 = vsel %vm1260_vm11, %v1250_v9, %v1010_v63 }
 0x227   : > { %v1614_v46 = vcombine.high %v1279_v42, %v1279_v42  ;;  %v1621_v54 = vrot.slane %v1279_v42, %v6425_v60 }
 0x228   : > { %v848_v29 = vpop.permute.xlu1 %847 }
 0x229   : > { %v1628_v5 = vrot.slane %v1614_v46, %v6425_v60  ;;  %v1629_v3 = vcombine.high %v1621_v54, %v1621_v54  ;;  %v2047_v61 = vcombine.low %v1612_v11, %v1621_v54  ;;  %v933_v10 = vpop.permute.xlu0 %932  ;;  %v1227_v47 = vsel %vm1202_vm9, %v1198_v35, %v848_v29 }
 0x22a   : > { %v1255_v24 = vsel %vm1231_vm10, %v1226_v34, %v933_v10 }
 0x22b   : > { %v1630_v45 = vcombine.high %v1628_v5, %v1628_v5  ;;  %v2061_v53 = vrot.slane %v2047_v61, %v6425_v60  ;;  %v2063_v37 = vcombine.low %v1629_v3, %v1628_v5 }
 0x22c   : > { %v935_v44 = vpop.permute.xlu1 %934 }
 0x22d   : > { %v2064_v20 = vcombine.low %v1630_v45, %v6832_v14  ;;  %v1020_v28 = vpop.permute.xlu0 %1019  ;;  %v2062_v62 = vcombine.low %v2054_v30, %v2061_v53  ;;  %v2071_v7 = vrot.slane %v2063_v37, %v6425_v60  ;;  %v1256_v1 = vsel %vm1231_vm10, %v1227_v47, %v935_v44 }
 0x22e   : > { %v1284_v23 = vsel %vm1260_vm11, %v1255_v24, %v1020_v28  ;;  %v2328_v40 = vpop.f32.mrb[0].mxu0 }
 0x22f   : > { %v1697_v52 = vcombine.high %v1284_v23, %v1284_v23  ;;  %v1704_v16 = vrot.slane %v1284_v23, %v6425_v60  ;;  %v2329_v39 = vadd.f32 %v6913_v41, %v2328_v40  ;;  %v5117_v26 = vpop.f32.mrb[1].mxu0  ;;  %5161 = vmatmul.mubr.msk.f32.gmra.mrb[30].mxu0 %vm2207_vm12, %v2062_v62  ;;  %v2078_v14 = vrot.slane %v2064_v20, %v6425_v60 }
 0x230   : > { %v677_v15 = vpop.permute.xlu1 %676  ;;  %5163 = vmatprep.mubr.msk.f32.mxu0 %vm5405_vm3, %v8741_v2 }
 0x231   : > { %v1711_v25 = vrot.slane %v1697_v52, %v6425_v60  ;;  %v1712_v13 = vcombine.high %v1704_v16, %v1704_v16  ;;  %v2131_v27 = vcombine.low %v1696_v51, %v1704_v16  ;;  %v2452_v49 = vmax.f32 %v2329_v39, 0.0  ;;  %v1022_v18 = vpop.permute.xlu0 %1021 }
 0x232   : > { %v1285_v6 = vsel %vm1260_vm11, %v1256_v1, %v1022_v18  ;;  %v2079_v32 = vcombine.low %v2071_v7, %v2078_v14  ;;  %v1170_v21 = vsel %vm1144_vm7, %v6356_v58, %v677_v15 }
 0x233   : > { %v2132_v38 = vcombine.low %v1712_v13, %v1711_v25  ;;  %v2502_v50 = vcombine.high %v2452_v49, %v2452_v49  ;;  %v2509_v0 = vrot.slane %v2452_v49, %v6425_v60  ;;  %v1713_v8 = vcombine.high %v1285_v6, %v1285_v6 }
 0x234   : > { %v1720_v33 = vrot.slane %v1285_v6, %v6425_v60  ;;  %5164 = vmatmul.mubr.msk.f32.gmra.mrb[32].mxu0 %vm2207_vm12, %v2079_v32  ;;  %v679_v4 = vpop.permute.xlu1 %678  ;;  %v2139_v57 = vrot.slane %v2131_v27, %v6425_v60 }
 0x235   : > { %v2146_v17 = vrot.slane %v2132_v38, %v6425_v60  ;;  %v2516_v22 = vrot.slane %v2502_v50, %v6425_v60  ;;  %v2517_v48 = vcombine.high %v2509_v0, %v2509_v0  ;;  %v764_v12 = vpop.permute.xlu0 %763  ;;  %v1727_v19 = vrot.slane %v1713_v8, %v6425_v60 }
 0x236   : > { %v1728_v56 = vcombine.high %v1720_v33, %v1720_v33  ;;  %v1199_v44 = vsel %vm1173_vm8, %v1170_v21, %v764_v12  ;;  %v1171_v28 = vsel %vm1144_vm7, %v6379_v43, %v679_v4 }
 0x237   : > { %v3446_v9 = vcombine.low %v2517_v48, %v2516_v22  ;;  %v2147_v63 = vcombine.low %v2139_v57, %v2146_v17  ;;  %v2518_v42 = vcombine.high %v2516_v22, %v2516_v22  ;;  %v1729_v11 = vcombine.high %v1727_v19, %v1727_v19 }
 0x238   : > { %v2148_v36 = vcombine.low %v1720_v33, %v1728_v56  ;;  %v766_v46 = vpop.permute.xlu1 %765  ;;  %v2918_v34 = vcombine.low %v2509_v0, %v2517_v48 }
 0x239   : > { %5176 = vmatmul.mubr.msk.f32.gmra.mrb[6].mxu1 %vm2207_vm12, %v2147_v63  ;;  %v850_v54 = vpop.permute.xlu0 %849  ;;  %v2149_v29 = vcombine.low %v1727_v19, %v1729_v11  ;;  %v2919_v10 = vcombine.low %v2516_v22, %v2518_v42  ;;  %v6964_v43 = vrot.slane %v3446_v9, %v6425_v60  ;;  %v1200_v39 = vsel %vm1173_vm8, %v1171_v28, %v766_v46 }
 0x23a   : > { %v2333_v5 = vpop.f32.mrb[2].mxu0  ;;  %5178 = vmatprep.mubr.msk.f32.mxu1 %vm5405_vm3, %v8741_v2  ;;  %v2156_v31 = vrot.slane %v2148_v36, %v6425_v60  ;;  %v1228_v62 = vsel %vm1202_vm9, %v1199_v44, %v850_v54  ;;  %v2926_v16 = vrot.slane %v2918_v34, %v6425_v60 }
 0x23b   : > { %v2334_v3 = vadd.f32 %v6913_v41, %v2333_v5  ;;  %v5120_v61 = vpop.f32.mrb[3].mxu0  ;;  %v2163_v30 = vrot.slane %v2149_v29, %v6425_v60  ;;  %v2933_v24 = vrot.slane %v2919_v10, %v6425_v60 }
 0x23c   : > { %v852_v55 = vpop.permute.xlu1 %851 }
 0x23d   : > { %v2453_v45 = vmax.f32 %v2334_v3, 0.0  ;;  %v937_v53 = vpop.permute.xlu0 %936  ;;  %v2164_v37 = vcombine.low %v2156_v31, %v2163_v30  ;;  %v1229_v7 = vsel %vm1202_vm9, %v1200_v39, %v852_v55  ;;  %v6971_v25 = vcombine.low %v2926_v16, %v2933_v24 }
 0x23e   : > { %v1257_v40 = vsel %vm1231_vm10, %v1228_v62, %v937_v53 }
 0x23f   : > { %v2519_v35 = vcombine.high %v2453_v45, %v2453_v45  ;;  %v2526_v20 = vrot.slane %v2453_v45, %v6425_v60  ;;  %5179 = vmatmul.mubr.msk.f32.gmra.mrb[8].mxu1 %vm2207_vm12, %v2164_v37  ;;  %8775 = vst [vmem:[#allocation8_spill] sm:$0xff] %v6971_v25  ;;  %v3338_v46 = vrot.slane %v6971_v25, 1 }
 0x240   : > { %v939_v47 = vpop.permute.xlu1 %938  ;;  %5181 = vmatprep.mubr.msk.f32.mxu1 %vm5405_vm3, %v8741_v2 }
 0x241   : > { %v6955_v51 = vrot.slane %v2519_v35, %v6425_v60  ;;  %v6957_v58 = vcombine.high %v2526_v20, %v2526_v20  ;;  %v3447_v23 = vcombine.low %v2518_v42, %v2526_v20  ;;  %v1024_v52 = vpop.permute.xlu0 %1023  ;;  %v1258_v13 = vsel %vm1231_vm10, %v1229_v7, %v939_v47 }
 0x242   : > { %v1286_v26 = vsel %vm1260_vm11, %v1257_v40, %v1024_v52 }
 0x243   : > { %v2935_v14 = vcombine.low %v2526_v20, %v6957_v58  ;;  %v1730_v1 = vcombine.high %v1286_v26, %v1286_v26  ;;  %v1737_v15 = vrot.slane %v1286_v26, %v6425_v60  ;;  %v6977_v18 = vrot.slane %v3447_v23, %v6425_v60 }
 0x244   : > { %v1026_v27 = vpop.permute.xlu1 %1025  ;;  %v3248_v32 = vrot.slane %v6955_v51, %v6425_v60  ;;  %v2535_v42 = vcombine.high %v6955_v51, %v6955_v51 }
 0x245   : > { %v6980_v6 = vrot.slane %v2935_v14, %v6425_v60  ;;  %v1745_v38 = vcombine.high %v1737_v15, %v1737_v15  ;;  %v1287_v50 = vsel %vm1260_vm11, %v1258_v13, %v1026_v27  ;;  %v681_v0 = vpop.permute.xlu0 %680  ;;  %v2338_v8 = vpop.f32.mrb[4].mxu0  ;;  %v1744_v33 = vrot.slane %v1730_v1, %v6425_v60 }
 0x246   : > { %v1753_v4 = vrot.slane %v1287_v50, %v6425_v60  ;;  %v2339_v57 = vadd.f32 %v6913_v41, %v2338_v8  ;;  %v5123_v17 = vpop.f32.mrb[5].mxu0  ;;  %v1746_v63 = vcombine.high %v1287_v50, %v1287_v50  ;;  %v1172_v29 = vsel %vm1144_vm7, %v6376_v59, %v681_v0 }
 0x247   : > { %8776 = vst [vmem:[#allocation16_spill] sm:$0xff] %v6980_v6  ;;  %v2165_v22 = vcombine.low %v1737_v15, %v1745_v38  ;;  %v3249_v48 = vcombine.low %v6980_v6, %v3248_v32 }
 0x248   : > { %v2166_v19 = vcombine.low %v1744_v33, %v1753_v4  ;;  %v2454_v56 = vmax.f32 %v2339_v57, 0.0  ;;  %v854_v9 = vpop.permute.xlu1 %853  ;;  %v1760_v59 = vrot.slane %v1746_v63, %v6425_v60  ;;  %v1761_v21 = vcombine.high %v1753_v4, %v1753_v4 }
 0x249   : > { %v768_v11 = vpop.permute.xlu0 %767  ;;  %v3339_v36 = vrot.slane %v3249_v48, 1  ;;  %v2173_v61 = vrot.slane %v2165_v22, %v6425_v60 }
 0x24a   : > { %v2180_v54 = vrot.slane %v2166_v19, %v6425_v60  ;;  %v2536_v5 = vcombine.high %v2454_v56, %v2454_v56  ;;  %v2543_v3 = vrot.slane %v2454_v56, %v6425_v60  ;;  %v1201_v10 = vsel %vm1173_vm8, %v1172_v29, %v768_v11 }
 0x24b   : > { %3376 = vrot.lane.b32.xlu1 %v3339_v36, %s5397_s11  ;;  %v2343_v31 = vpop.f32.mrb[6].mxu0  ;;  %v3340_v30 = vsel %vm283_vm0, %v3338_v46, %v3339_v36  ;;  %v1230_v47 = vsel %vm1202_vm9, %v1201_v10, %v854_v9  ;;  %v2182_v13 = vcombine.low %v1761_v21, %v1760_v59  ;;  %v1762_v32 = vcombine.high %v1760_v59, %v1760_v59 }
 0x24c   : > { %v2550_v55 = vrot.slane %v2536_v5, %v6425_v60  ;;  %v2551_v45 = vcombine.high %v2543_v3, %v2543_v3  ;;  %v2943_v53 = vcombine.low %v2535_v42, %v2543_v3  ;;  %3374 = vrot.lane.b32.xlu0 %v3340_v30, %s5397_s11  ;;  %v5126_v34 = vpop.f32.mrb[7].mxu0  ;;  %v2344_v37 = vadd.f32 %v6913_v41, %v2343_v31  ;;  %v1028_v35 = vpop.permute.xlu1 %1027 }
 0x24d   : > { %v941_v44 = vpop.permute.xlu0 %940  ;;  %v2181_v20 = vcombine.low %v2173_v61, %v2180_v54  ;;  %v2190_v11 = vrot.slane %v2182_v13, %v6425_v60 }
 0x24e   : > { %v2552_v24 = vcombine.high %v2550_v55, %v2550_v55  ;;  %v2944_v28 = vcombine.low %v2551_v45, %v2550_v55  ;;  %v3471_v62 = vcombine.low %v2543_v3, %v2551_v45  ;;  %v2455_v23 = vmax.f32 %v2344_v37, 0.0 }
 0x24f   : > { %v1259_v40 = vsel %vm1231_vm10, %v1230_v47, %v941_v44  ;;  %5182 = vmatmul.mubr.msk.f32.gmra.mrb[10].mxu1 %vm2207_vm12, %v2181_v20  ;;  %v2951_v52 = vrot.slane %v2943_v53, %v6425_v60 }
 0x250   : > { %v2958_v16 = vrot.slane %v2944_v28, %v6425_v60  ;;  %v3472_v39 = vcombine.low %v2550_v55, %v2552_v24  ;;  %v1288_v26 = vsel %vm1260_vm11, %v1259_v40, %v1028_v35  ;;  %5184 = vmatprep.mubr.msk.f32.mxu1 %vm5405_vm3, %v8741_v2  ;;  %v2553_v14 = vcombine.high %v2455_v23, %v2455_v23 }
 0x251   : > { %v7015_v7 = vrot.slane %v2455_v23, %v6425_v60  ;;  %v1763_v1 = vcombine.high %v1288_v26, %v1288_v26  ;;  %v1770_v15 = vrot.slane %v1288_v26, %v6425_v60  ;;  %v3479_v19 = vrot.slane %v3471_v62, %v6425_v60 }
 0x252   : > { %v7018_v27 = vcombine.low %v2951_v52, %v2958_v16  ;;  %v3486_v38 = vrot.slane %v3472_v39, %v6425_v60  ;;  %v2567_v50 = vrot.slane %v2553_v14, %v6425_v60 }
 0x253   : > { %v7024_v0 = vcombine.high %v7015_v7, %v7015_v7  ;;  %v2960_v8 = vcombine.low %v2552_v24, %v7015_v7  ;;  %v1777_v33 = vrot.slane %v1763_v1, %v6425_v60  ;;  %v2348_v4 = vpop.f32.mrb[8].mxu0  ;;  %v1778_v57 = vcombine.high %v1770_v15, %v1770_v15 }
 0x254   : > { %v2183_v17 = vcombine.low %v1762_v32, %v1770_v15  ;;  %v2349_v22 = vadd.f32 %v6913_v41, %v2348_v4  ;;  %v5129_v48 = vpop.f32.mrb[9].mxu0  ;;  %v2569_v56 = vcombine.high %v2567_v50, %v2567_v50  ;;  %v7039_v54 = vcombine.low %v3479_v19, %v3486_v38 }
 0x255   : > { %v7031_v9 = vrot.slane %v2960_v8, %v6425_v60  ;;  %v3256_v63 = vrot.slane %v7024_v0, %v6425_v60  ;;  %v2199_v29 = vcombine.low %v1778_v57, %v1777_v33  ;;  %v3341_v55 = vrot.slane %v7018_v27, 1 }
 0x256   : > { %v2197_v36 = vrot.slane %v2183_v17, %v6425_v60  ;;  %v2456_v46 = vmax.f32 %v2349_v22, 0.0  ;;  %v2968_v31 = vcombine.low %v2567_v50, %v2569_v56 }
 0x257   : > { %v3257_v5 = vcombine.low %v7031_v9, %v3256_v63  ;;  %v2206_v37 = vrot.slane %v2199_v29, %v6425_v60 }
 0x258   : > { %v2570_v3 = vcombine.high %v2456_v46, %v2456_v46  ;;  %v2577_v61 = vrot.slane %v2456_v46, %v6425_v60  ;;  %v2198_v10 = vcombine.low %v2190_v11, %v2197_v36  ;;  %v2976_v62 = vrot.slane %v2968_v31, %v6425_v60 }
 0x259   : > { %v7043_v30 = vrot.slane %v3257_v5, 1 }
 0x25a   : > { %v2584_v45 = vrot.slane %v2570_v3, %v6425_v60  ;;  %v2585_v53 = vcombine.high %v2577_v61, %v2577_v61  ;;  %v3496_v34 = vcombine.low %v2569_v56, %v2577_v61  ;;  %5185 = vmatmul.mubr.msk.f32.gmra.mrb[12].mxu1 %vm2207_vm12, %v2198_v10 }
 0x25b   : > { %3380 = vrot.lane.b32.xlu1 %v7043_v30, %s5397_s11  ;;  %5187 = vmatprep.mubr.msk.f32.mxu1 %vm5405_vm3, %v8741_v2  ;;  %v2353_v59 = vpop.f32.mrb[10].mxu0  ;;  %v7054_v21 = vsel %vm283_vm0, %v3341_v55, %v7043_v30 }
 0x25c   : > { %v7057_v44 = vcombine.high %v2584_v45, %v2584_v45  ;;  %v2969_v35 = vcombine.low %v2577_v61, %v2585_v53  ;;  %v3497_v20 = vcombine.low %v2585_v53, %v2584_v45  ;;  %v2354_v24 = vadd.f32 %v6913_v41, %v2353_v59  ;;  %3378 = vrot.lane.b32.xlu0 %v7054_v21, %s5397_s11  ;;  %v5132_v28 = vpop.f32.mrb[11].mxu0 }
 0x25d   : > { %v3504_v52 = vrot.slane %v3496_v34, %v6425_v60 }
 0x25e   : > { %v2983_v2 = vrot.slane %v2969_v35, %v6425_v60  ;;  %v2985_v47 = vcombine.low %v2584_v45, %v7057_v44  ;;  %v2457_v23 = vmax.f32 %v2354_v24, 0.0  ;;  %5188 = vmatmul.mubr.msk.f32.gmra.mrb[14].mxu1 %vm2207_vm12, %v2206_v37  ;;  %v3511_v40 = vrot.slane %v3497_v20, %v6425_v60 }
 0x260   : > { %v7068_v16 = vcombine.low %v2976_v62, %v2983_v2  ;;  %v2587_v39 = vcombine.high %v2457_v23, %v2457_v23  ;;  %v7071_v26 = vrot.slane %v2457_v23, %v6425_v60  ;;  %v7073_v14 = vcombine.low %v3504_v52, %v3511_v40 }
 0x261   : > { %v7076_v1 = vrot.slane %v2985_v47, %v6425_v60 }
 0x262   : > { %v2601_v15 = vrot.slane %v2587_v39, %v6425_v60  ;;  %v3264_v13 = vrot.slane %v7071_v26, %v6425_v60  ;;  %v3344_v4 = vrot.slane %v7068_v16, 1  ;;  %v2602_v17 = vcombine.high %v7071_v26, %v7071_v26 }
 0x264   : > { %v2603_v38 = vcombine.high %v2601_v15, %v2601_v15  ;;  %v3265_v50 = vcombine.low %v7076_v1, %v3264_v13  ;;  %v2993_v63 = vcombine.low %v2602_v17, %v2601_v15 }
 0x266   : > { %v3521_v8 = vcombine.low %v2601_v15, %v2603_v38  ;;  %v7084_v33 = vrot.slane %v3265_v50, 1  ;;  %v3001_v31 = vrot.slane %v2993_v63, %v6425_v60 }
 0x268   : > { %3384 = vrot.lane.b32.xlu1 %v7084_v33, %s5397_s11  ;;  %v7091_v57 = vsel %vm283_vm0, %v3344_v4, %v7084_v33  ;;  %v3529_v2 = vrot.slane %v3521_v8, %v6425_v60 }
 0x269   : > { %3382 = vrot.lane.b32.xlu0 %v7091_v57, %s5397_s11 }
 0x26b   : > { %v2358_v22 = vpop.f32.mrb[12].mxu0 }
 0x26c   : > { %v2359_v48 = vadd.f32 %v6913_v41, %v2358_v22  ;;  %v5135_v19 = vpop.f32.mrb[13].mxu0 }
 0x26e   : > { %v2458_v56 = vmax.f32 %v2359_v48, 0.0 }
 0x270   : > { %v2604_v11 = vcombine.high %v2458_v56, %v2458_v56  ;;  %v2611_v36 = vrot.slane %v2458_v56, %v6425_v60 }
 0x271   : > { %v2363_v46 = vpop.f32.mrb[14].mxu0 }
 0x272   : > { %v7100_v29 = vrot.slane %v2604_v11, %v6425_v60  ;;  %v2619_v5 = vcombine.high %v2611_v36, %v2611_v36  ;;  %v2994_v3 = vcombine.low %v2603_v38, %v2611_v36  ;;  %v2364_v61 = vadd.f32 %v6913_v41, %v2363_v46  ;;  %v5138_v10 = vpop.f32.mrb[15].mxu0 }
 0x274   : > { %v7106_v55 = vcombine.high %v7100_v29, %v7100_v29  ;;  %v3008_v45 = vrot.slane %v2994_v3, %v6425_v60  ;;  %v3010_v53 = vcombine.low %v2619_v5, %v7100_v29  ;;  %v3522_v34 = vcombine.low %v2611_v36, %v2619_v5 }
 0x275   : > { %v2459_v59 = vmax.f32 %v2364_v61, 0.0 }
 0x276   : > { %v7110_v37 = vcombine.low %v3001_v31, %v3008_v45  ;;  %v7113_v35 = vrot.slane %v3010_v53, %v6425_v60  ;;  %v3272_v20 = vrot.slane %v7106_v55, %v6425_v60  ;;  %v3536_v47 = vrot.slane %v3522_v34, %v6425_v60 }
 0x277   : > { %v2621_v28 = vcombine.high %v2459_v59, %v2459_v59  ;;  %v2628_v62 = vrot.slane %v2459_v59, %v6425_v60 }
 0x278   : > { %8777 = vst [vmem:[#allocation17_spill] sm:$0xff] %v7113_v35  ;;  %v3273_v23 = vcombine.low %v7113_v35, %v3272_v20  ;;  %v7124_v39 = vcombine.low %v3529_v2, %v3536_v47  ;;  %v3347_v13 = vrot.slane %v7110_v37, 1 }
 0x279   : > { %v2635_v40 = vrot.slane %v2621_v28, %v6425_v60  ;;  %v2636_v52 = vcombine.high %v2628_v62, %v2628_v62 }
 0x27a   : > { %v7126_v15 = vrot.slane %v3273_v23, 1 }
 0x27b   : > { %v3546_v38 = vcombine.low %v2636_v52, %v2635_v40  ;;  %v2637_v8 = vcombine.high %v2635_v40, %v2635_v40  ;;  %v3018_v56 = vcombine.low %v2628_v62, %v2636_v52 }
 0x27c   : > { %8778 = vst [vmem:[#allocation10_spill] sm:$0xff] %v7126_v15  ;;  %3388 = vrot.lane.b32.xlu1 %v7126_v15, %s5397_s11  ;;  %v7133_v50 = vsel %vm283_vm0, %v3347_v13, %v7126_v15 }
 0x27d   : > { %3386 = vrot.lane.b32.xlu0 %v7133_v50, %s5397_s11  ;;  %v3019_v48 = vcombine.low %v2635_v40, %v2637_v8  ;;  %v3026_v61 = vrot.slane %v3018_v56, %v6425_v60  ;;  %v3554_v45 = vrot.slane %v3546_v38, %v6425_v60 }
 0x27f   : > { %v3033_v36 = vrot.slane %v3019_v48, %v6425_v60 }
 0x281   : > { %v2368_v4 = vpop.f32.mrb[16].mxu0  ;;  %v7151_v34 = vcombine.low %v3026_v61, %v3033_v36 }
 0x282   : > { %v2369_v17 = vadd.f32 %v6913_v41, %v2368_v4  ;;  %v5141_v22 = vpop.f32.mrb[17].mxu0 }
 0x283   : > { %8779 = vst [vmem:[#allocation29_spill] sm:$0xff] %v7151_v34  ;;  %v3350_v47 = vrot.slane %v7151_v34, 1 }
 0x284   : > { %v2460_v19 = vmax.f32 %v2369_v17, 0.0 }
 0x286   : > { %v2638_v63 = vcombine.high %v2460_v19, %v2460_v19  ;;  %v2645_v11 = vrot.slane %v2460_v19, %v6425_v60 }
 0x288   : > { %v7141_v46 = vrot.slane %v2638_v63, %v6425_v60  ;;  %v7143_v5 = vcombine.high %v2645_v11, %v2645_v11  ;;  %v3547_v3 = vcombine.low %v2637_v8, %v2645_v11 }
 0x28a   : > { %v3035_v10 = vcombine.low %v2645_v11, %v7143_v5  ;;  %v3561_v53 = vrot.slane %v3547_v3, %v6425_v60  ;;  %v3280_v20 = vrot.slane %v7141_v46, %v6425_v60  ;;  %v2654_v8 = vcombine.high %v7141_v46, %v7141_v46 }
 0x28c   : > { %v7154_v59 = vrot.slane %v3035_v10, %v6425_v60  ;;  %v7158_v28 = vcombine.low %v3554_v45, %v3561_v53 }
 0x28e   : > { %8780 = vst [vmem:[#allocation20_spill] sm:$0xff] %v7154_v59  ;;  %v3281_v62 = vcombine.low %v7154_v59, %v3280_v20 }
 0x290   : > { %v7161_v2 = vrot.slane %v3281_v62, 1 }
 0x291   : > { %v2373_v23 = vpop.f32.mrb[18].mxu0 }
 0x292   : > { %8781 = vst [vmem:[#allocation21_spill] sm:$0xff] %v7161_v2  ;;  %v2374_v40 = vadd.f32 %v6913_v41, %v2373_v23  ;;  %3392 = vrot.lane.b32.xlu1 %v7161_v2, %s5397_s11  ;;  %v5144_v52 = vpop.f32.mrb[19].mxu0  ;;  %v7169_v13 = vsel %vm283_vm0, %v3350_v47, %v7161_v2 }
 0x293   : > { %8782 = vst [vmem:[#allocation31_spill] sm:$0xff] %v7169_v13  ;;  %3390 = vrot.lane.b32.xlu0 %v7169_v13, %s5397_s11 }
 0x294   : > { %v2461_v38 = vmax.f32 %v2374_v40, 0.0 }
 0x296   : > { %v2655_v4 = vcombine.high %v2461_v38, %v2461_v38  ;;  %v2662_v17 = vrot.slane %v2461_v38, %v6425_v60 }
 0x297   : > { %v2378_v22 = vpop.f32.mrb[20].mxu0 }
 0x298   : > { %v2669_v48 = vrot.slane %v2655_v4, %v6425_v60  ;;  %v2670_v19 = vcombine.high %v2662_v17, %v2662_v17  ;;  %v3043_v56 = vcombine.low %v2654_v8, %v2662_v17  ;;  %v2379_v63 = vadd.f32 %v6913_v41, %v2378_v22  ;;  %v5147_v11 = vpop.f32.mrb[21].mxu0 }
 0x29a   : > { %v2671_v36 = vcombine.high %v2669_v48, %v2669_v48  ;;  %v3044_v3 = vcombine.low %v2670_v19, %v2669_v48  ;;  %v3571_v61 = vcombine.low %v2662_v17, %v2670_v19  ;;  %v2462_v10 = vmax.f32 %v2379_v63, 0.0 }
 0x29b   : > { %v3051_v45 = vrot.slane %v3043_v56, %v6425_v60 }
 0x29c   : > { %v3058_v53 = vrot.slane %v3044_v3, %v6425_v60  ;;  %v3572_v20 = vcombine.low %v2669_v48, %v2671_v36  ;;  %v2672_v62 = vcombine.high %v2462_v10, %v2462_v10  ;;  %v7181_v47 = vrot.slane %v2462_v10, %v6425_v60 }
 0x29d   : > { %v3579_v40 = vrot.slane %v3571_v61, %v6425_v60 }
 0x29e   : > { %v7183_v23 = vcombine.low %v3051_v45, %v3058_v53  ;;  %v3586_v52 = vrot.slane %v3572_v20, %v6425_v60  ;;  %v7189_v38 = vcombine.high %v7181_v47, %v7181_v47  ;;  %v3060_v8 = vcombine.low %v2671_v36, %v7181_v47 }
 0x29f   : > { %v2686_v17 = vrot.slane %v2672_v62, %v6425_v60 }
 0x2a0   : > { %8783 = vst [vmem:[#allocation52_spill] sm:$0xff] %v7183_v23  ;;  %v7192_v4 = vcombine.low %v3579_v40, %v3586_v52  ;;  %v7196_v22 = vrot.slane %v3060_v8, %v6425_v60  ;;  %v3288_v48 = vrot.slane %v7189_v38, %v6425_v60  ;;  %v3353_v10 = vrot.slane %v7183_v23, 1 }
 0x2a1   : > { %v2688_v36 = vcombine.high %v2686_v17, %v2686_v17 }
 0x2a2   : > { %8784 = vst [vmem:[#allocation24_spill] sm:$0xff] %v7196_v22  ;;  %v3289_v63 = vcombine.low %v7196_v22, %v3288_v48 }
 0x2a3   : > { %v2383_v56 = vpop.f32.mrb[22].mxu0  ;;  %v3068_v40 = vcombine.low %v2686_v17, %v2688_v36 }
 0x2a4   : > { %v2384_v11 = vadd.f32 %v6913_v41, %v2383_v56  ;;  %v5150_v3 = vpop.f32.mrb[23].mxu0  ;;  %v7204_v61 = vrot.slane %v3289_v63, 1 }
 0x2a6   : > { %8785 = vst [vmem:[#allocation53_spill] sm:$0xff] %v7204_v61  ;;  %v2463_v45 = vmax.f32 %v2384_v11, 0.0  ;;  %3396 = vrot.lane.b32.xlu1 %v7204_v61, %s5397_s11  ;;  %v7211_v53 = vsel %vm283_vm0, %v3353_v10, %v7204_v61  ;;  %v3076_v11 = vrot.slane %v3068_v40, %v6425_v60 }
 0x2a7   : > { %8786 = vst [vmem:[#allocation25_spill] sm:$0xff] %v7211_v53  ;;  %3394 = vrot.lane.b32.xlu0 %v7211_v53, %s5397_s11 }
 0x2a8   : > { %v2689_v20 = vcombine.high %v2463_v45, %v2463_v45  ;;  %v2696_v62 = vrot.slane %v2463_v45, %v6425_v60 }
 0x2aa   : > { %v2703_v52 = vrot.slane %v2689_v20, %v6425_v60  ;;  %v2704_v8 = vcombine.high %v2696_v62, %v2696_v62  ;;  %v3596_v48 = vcombine.low %v2688_v36, %v2696_v62 }
 0x2ac   : > { %v3069_v56 = vcombine.low %v2696_v62, %v2704_v8  ;;  %v3597_v63 = vcombine.low %v2704_v8, %v2703_v52  ;;  %v7218_v3 = vcombine.high %v2703_v52, %v2703_v52  ;;  %v3604_v19 = vrot.slane %v3596_v48, %v6425_v60 }
 0x2ae   : > { %v3083_v10 = vrot.slane %v3069_v56, %v6425_v60  ;;  %v3611_v45 = vrot.slane %v3597_v63, %v6425_v60  ;;  %v3085_v36 = vcombine.low %v2703_v52, %v7218_v3 }
 0x2af   : > { %v2388_v31 = vpop.f32.mrb[24].mxu0 }
 0x2b0   : > { %v7223_v24 = vcombine.low %v3076_v11, %v3083_v10  ;;  %v2389_v17 = vadd.f32 %v6913_v41, %v2388_v31  ;;  %v5153_v20 = vpop.f32.mrb[25].mxu0  ;;  %v7226_v32 = vcombine.low %v3604_v19, %v3611_v45  ;;  %v7233_v56 = vrot.slane %v3085_v36, %v6425_v60 }
 0x2b2   : > { %8787 = vst [vmem:[#allocation62_spill] sm:$0xff] %v7223_v24  ;;  %v2464_v62 = vmax.f32 %v2389_v17, 0.0  ;;  %8788 = vst [vmem:[#allocation63_spill] sm:$0xff] %v7233_v56  ;;  %v3356_v45 = vrot.slane %v7223_v24, 1 }
 0x2b4   : > { %v2706_v40 = vcombine.high %v2464_v62, %v2464_v62  ;;  %v7230_v8 = vrot.slane %v2464_v62, %v6425_v60 }
 0x2b6   : > { %v2720_v48 = vrot.slane %v2706_v40, %v6425_v60  ;;  %v3296_v63 = vrot.slane %v7230_v8, %v6425_v60  ;;  %v2721_v20 = vcombine.high %v7230_v8, %v7230_v8 }
 0x2b8   : > { %v2722_v19 = vcombine.high %v2720_v48, %v2720_v48  ;;  %v3297_v11 = vcombine.low %v7233_v56, %v3296_v63 }
 0x2ba   : > { %v3621_v52 = vcombine.low %v2720_v48, %v2722_v19  ;;  %v7241_v10 = vrot.slane %v3297_v11, 1  ;;  %v3093_v11 = vcombine.low %v2721_v20, %v2720_v48 }
 0x2bc   : > { %8789 = vst [vmem:[#allocation9_spill] sm:$0xff] %v7241_v10  ;;  %3400 = vrot.lane.b32.xlu1 %v7241_v10, %s5397_s11  ;;  %v7248_v17 = vsel %vm283_vm0, %v3356_v45, %v7241_v10  ;;  %v3101_v56 = vrot.slane %v3093_v11, %v6425_v60 }
 0x2bd   : > { %8790 = vst [vmem:[#allocation12_spill] sm:$0xff] %v7248_v17  ;;  %3398 = vrot.lane.b32.xlu0 %v7248_v17, %s5397_s11 }
 0x2cb   : > { %v2393_v36 = vpop.f32.mrb[26].mxu0 }
 0x2cc   : > { %v2394_v62 = vadd.f32 %v6913_v41, %v2393_v36  ;;  %v5156_v40 = vpop.f32.mrb[27].mxu0 }
 0x2ce   : > { %v2465_v63 = vmax.f32 %v2394_v62, 0.0 }
 0x2d0   : > { %v2723_v31 = vcombine.high %v2465_v63, %v2465_v63  ;;  %v2730_v42 = vrot.slane %v2465_v63, %v6425_v60  ;;  %v2413_v12 = vpop.f32.mrb[0].mxu1 }
 0x2d1   : > { %v2414_v10 = vadd.f32 %v6913_v41, %v2413_v12  ;;  %v5168_v25 = vpop.f32.mrb[1].mxu1 }
 0x2d2   : > { %v7257_v49 = vrot.slane %v2723_v31, %v6425_v60  ;;  %v2738_v45 = vcombine.high %v2730_v42, %v2730_v42  ;;  %v3094_v6 = vcombine.low %v2722_v19, %v2730_v42  ;;  %v3629_v31 = vrot.slane %v3621_v52, %v6425_v60 }
 0x2d3   : > { %v2469_v40 = vmax.f32 %v2414_v10, 0.0 }
 0x2d4   : > { %8791 = vst [vmem:[#allocation30_spill] sm:$0xff] %v7257_v49  ;;  %v7263_v36 = vcombine.high %v7257_v49, %v7257_v49  ;;  %v3108_v48 = vrot.slane %v3094_v6, %v6425_v60  ;;  %v3110_v20 = vcombine.low %v2738_v45, %v7257_v49  ;;  %v3622_v62 = vcombine.low %v2730_v42, %v2738_v45 }
 0x2d5   : > { %v7277_v11 = vrot.slane %v2469_v40, %v6425_v60 }
 0x2d6   : > { %8792 = vst [vmem:[#allocation47_spill] sm:$0xff] %v7263_v36  ;;  %v7268_v63 = vcombine.low %v3101_v56, %v3108_v48  ;;  %v7271_v19 = vrot.slane %v3110_v20, %v6425_v60  ;;  %v3304_v25 = vrot.slane %v7263_v36, %v6425_v60  ;;  %v3636_v12 = vrot.slane %v3622_v62, %v6425_v60 }
 0x2d7   : > { %v7286_v56 = vcombine.high %v7277_v11, %v7277_v11  ;;  %v2791_v20 = vcombine.high %v2469_v40, %v2469_v40 }
 0x2d8   : > { %8793 = vst [vmem:[#allocation6_spill] sm:$0xff] %v7268_v63  ;;  %8794 = vst [vmem:[#allocation55_spill] sm:$0xff] %v7271_v19  ;;  %v3305_v10 = vcombine.low %v7271_v19, %v3304_v25  ;;  %v7282_v52 = vcombine.low %v3629_v31, %v3636_v12  ;;  %v3359_v17 = vrot.slane %v7268_v63, 1 }
 0x2d9   : > { %v2398_v42 = vpop.f32.mrb[28].mxu0  ;;  %8795 = vst [vmem:[#allocation33_spill] sm:$0xff] %v7286_v56  ;;  %v2805_v40 = vrot.slane %v2791_v20, %v6425_v60 }
 0x2da   : > { %v2399_v45 = vadd.f32 %v6913_v41, %v2398_v42  ;;  %v5159_v48 = vpop.f32.mrb[29].mxu0  ;;  %v7289_v62 = vrot.slane %v3305_v10, 1 }
 0x2db   : > { %v2807_v63 = vcombine.high %v2805_v40, %v2805_v40 }
 0x2dc   : > { %8796 = vst [vmem:[#allocation11_spill] sm:$0xff] %v7289_v62  ;;  %v2466_v36 = vmax.f32 %v2399_v45, 0.0  ;;  %3404 = vrot.lane.b32.xlu1 %v7289_v62, %s5397_s11  ;;  %v7298_v31 = vsel %vm283_vm0, %v3359_v17, %v7289_v62 }
 0x2dd   : > { %8797 = vst [vmem:[#allocation45_spill] sm:$0xff] %v7298_v31  ;;  %3402 = vrot.lane.b32.xlu0 %v7298_v31, %s5397_s11  ;;  %v3168_v61 = vcombine.low %v2805_v40, %v2807_v63 }
 0x2de   : > { %v2740_v25 = vcombine.high %v2466_v36, %v2466_v36  ;;  %v2747_v12 = vrot.slane %v2466_v36, %v6425_v60 }
 0x2df   : > { %v2418_v42 = vpop.f32.mrb[2].mxu1  ;;  %v3176_v53 = vrot.slane %v3168_v61, %v6425_v60 }
 0x2e0   : > { %v2754_v10 = vrot.slane %v2740_v25, %v6425_v60  ;;  %v2755_v48 = vcombine.high %v2747_v12, %v2747_v12  ;;  %v2419_v45 = vadd.f32 %v6913_v41, %v2418_v42  ;;  %v5171_v6 = vpop.f32.mrb[3].mxu1 }
 0x2e2   : > { %v3646_v49 = vcombine.low %v2755_v48, %v2754_v10  ;;  %v2470_v19 = vmax.f32 %v2419_v45, 0.0 }
 0x2e4   : > { %v2808_v17 = vcombine.high %v2470_v19, %v2470_v19  ;;  %v2815_v62 = vrot.slane %v2470_v19, %v6425_v60 }
 0x2e6   : > { %v2822_v36 = vrot.slane %v2808_v17, %v6425_v60  ;;  %v2823_v24 = vcombine.high %v2815_v62, %v2815_v62  ;;  %v3696_v31 = vcombine.low %v2807_v63, %v2815_v62 }
 0x2e8   : > { %v3169_v22 = vcombine.low %v2815_v62, %v2823_v24  ;;  %v3697_v20 = vcombine.low %v2823_v24, %v2822_v36  ;;  %v3704_v42 = vrot.slane %v3696_v31, %v6425_v60  ;;  %v7317_v63 = vcombine.high %v2822_v36, %v2822_v36 }
 0x2ea   : > { %v3183_v25 = vrot.slane %v3169_v22, %v6425_v60  ;;  %v3711_v6 = vrot.slane %v3697_v20, %v6425_v60  ;;  %8799 = vst [vmem:[#allocation32_spill] sm:$0xff] %v7317_v63  ;;  %v2756_v22 = vcombine.high %v2754_v10, %v2754_v10 }
 0x2ec   : > { %v7312_v45 = vcombine.low %v3176_v53, %v3183_v25  ;;  %v7314_v2 = vcombine.low %v3704_v42, %v3711_v6  ;;  %v3119_v20 = vcombine.low %v2754_v10, %v2756_v22 }
 0x2ee   : > { %8798 = vst [vmem:[#allocation5_spill] sm:$0xff] %v7314_v2 }
 0x2f7   : > { %v2423_v19 = vpop.f32.mrb[4].mxu1 }
 0x2f8   : > { %v2424_v17 = vadd.f32 %v6913_v41, %v2423_v19  ;;  %v5174_v40 = vpop.f32.mrb[5].mxu1  ;;  %v3118_v19 = vcombine.low %v2747_v12, %v2755_v48 }
 0x2f9   : > { %v3133_v40 = vrot.slane %v3119_v20, %v6425_v60 }
 0x2fa   : > { %v2471_v23 = vmax.f32 %v2424_v17, 0.0  ;;  %v3126_v15 = vrot.slane %v3118_v19, %v6425_v60 }
 0x2fc   : > { %v2825_v24 = vcombine.high %v2471_v23, %v2471_v23  ;;  %v7320_v61 = vrot.slane %v2471_v23, %v6425_v60  ;;  %v7346_v20 = vcombine.low %v3126_v15, %v3133_v40 }
 0x2fe   : > { %8800 = vst [vmem:[#allocation54_spill] sm:$0xff] %v7320_v61  ;;  %v7323_v62 = vrot.slane %v2825_v24, %v6425_v60  ;;  %v3185_v24 = vcombine.low %v2822_v36, %v7317_v63  ;;  %v2840_v10 = vcombine.high %v7320_v61, %v7320_v61  ;;  %8803 = vst [vmem:[#allocation7_spill] sm:$0xff] %v7346_v20 }
 0x2ff   : > { %v3654_v36 = vrot.slane %v3646_v49, %v6425_v60  ;;  %v3328_v19 = vrot.slane %v7320_v61, %v6425_v60 }
 0x300   : > { %v7329_v31 = vcombine.high %v7323_v62, %v7323_v62 }
 0x302   : > { %v2403_v42 = vpop.f32.mrb[30].mxu0 }
 0x303   : > { %v2404_v6 = vadd.f32 %v6913_v41, %v2403_v42  ;;  %v5162_v23 = vpop.f32.mrb[31].mxu0 }
 0x305   : > { %v2467_v17 = vmax.f32 %v2404_v6, 0.0  ;;  %v7350_v6 = vrot.slane %v3185_v24, %v6425_v60 }
 0x307   : > { %v2757_v2 = vcombine.high %v2467_v17, %v2467_v17  ;;  %v2764_v53 = vrot.slane %v2467_v17, %v6425_v60  ;;  %v2408_v59 = vpop.f32.mrb[32].mxu0  ;;  %8804 = vst [vmem:[#allocation14_spill] sm:$0xff] %v7350_v6 }
 0x308   : > { %v2409_v25 = vadd.f32 %v6913_v41, %v2408_v59  ;;  %v5165_v13 = vpop.f32.mrb[33].mxu0 }
 0x309   : > { %v7342_v42 = vrot.slane %v2757_v2, %v6425_v60  ;;  %v7344_v12 = vcombine.high %v2764_v53, %v2764_v53  ;;  %v3647_v48 = vcombine.low %v2756_v22, %v2764_v53  ;;  %v3193_v22 = vcombine.low %v2840_v10, %v7323_v62 }
 0x30a   : > { %v2468_v23 = vmax.f32 %v2409_v25, 0.0  ;;  %v3320_v10 = vrot.slane %v7286_v56, %v6425_v60 }
 0x30b   : > { %8801 = vst [vmem:[#allocation64_spill] sm:$0xff] %v7342_v42  ;;  %8802 = vst [vmem:[#allocation48_spill] sm:$0xff] %v7344_v12  ;;  %v3135_v59 = vcombine.low %v2764_v53, %v7344_v12  ;;  %v2773_v2 = vcombine.high %v7342_v42, %v7342_v42  ;;  %v3661_v13 = vrot.slane %v3647_v48, %v6425_v60 }
 0x30c   : > { %v2774_v15 = vcombine.high %v2468_v23, %v2468_v23  ;;  %v2781_v17 = vrot.slane %v2468_v23, %v6425_v60  ;;  %v2428_v49 = vpop.f32.mrb[6].mxu1  ;;  %v3312_v53 = vrot.slane %v7342_v42, %v6425_v60  ;;  %v3329_v12 = vcombine.low %v7350_v6, %v3328_v19 }
 0x30d   : > { %v7363_v25 = vrot.slane %v3135_v59, %v6425_v60  ;;  %v2429_v24 = vadd.f32 %v6913_v41, %v2428_v49  ;;  %v5177_v61 = vpop.f32.mrb[7].mxu1  ;;  %v7368_v63 = vcombine.low %v3654_v36, %v3661_v13  ;;  %v3362_v59 = vrot.slane %v7346_v20, 1 }
 0x30e   : > { %v2788_v48 = vrot.slane %v2774_v15, %v6425_v60  ;;  %v2789_v23 = vcombine.high %v2781_v17, %v2781_v17  ;;  %v3143_v35 = vcombine.low %v2773_v2, %v2781_v17  ;;  %v3201_v42 = vrot.slane %v3193_v22, %v6425_v60 }
 0x30f   : > { %8805 = vst [vmem:[#allocation57_spill] sm:$0xff] %v7363_v25  ;;  %8806 = vst [vmem:[#allocation66_spill] sm:$0xff] %v7368_v63  ;;  %v2472_v34 = vmax.f32 %v2429_v24, 0.0  ;;  %v3313_v40 = vcombine.low %v7363_v25, %v3312_v53 }
 0x310   : > { %v2790_v49 = vcombine.high %v2788_v48, %v2788_v48  ;;  %v3144_v61 = vcombine.low %v2789_v23, %v2788_v48  ;;  %v3671_v36 = vcombine.low %v2781_v17, %v2789_v23  ;;  %v3151_v13 = vrot.slane %v3143_v35, %v6425_v60 }
 0x311   : > { %v2842_v63 = vcombine.high %v2472_v34, %v2472_v34  ;;  %v2849_v56 = vrot.slane %v2472_v34, %v6425_v60  ;;  %v7379_v15 = vrot.slane %v3313_v40, 1 }
 0x312   : > { %v3158_v2 = vrot.slane %v3144_v61, %v6425_v60  ;;  %v3160_v53 = vcombine.low %v2790_v49, %v7277_v11  ;;  %v3672_v24 = vcombine.low %v2788_v48, %v2790_v49  ;;  %v3679_v25 = vrot.slane %v3671_v36, %v6425_v60  ;;  %v2433_v23 = vpop.f32.mrb[8].mxu1 }
 0x313   : > { %v7385_v19 = vrot.slane %v2842_v63, %v6425_v60  ;;  %v2857_v22 = vcombine.high %v2849_v56, %v2849_v56  ;;  %v3194_v17 = vcombine.low %v7329_v31, %v2849_v56  ;;  %3408 = vrot.lane.b32.xlu1 %v7379_v15, %s5397_s11  ;;  %v7392_v35 = vsel %vm283_vm0, %v3362_v59, %v7379_v15  ;;  %v5180_v63 = vpop.f32.mrb[9].mxu1 }
 0x314   : > { %v7394_v34 = vcombine.low %v3151_v13, %v3158_v2  ;;  %v7397_v40 = vrot.slane %v3160_v53, %v6425_v60  ;;  %v2434_v48 = vadd.f32 %v6913_v41, %v2433_v23  ;;  %3406 = vrot.lane.b32.xlu0 %v7392_v35, %s5397_s11  ;;  %v3686_v49 = vrot.slane %v3672_v24, %v6425_v60 }
 0x315   : > { %8807 = vst [vmem:[#allocation15_spill] sm:$0xff] %v7385_v19  ;;  %v7405_v61 = vcombine.high %v7385_v19, %v7385_v19  ;;  %v3208_v59 = vrot.slane %v3194_v17, %v6425_v60  ;;  %v3210_v36 = vcombine.low %v2857_v22, %v7385_v19  ;;  %v3722_v13 = vcombine.low %v2849_v56, %v2857_v22 }
 0x316   : > { %v2473_v2 = vmax.f32 %v2434_v48, 0.0  ;;  %v3321_v53 = vcombine.low %v7397_v40, %v3320_v10  ;;  %v7410_v6 = vcombine.low %v3679_v25, %v3686_v49  ;;  %v8809_v41 = vcombine.low %v7323_v62, %v7329_v31 }
 0x317   : > { %8808 = vst [vmem:[#allocation35_spill] sm:$0xff] %v7405_v61  ;;  %v7416_v24 = vcombine.low %v3201_v42, %v3208_v59  ;;  %v7419_v63 = vrot.slane %v3210_v36, %v6425_v60  ;;  %v3336_v17 = vrot.slane %v7405_v61, %v6425_v60  ;;  %v3736_v56 = vrot.slane %v3722_v13, %v6425_v60 }
 0x318   : > { %v3729_v23 = vrot.slane %v8809_v41, %v6425_v60  ;;  %v7424_v22 = vrot.slane %v3321_v53, 1  ;;  %v3365_v25 = vrot.slane %v7394_v34, 1  ;;  %v2859_v48 = vcombine.high %v2473_v2, %v2473_v2 }
 0x319   : > { %8810 = vst [vmem:[#allocation22_spill] sm:$0xff] %v7419_v63  ;;  %v7437_v42 = vrot.slane %v3329_v12, 1  ;;  %v3337_v49 = vcombine.low %v7419_v63, %v3336_v17  ;;  %v3368_v59 = vrot.slane %v7312_v45, 1  ;;  %v2866_v12 = vrot.slane %v2473_v2, %v6425_v60  ;;  %v5331_v2 = vld [vmem:[%s8477_s2] ss:$0 sm:$0xff] }
 0x31a   : > { %v7429_v62 = vcombine.low %v3729_v23, %v3736_v56  ;;  %3412 = vrot.lane.b32.xlu1 %v7424_v22, %s5397_s11  ;;  %v7435_v31 = vsel %vm283_vm0, %v3365_v25, %v7424_v22  ;;  %v2873_v36 = vrot.slane %v2859_v48, %v6425_v60  ;;  %v3371_v41 = vrot.slane %v7416_v24, 1 }
 0x31b   : > { %8812 = vst [vmem:[#allocation36_spill] sm:$0xff] %v7437_v42  ;;  %3410 = vrot.lane.b32.xlu0 %v7435_v31, %s5397_s11  ;;  %v7448_v13 = vsel %vm283_vm0, %v3368_v59, %v7437_v42  ;;  %v7450_v53 = vrot.slane %v3337_v49, 1  ;;  %v2874_v25 = vcombine.high %v2866_v12, %v2866_v12  ;;  %v8814_v59 = vcombine.low %v6957_v58, %v6955_v51 }
 0x31c   : > { %8811 = vst [vmem:[#allocation44_spill] sm:$0xff] %v7429_v62  ;;  %v2875_v23 = vcombine.high %v2873_v36, %v2873_v36  ;;  %v8815_v62 = vcombine.low %v6964_v43, %v6977_v18 }
 0x31d   : > { %8813 = vst [vmem:[#allocation56_spill] sm:$0xff] %v7450_v53  ;;  %v7460_v17 = vsel %vm283_vm0, %v3371_v41, %v7450_v53  ;;  %v3470_v10 = vrot.slane %v8814_v59, %v6425_v60  ;;  %v3818_v41 = vcombine.low %v2866_v12, %v2874_v25 }
 0x31e   : > { %3416 = vrot.lane.b32.xlu1 %v7437_v42, %s5397_s11  ;;  %v3819_v61 = vcombine.low %v2873_v36, %v2875_v23 }
 0x31f   : > { %3414 = vrot.lane.b32.xlu0 %v7448_v13, %s5397_s11  ;;  %v3826_v43 = vrot.slane %v3818_v41, %v6425_v60 }
 0x320   : > { %v3833_v12 = vrot.slane %v3819_v61, %v6425_v60 }
 0x322   : > { %3420 = vrot.lane.b32.xlu1 %v7450_v53, %s5397_s11  ;;  %v2438_v56 = vpop.f32.mrb[10].mxu1  ;;  %v3998_v53 = vcombine.low %v2874_v25, %v2873_v36 }
 0x323   : > { %3418 = vrot.lane.b32.xlu0 %v7460_v17, %s5397_s11  ;;  %v2439_v48 = vadd.f32 %v5331_v2, %v2438_v56  ;;  %v5183_v49 = vpop.f32.mrb[11].mxu1  ;;  %v8816_v56 = vcombine.low %v7015_v7, %v7024_v0  ;;  %v8819_v0 = vcombine.low %v7057_v44, %v7071_v26  ;;  %s5408_s11 = smov 40  }
 0x324   : > { %v4006_v18 = vrot.slane %v3998_v53, %v6425_v60  ;;  %v8823_v49 = vcombine.low %v7100_v29, %v7106_v55  ;;  %v8826_v29 = vcombine.low %v7143_v5, %v7141_v46 }
 0x325   : > { %v2474_v19 = vmax.f32 %v2439_v48, 0.0  ;;  %v7481_v51 = vrot.slane %v8816_v56, %v6425_v60 }
 0x326   : > { %3748 = vrot.lane.b32.xlu1 %v3470_v10, %s5399_s13  ;;  %v7521_v59 = vrot.slane %v8823_v49, %v6425_v60  ;;  %v7539_v55 = vrot.slane %v8826_v29, %v6425_v60 }
 0x327   : > { %v2876_v63 = vcombine.high %v2474_v19, %v2474_v19  ;;  %v2883_v42 = vrot.slane %v2474_v19, %v6425_v60  ;;  %3746 = vrot.lane.b32.xlu0 %v8815_v62, %s5399_s13 }
 0x329   : > { %v7484_v58 = vrot.slane %v2876_v63, %v6425_v60  ;;  %v7486_v10 = vcombine.high %v2883_v42, %v2883_v42  ;;  %v3999_v36 = vcombine.low %v2875_v23, %v2883_v42  ;;  %v7501_v63 = vrot.slane %v8819_v0, %v6425_v60 }
 0x32a   : > { %3752 = vrot.lane.b32.xlu1 %v7481_v51, %s5399_s13  ;;  %v7508_v23 = vcombine.low %v3826_v43, %v3833_v12 }
 0x32b   : > { %8817 = vst [vmem:[#allocation65_spill] sm:$0xff] %v7484_v58  ;;  %8818 = vst [vmem:[#allocation49_spill] sm:$0xff] %v7486_v10  ;;  %v3835_v19 = vcombine.low %v2883_v42, %v7486_v10  ;;  %3750 = vrot.lane.b32.xlu0 %v7039_v54, %s5399_s13  ;;  %v4013_v7 = vrot.slane %v3999_v36, %v6425_v60  ;;  %v3921_v62 = vrot.slane %v7484_v58, %v6425_v60 }
 0x32c   : > { %8821 = vst [vmem:[#allocation39_spill] sm:$0xff] %v7508_v23  ;;  %v3923_v56 = vrot.slane %v7508_v23, 1  ;;  %v2892_v12 = vcombine.high %v7484_v58, %v7484_v58 }
 0x32d   : > { %v7504_v61 = vrot.slane %v3835_v19, %v6425_v60  ;;  %v2443_v53 = vpop.f32.mrb[12].mxu1  ;;  %v7510_v42 = vcombine.low %v4006_v18, %v4013_v7 }
 0x32e   : > { %v2444_v25 = vadd.f32 %v5331_v2, %v2443_v53  ;;  %v5186_v48 = vpop.f32.mrb[13].mxu1  ;;  %3756 = vrot.lane.b32.xlu1 %v7501_v63, %s5399_s13 }
 0x32f   : > { %8820 = vst [vmem:[#allocation59_spill] sm:$0xff] %v7504_v61  ;;  %8822 = vst [vmem:[#allocation68_spill] sm:$0xff] %v7510_v42  ;;  %3754 = vrot.lane.b32.xlu0 %v7073_v14, %s5399_s13  ;;  %v3922_v44 = vcombine.low %v7504_v61, %v3921_v62 }
 0x330   : > { %v2475_v26 = vmax.f32 %v2444_v25, 0.0 }
 0x331   : > { %v2448_v41 = vpop.f32.mrb[14].mxu1  ;;  %v7524_v36 = vrot.slane %v3922_v44, 1  ;;  %v8832_v44 = vcombine.low %v7181_v47, %v7189_v38  ;;  %v8836_v38 = vcombine.low %v7218_v3, %v7230_v8  ;;  %v4607_v3 = vld [vmem:[%s8478_s3 + $0x18] sm:$0xff] }
 0x332   : > { %v2893_v43 = vcombine.high %v2475_v26, %v2475_v26  ;;  %v7529_v18 = vrot.slane %v2475_v26, %v6425_v60  ;;  %v2449_v19 = vadd.f32 %v5331_v2, %v2448_v41  ;;  %v5189_v7 = vpop.f32.mrb[15].mxu1  ;;  %3760 = vrot.lane.b32.xlu1 %v7521_v59, %s5399_s13 }
 0x333   : > { %8824 = vst [vmem:[#allocation46_spill] sm:$0xff] %v7524_v36  ;;  %3758 = vrot.lane.b32.xlu0 %v7124_v39, %s5399_s13  ;;  %v7543_v0 = vsel %vm283_vm0, %v3923_v56, %v7524_v36  ;;  %v7570_v26 = vrot.slane %v8832_v44, %v6425_v60  ;;  %v7595_v7 = vrot.slane %v8836_v38, %v6425_v60  ;;  %v4609_v44 = vld [vmem:[%s8478_s3 + $0x28] sm:$0xff]  ;;  %v7678_v38 = vpop.permute.xlu1 %3376 }
 0x334   : > { %8825 = vst [vmem:[#allocation58_spill] sm:$0xff] %v7529_v18  ;;  %8827 = vst [vmem:[#allocation67_spill] sm:$0xff] %v7543_v0  ;;  %v7546_v62 = vrot.slane %v2893_v43, %v6425_v60  ;;  %v7550_v2 = vcombine.high %v7529_v18, %v7529_v18  ;;  %v4095_v53 = vcombine.low %v2892_v12, %v7529_v18  ;;  %v2476_v25 = vmax.f32 %v2449_v19, 0.0 }
 0x336   : > { %8828 = vst [vmem:[#allocation19_spill] sm:$0xff] %v7546_v62  ;;  %8829 = vst [vmem:[#allocation51_spill] sm:$0xff] %v7550_v2  ;;  %v7555_v48 = vcombine.high %v7546_v62, %v7546_v62  ;;  %v4096_v46 = vcombine.low %v7550_v2, %v7546_v62  ;;  %v7560_v5 = vrot.slane %v2476_v25, %v6425_v60  ;;  %3764 = vrot.lane.b32.xlu1 %v7539_v55, %s5399_s13  ;;  %v8861_v2 = vld [vmem:[#allocation62_spill] sm:$0xff]  ;;  %v8863_v62 = vld [vmem:[#allocation53_spill] sm:$0xff] }
 0x337   : > { %3762 = vrot.lane.b32.xlu0 %v7158_v28, %s5399_s13  ;;  %v4103_v56 = vrot.slane %v4095_v53, %v6425_v60 }
 0x338   : > { %8830 = vst [vmem:[#allocation13_spill] sm:$0xff] %v7555_v48  ;;  %8831 = vst [vmem:[#allocation61_spill] sm:$0xff] %v7560_v5  ;;  %v7574_v49 = vcombine.high %v7560_v5, %v7560_v5  ;;  %v4112_v41 = vcombine.low %v7555_v48, %v7560_v5  ;;  %v4110_v12 = vrot.slane %v4096_v46, %v6425_v60  ;;  %v8851_v5 = vld [vmem:[#allocation52_spill] sm:$0xff] }
 0x33a   : > { %8833 = vst [vmem:[#allocation70_spill] sm:$0xff] %v7574_v49  ;;  %v7581_v43 = vrot.slane %v4112_v41, %v6425_v60  ;;  %v4198_v19 = vrot.slane %v7574_v49, %v6425_v60  ;;  %3768 = vrot.lane.b32.xlu1 %v7570_v26, %s5399_s13  ;;  %v7587_v47 = vcombine.low %v4103_v56, %v4110_v12  ;;  %v4611_v56 = vld [vmem:[%s8478_s3 + $0x38] sm:$0xff] }
 0x33b   : > { %3766 = vrot.lane.b32.xlu0 %v7192_v4, %s5399_s13 }
 0x33c   : > { %8834 = vst [vmem:[#allocation26_spill] sm:$0xff] %v7581_v43  ;;  %8835 = vst [vmem:[#allocation34_spill] sm:$0xff] %v7587_v47  ;;  %v7598_v29 = vcombine.low %v7581_v43, %v4198_v19  ;;  %v4200_v53 = vrot.slane %v7587_v47, 1  ;;  %v4612_v19 = vld [vmem:[%s8478_s3 + $0x40] sm:$0xff]  ;;  %v8866_v47 = vld [vmem:[#allocation12_spill] sm:$0xff] }
 0x33e   : > { %8837 = vst [vmem:[#allocation41_spill] sm:$0xff] %v7598_v29  ;;  %3772 = vrot.lane.b32.xlu1 %v7595_v7, %s5399_s13  ;;  %v8614_v25 = vrot.slane %v7598_v29, 1 }
 0x33f   : > { %3770 = vrot.lane.b32.xlu0 %v7226_v32, %s5399_s13 }
 0x340   : > { %v7609_v46 = vsel %vm283_vm0, %v4200_v53, %v8614_v25  ;;  %v7680_v53 = vpop.permute.xlu0 %3374  ;;  %vm4543_vm0 = vcmask 523264  }
 0x341   : > { %8838 = vst [vmem:[#allocation38_spill] sm:$0xff] %v7609_v46 }
 0x342   : > { %3843 = vrot.lane.b32.xlu1 %v7018_v27, %s5403_s8 }
 0x343   : > { %3774 = vrot.lane.b32.xlu0 %v7282_v52, %s5399_s13 }
 0x346   : > { %4023 = vrot.lane.b32.xlu1 %v7039_v54, %s5408_s11  ;;  %v4604_v54 = vld [vmem:[%s8478_s3] sm:$0xff] }
 0x347   : > { %3926 = vrot.lane.b32.xlu0 %v7054_v21, %s5406_s14 }
 0x34a   : > { %3847 = vrot.lane.b32.xlu1 %v7068_v16, %s5403_s8 }
 0x34b   : > { %3845 = vrot.lane.b32.xlu0 %v7031_v9, %s5403_s8 }
 0x34e   : > { %3928 = vrot.lane.b32.xlu1 %v7043_v30, %s5406_s14  ;;  %v4605_v30 = vld [vmem:[%s8478_s3 + $0x8] sm:$0xff] }
 0x34f   : > { %4120 = vrot.lane.b32.xlu0 %v7068_v16, %s5409_s23  ;;  %v5241_v21 = vpack.c.bf16 %v4605_v30, %v4604_v54  ;;  %v7686_v54 = vpop.permute.xlu1 %3380  ;;  %v7688_v30 = vpop.permute.xlu0 %3378 }
 0x351   : > { %5242 = vmatprep.subr.bf16.mxu1 %v5241_v21 }
 0x352   : > { %4203 = vrot.lane.b32.xlu1 %v7091_v57, %s5410_s25  ;;  %5244 = vmatpush3.bf16.msra.mxu1 %v5241_v21  ;;  %v8839_v21 = vld [vmem:[#allocation29_spill] sm:$0xff] }
 0x353   : > { %3930 = vrot.lane.b32.xlu0 %v7091_v57, %s5406_s14  ;;  %v4606_v57 = vld [vmem:[%s8478_s3 + $0x10] sm:$0xff] }
 0x354   : > { %v5245_v8 = vpack.c.bf16 %v4607_v3, %v4606_v57  ;;  %v7694_v57 = vpop.permute.xlu1 %3384  ;;  %v7696_v3 = vpop.permute.xlu0 %3382 }
 0x356   : > { %4025 = vrot.lane.b32.xlu1 %v7481_v51, %s5408_s11  ;;  %5246 = vmatprep.subr.bf16.mxu1 %v5245_v8  ;;  %v4608_v51 = vld [vmem:[%s8478_s3 + $0x20] sm:$0xff] }
 0x357   : > { %3851 = vrot.lane.b32.xlu0 %v7110_v37, %s5403_s8  ;;  %5248 = vmatpush3.bf16.msra.mxu1 %v5245_v8  ;;  %v5249_v41 = vpack.c.bf16 %v4609_v44, %v4608_v51  ;;  %v8840_v8 = vld [vmem:[#allocation17_spill] sm:$0xff] }
 0x359   : > { %5250 = vmatprep.subr.bf16.mxu1 %v5249_v41 }
 0x35a   : > { %4300 = vrot.lane.b32.xlu1 %v7073_v14, %s5411_s10 }
 0x35b   : > { %4027 = vrot.lane.b32.xlu0 %v7073_v14, %s5408_s11  ;;  %5252 = vmatpush3.bf16.msra.mxu1 %v5249_v41  ;;  %v4610_v14 = vld [vmem:[%s8478_s3 + $0x30] sm:$0xff] }
 0x35c   : > { %v5253_v12 = vpack.c.bf16 %v4611_v56, %v4610_v14  ;;  %v8843_v14 = vld [vmem:[#allocation10_spill] sm:$0xff] }
 0x35e   : > { %3934 = vrot.lane.b32.xlu1 %v7133_v50, %s5406_s14  ;;  %5254 = vmatprep.subr.bf16.mxu1 %v5253_v12 }
 0x35f   : > { %3849 = vrot.lane.b32.xlu0 %v7076_v1, %s5403_s8  ;;  %5256 = vmatpush3.bf16.msra.mxu1 %v5253_v12 }
 0x360   : > { %5206 = vmatprep.subr.mxu1 %v4612_v19 }
 0x362   : > { %4124 = vrot.lane.b32.xlu1 %v7110_v37, %s5409_s23 }
 0x363   : > { %4122 = vrot.lane.b32.xlu0 %v7076_v1, %s5409_s23  ;;  %5207 = vmatpush3.msra.mxu1 %v4612_v19  ;;  %v8846_v19 = vld [vmem:[#allocation20_spill] sm:$0xff] }
 0x366   : > { %4031 = vrot.lane.b32.xlu1 %v7124_v39, %s5408_s11 }
 0x367   : > { %3932 = vrot.lane.b32.xlu0 %v7084_v33, %s5406_s14 }
 0x36a   : > { %4207 = vrot.lane.b32.xlu1 %v7133_v50, %s5410_s25  ;;  %v7704_v50 = vpop.permute.xlu0 %3386 }
 0x36b   : > { %4205 = vrot.lane.b32.xlu0 %v7084_v33, %s5410_s25  ;;  %v7702_v33 = vpop.permute.xlu1 %3388 }
 0x36e   : > { %4128 = vrot.lane.b32.xlu1 %v8839_v21, %s5409_s23  ;;  %v7712_v44 = vpop.permute.xlu0 %3390 }
 0x36f   : > { %4029 = vrot.lane.b32.xlu0 %v7501_v63, %s5408_s11  ;;  %v7710_v51 = vpop.permute.xlu1 %3392 }
 0x372   : > { %4304 = vrot.lane.b32.xlu1 %v7124_v39, %s5411_s10  ;;  %v8841_v39 = vld [vmem:[#allocation31_spill] sm:$0xff]  ;;  %v7720_v41 = vpop.permute.xlu0 %3394 }
 0x373   : > { %4302 = vrot.lane.b32.xlu0 %v7501_v63, %s5411_s10  ;;  %v7718_v63 = vpop.permute.xlu1 %3396 }
 0x374   : > { %8842 = vst [vmem:[#allocation18_spill] sm:$0xff] %v7718_v63 }
 0x376   : > { %4126 = vrot.lane.b32.xlu1 %v8840_v8, %s5409_s23  ;;  %v7728_v12 = vpop.permute.xlu0 %3398 }
 0x377   : > { %3855 = vrot.lane.b32.xlu0 %v8839_v21, %s5403_s8  ;;  %v7726_v56 = vpop.permute.xlu1 %3400  ;;  %8845 = vst [vmem:[#allocation37_spill] sm:$0xff] %v7728_v12 }
 0x378   : > { %8844 = vst [vmem:[#allocation50_spill] sm:$0xff] %v7726_v56 }
 0x37a   : > { %3853 = vrot.lane.b32.xlu1 %v8840_v8, %s5403_s8  ;;  %v7736_v29 = vpop.permute.xlu0 %3402 }
 0x37b   : > { %4211 = vrot.lane.b32.xlu0 %v8841_v39, %s5410_s25  ;;  %v7734_v25 = vpop.permute.xlu1 %3404  ;;  %8848 = vst [vmem:[#allocation69_spill] sm:$0xff] %v7736_v29 }
 0x37c   : > { %8847 = vst [vmem:[#allocation60_spill] sm:$0xff] %v7734_v25 }
 0x37e   : > { %4209 = vrot.lane.b32.xlu1 %v8843_v14, %s5410_s25 }
 0x37f   : > { %3938 = vrot.lane.b32.xlu0 %v8841_v39, %s5406_s14 }
 0x382   : > { %3857 = vrot.lane.b32.xlu1 %v8846_v19, %s5403_s8 }
 0x383   : > { %4308 = vrot.lane.b32.xlu0 %v7158_v28, %s5411_s10 }
 0x385   : > { %v7742_v39 = vpop.permute.xlu1 %3408 }
 0x386   : > { %4035 = vrot.lane.b32.xlu1 %v7158_v28, %s5408_s11  ;;  %8849 = vst [vmem:[#allocation23_spill] sm:$0xff] %v7742_v39  ;;  %v7744_v56 = vpop.permute.xlu0 %3406  ;;  %v8854_v28 = vld [vmem:[#allocation21_spill] sm:$0xff] }
 0x387   : > { %3936 = vrot.lane.b32.xlu0 %v8843_v14, %s5406_s14  ;;  %8850 = vst [vmem:[#allocation40_spill] sm:$0xff] %v7744_v56  ;;  %v8857_v56 = vld [vmem:[#allocation25_spill] sm:$0xff] }
 0x38a   : > { %3859 = vrot.lane.b32.xlu1 %v8851_v5, %s5403_s8 }
 0x38b   : > { %4306 = vrot.lane.b32.xlu0 %v7521_v59, %s5411_s10 }
 0x38c   : > { %v7750_v49 = vpop.permute.xlu1 %3412 }
 0x38d   : > { %8852 = vst [vmem:[#allocation28_spill] sm:$0xff] %v7750_v49  ;;  %v7752_v25 = vpop.permute.xlu0 %3410 }
 0x38e   : > { %8853 = vst [vmem:[#allocation43_spill] sm:$0xff] %v7752_v25  ;;  %4033 = vrot.lane.b32.xlu1 %v7521_v59, %s5408_s11 }
 0x38f   : > { %3940 = vrot.lane.b32.xlu0 %v8854_v28, %s5406_s14 }
 0x390   : > { %v7758_v14 = vpop.permute.xlu1 %3416 }
 0x391   : > { %8855 = vst [vmem:[#allocation27_spill] sm:$0xff] %v7758_v14  ;;  %v7760_v39 = vpop.permute.xlu0 %3414 }
 0x392   : > { %8856 = vst [vmem:[#allocation42_spill] sm:$0xff] %v7760_v39  ;;  %3942 = vrot.lane.b32.xlu1 %v8857_v56, %s5406_s14 }
 0x393   : > { %4132 = vrot.lane.b32.xlu0 %v8851_v5, %s5409_s23 }
 0x394   : > { %v7766_v29 = vpop.permute.xlu1 %3420 }
 0x395   : > { %8858 = vst [vmem:[#allocation29_spill] sm:$0xff] %v7766_v29  ;;  %v7768_v49 = vpop.permute.xlu0 %3418 }
 0x396   : > { %8859 = vst [vmem:[#allocation17_spill] sm:$0xff] %v7768_v49  ;;  %4130 = vrot.lane.b32.xlu1 %v8846_v19, %s5409_s23  ;;  %v8860_v49 = vld [vmem:[#allocation24_spill] sm:$0xff] }
 0x397   : > { %4037 = vrot.lane.b32.xlu0 %v7539_v55, %s5408_s11 }
 0x398   : > { %v7774_v59 = vpop.permute.xlu1 %3748 }
 0x399   : > { %v3747_v14 = vpop.permute.xlu0 %3746 }
 0x39a   : > { %4039 = vrot.lane.b32.xlu1 %v7192_v4, %s5408_s11 }
 0x39b   : > { %4215 = vrot.lane.b32.xlu0 %v8857_v56, %s5410_s25 }
 0x39c   : > { %v7780_v39 = vpop.permute.xlu1 %3752 }
 0x39d   : > { %v7782_v29 = vpop.permute.xlu0 %3750 }
 0x39e   : > { %4213 = vrot.lane.b32.xlu1 %v8854_v28, %s5410_s25 }
 0x39f   : > { %4134 = vrot.lane.b32.xlu0 %v8860_v49, %s5409_s23 }
 0x3a0   : > { %v7788_v25 = vpop.permute.xlu1 %3756 }
 0x3a1   : > { %v7790_v43 = vpop.permute.xlu0 %3754 }
 0x3a2   : > { %3861 = vrot.lane.b32.xlu1 %v8860_v49, %s5403_s8 }
 0x3a3   : > { %4312 = vrot.lane.b32.xlu0 %v7192_v4, %s5411_s10 }
 0x3a4   : > { %v7796_v56 = vpop.permute.xlu1 %3760 }
 0x3a5   : > { %v7798_v18 = vpop.permute.xlu0 %3758 }
 0x3a6   : > { %4136 = vrot.lane.b32.xlu1 %v8861_v2, %s5409_s23 }
 0x3a7   : > { %3863 = vrot.lane.b32.xlu0 %v8861_v2, %s5403_s8 }
 0x3a8   : > { %v7804_v28 = vpop.permute.xlu1 %3764 }
 0x3a9   : > { %8862 = vst [vmem:[#allocation31_spill] sm:$0xff] %v7804_v28  ;;  %v7806_v46 = vpop.permute.xlu0 %3762 }
 0x3aa   : > { %4310 = vrot.lane.b32.xlu1 %v7539_v55, %s5411_s10 }
 0x3ab   : > { %4217 = vrot.lane.b32.xlu0 %v8863_v62, %s5410_s25 }
 0x3ac   : > { %v7812_v4 = vpop.permute.xlu1 %3768 }
 0x3ad   : > { %8864 = vst [vmem:[#allocation10_spill] sm:$0xff] %v7812_v4  ;;  %v7814_v48 = vpop.permute.xlu0 %3766  ;;  %v8870_v4 = vld [vmem:[#allocation6_spill] sm:$0xff] }
 0x3ae   : > { %8865 = vst [vmem:[#allocation52_spill] sm:$0xff] %v7814_v48  ;;  %3946 = vrot.lane.b32.xlu1 %v8866_v47, %s5406_s14 }
 0x3af   : > { %3944 = vrot.lane.b32.xlu0 %v8863_v62, %s5406_s14 }
 0x3b0   : > { %v7820_v36 = vpop.permute.xlu1 %3772 }
 0x3b1   : > { %8867 = vst [vmem:[#allocation21_spill] sm:$0xff] %v7820_v36  ;;  %v7822_v10 = vpop.permute.xlu0 %3770 }
 0x3b2   : > { %8868 = vst [vmem:[#allocation25_spill] sm:$0xff] %v7822_v10  ;;  %4314 = vrot.lane.b32.xlu1 %v7570_v26, %s5411_s10  ;;  %v8873_v10 = vld [vmem:[#allocation8_spill] sm:$0xff] }
 0x3b3   : > { %4219 = vrot.lane.b32.xlu0 %v8866_v47, %s5410_s25  ;;  %v8871_v47 = vld [vmem:[#allocation45_spill] sm:$0xff] }
 0x3b4   : > { %v3844_v55 = vpop.permute.xlu1 %3843 }
 0x3b5   : > { %v7828_v58 = vpop.permute.xlu0 %3774 }
 0x3b6   : > { %8869 = vst [vmem:[#allocation53_spill] sm:$0xff] %v7828_v58  ;;  %4041 = vrot.lane.b32.xlu1 %v7570_v26, %s5408_s11  ;;  %v8872_v58 = vld [vmem:[#allocation63_spill] sm:$0xff] }
 0x3b7   : > { %3867 = vrot.lane.b32.xlu0 %v8870_v4, %s5403_s8 }
 0x3b8   : > { %v4024_v62 = vpop.permute.xlu1 %4023 }
 0x3b9   : > { %v3927_v49 = vpop.permute.xlu0 %3926 }
 0x3ba   : > { %4316 = vrot.lane.b32.xlu1 %v7226_v32, %s5411_s10 }
 0x3bb   : > { %4043 = vrot.lane.b32.xlu0 %v7226_v32, %s5408_s11  ;;  %v4372_v32 = vsel %vm1086_vm5, %v8873_v10, %v7680_v53 }
 0x3bc   : > { %v3848_v36 = vpop.permute.xlu1 %3847  ;;  %v4396_v12 = vsel %vm1144_vm7, %v4372_v32, %v3747_v14 }
 0x3bd   : > { %v3846_v63 = vpop.permute.xlu0 %3845  ;;  %v4420_v0 = vsel %vm1202_vm9, %v4396_v12, %v3844_v55 }
 0x3be   : > { %3950 = vrot.lane.b32.xlu1 %v8871_v47, %s5406_s14  ;;  %v4444_v28 = vsel %vm1260_vm11, %v4420_v0, %v3927_v49 }
 0x3bf   : > { %3865 = vrot.lane.b32.xlu0 %v8872_v58, %s5403_s8  ;;  %v4469_v10 = vsel %vm4468_vm13, %v4444_v28, %v4024_v62 }
 0x3c0   : > { %v3929_v26 = vpop.permute.xlu1 %3928 }
 0x3c1   : > { %v4121_v61 = vpop.permute.xlu0 %4120 }
 0x3c2   : > { %4140 = vrot.lane.b32.xlu1 %v8870_v4, %s5409_s23  ;;  %v8874_v4 = vld [vmem:[#allocation9_spill] sm:$0xff]  ;;  %v4494_v53 = vsel %vm4493_vm14, %v4469_v10, %v4121_v61  ;;  %v8876_v10 = vld [vmem:[#allocation30_spill] sm:$0xff] }
 0x3c3   : > { %4138 = vrot.lane.b32.xlu0 %v8872_v58, %s5409_s23 }
 0x3c4   : > { %v4204_v2 = vpop.permute.xlu1 %4203 }
 0x3c5   : > { %v3931_v42 = vpop.permute.xlu0 %3930  ;;  %v4519_v0 = vsel %vm4518_vm15, %v4494_v53, %v4204_v2  ;;  %v8877_v53 = vld [vmem:[#allocation47_spill] sm:$0xff] }
 0x3c6   : > { %4047 = vrot.lane.b32.xlu1 %v7282_v52, %s5408_s11 }
 0x3c7   : > { %3948 = vrot.lane.b32.xlu0 %v8874_v4, %s5406_s14 }
 0x3c8   : > { %v4026_v58 = vpop.permute.xlu1 %4025 }
 0x3c9   : > { %v7856_v23 = vpop.permute.xlu0 %3851 }
 0x3ca   : > { %4223 = vrot.lane.b32.xlu1 %v8871_v47, %s5410_s25  ;;  %v8875_v47 = vld [vmem:[#allocation55_spill] sm:$0xff] }
 0x3cb   : > { %4221 = vrot.lane.b32.xlu0 %v8874_v4, %s5410_s25 }
 0x3cc   : > { %v4301_v49 = vpop.permute.xlu1 %4300 }
 0x3cd   : > { %v4544_v12 = vsel %vm4543_vm0, %v4519_v0, %v4301_v49  ;;  %v4028_v14 = vpop.permute.xlu0 %4027  ;;  %v8878_v0 = vcombine.low %v8876_v10, %v8877_v53 }
 0x3ce   : > { %v4592_v55 = vcombine.high %v4544_v12, %v4544_v12  ;;  %4144 = vrot.lane.b32.xlu1 %v7346_v20, %s5409_s23 }
 0x3cf   : > { %4045 = vrot.lane.b32.xlu0 %v7595_v7, %s5408_s11  ;;  %v3645_v49 = vrot.slane %v8878_v0, %v6425_v60 }
 0x3d0   : > { %v4620_v28 = vcombine.low %v4544_v12, %v4592_v55  ;;  %v3935_v62 = vpop.permute.xlu1 %3934  ;;  %v4374_v55 = vsel %vm1086_vm5, %v7018_v27, %v7688_v30 }
 0x3d1   : > { %v7870_v61 = vpop.permute.xlu0 %3849  ;;  %v4398_v53 = vsel %vm1144_vm7, %v4374_v55, %v7782_v29  ;;  %v8880_v29 = vld [vmem:[#allocation66_spill] sm:$0xff] }
 0x3d2   : > { %4320 = vrot.lane.b32.xlu1 %v7282_v52, %s5411_s10  ;;  %5208 = vmatprep.mubr.msk.f32.mxu1 %vm4638_vm1, %v4620_v28  ;;  %v8879_v28 = vld [vmem:[#allocation16_spill] sm:$0xff] }
 0x3d3   : > { %4318 = vrot.lane.b32.xlu0 %v7595_v7, %s5411_s10  ;;  %v4373_v10 = vsel %vm1086_vm5, %v8879_v28, %v7678_v38 }
 0x3d4   : > { %v4125_v2 = vpop.permute.xlu1 %4124  ;;  %v4397_v0 = vsel %vm1144_vm7, %v4373_v10, %v7774_v59  ;;  %v8881_v59 = vld [vmem:[#allocation11_spill] sm:$0xff] }
 0x3d5   : > { %v4123_v4 = vpop.permute.xlu0 %4122  ;;  %v4421_v27 = vsel %vm1202_vm9, %v4397_v0, %v3846_v63 }
 0x3d6   : > { %4142 = vrot.lane.b32.xlu1 %v8875_v47, %s5409_s23  ;;  %v4445_v19 = vsel %vm1260_vm11, %v4421_v27, %v3929_v26  ;;  %v4376_v27 = vsel %vm1086_vm5, %v7068_v16, %v7696_v3  ;;  %v4375_v16 = vsel %vm1086_vm5, %v7031_v9, %v7686_v54  ;;  %v8884_v9 = vld [vmem:[#allocation64_spill] sm:$0xff] }
 0x3d7   : > { %3871 = vrot.lane.b32.xlu0 %v7346_v20, %s5403_s8  ;;  %v4422_v20 = vsel %vm1202_vm9, %v4398_v53, %v3848_v36  ;;  %v4470_v55 = vsel %vm4468_vm13, %v4445_v19, %v4026_v58  ;;  %v8882_v53 = vld [vmem:[#allocation57_spill] sm:$0xff] }
 0x3d8   : > { %v4032_v32 = vpop.permute.xlu1 %4031  ;;  %v4495_v36 = vsel %vm4493_vm14, %v4470_v55, %v4123_v4 }
 0x3d9   : > { %v7885_v52 = vpop.permute.xlu0 %3932 }
 0x3da   : > { %3776 = vrot.lane.b32.xlu1 %v3645_v49, %s5399_s13 }
 0x3db   : > { %4227 = vrot.lane.b32.xlu0 %v7392_v35, %s5410_s25 }
 0x3dc   : > { %v4208_v7 = vpop.permute.xlu1 %4207 }
 0x3dd   : > { %v4206_v12 = vpop.permute.xlu0 %4205 }
 0x3de   : > { %3954 = vrot.lane.b32.xlu1 %v7392_v35, %s5406_s14  ;;  %v4446_v35 = vsel %vm1260_vm11, %v4422_v20, %v3931_v42  ;;  %v4520_v42 = vsel %vm4518_vm15, %v4495_v36, %v4206_v12 }
 0x3df   : > { %3869 = vrot.lane.b32.xlu0 %v8875_v47, %s5403_s8  ;;  %v4471_v38 = vsel %vm4468_vm13, %v4446_v35, %v4028_v14  ;;  %v4400_v35 = vsel %vm1144_vm7, %v4376_v27, %v7790_v43 }
 0x3e0   : > { %v4129_v48 = vpop.permute.xlu1 %4128  ;;  %v4496_v28 = vsel %vm4493_vm14, %v4471_v38, %v4125_v2  ;;  %v4424_v38 = vsel %vm1202_vm9, %v4400_v35, %v7856_v23  ;;  %v4399_v23 = vsel %vm1144_vm7, %v4375_v16, %v7780_v39 }
 0x3e1   : > { %v4030_v30 = vpop.permute.xlu0 %4029  ;;  %v4521_v63 = vsel %vm4518_vm15, %v4496_v28, %v4208_v7  ;;  %v4448_v55 = vsel %vm1260_vm11, %v4424_v38, %v3935_v62 }
 0x3e2   : > { %4324 = vrot.lane.b32.xlu1 %v8880_v29, %s5411_s10 }
 0x3e3   : > { %4225 = vrot.lane.b32.xlu0 %v8881_v59, %s5410_s25 }
 0x3e4   : > { %v4305_v20 = vpop.permute.xlu1 %4304 }
 0x3e5   : > { %v4546_v26 = vsel %vm4543_vm0, %v4521_v63, %v4305_v20  ;;  %v4303_v14 = vpop.permute.xlu0 %4302  ;;  %v8883_v63 = vld [vmem:[#allocation48_spill] sm:$0xff] }
 0x3e6   : > { %v4545_v10 = vsel %vm4543_vm0, %v4520_v42, %v4303_v14  ;;  %3873 = vrot.lane.b32.xlu1 %v8882_v53, %s5403_s8  ;;  %v8885_v54 = vcombine.low %v8883_v63, %v8884_v9 }
 0x3e7   : > { %v4621_v58 = vcombine.low %v4545_v10, %v4546_v26  ;;  %3778 = vrot.lane.b32.xlu0 %v8880_v29, %s5399_s13  ;;  %v4593_v10 = vcombine.high %v4546_v26, %v4546_v26 }
 0x3e8   : > { %v4127_v19 = vpop.permute.xlu1 %4126 }
 0x3e9   : > { %5209 = vmatmul.mubr.msk.f32.vlgmr.msra.gmra.mrb[16].mxu1 %vm4638_vm1, %v4621_v58  ;;  %v7925_v2 = vpop.permute.xlu0 %3855 }
 0x3ea   : > { %4051 = vrot.lane.b32.xlu1 %v8880_v29, %s5408_s11 }
 0x3eb   : > { %3952 = vrot.lane.b32.xlu0 %v8881_v59, %s5406_s14  ;;  %v4473_v59 = vsel %vm4468_vm13, %v4448_v55, %v4032_v32  ;;  %v4423_v32 = vsel %vm1202_vm9, %v4399_v23, %v7870_v61  ;;  %v4378_v23 = vsel %vm1086_vm5, %v7110_v37, %v7704_v50 }
 0x3ec   : > { %v7931_v4 = vpop.permute.xlu1 %3853  ;;  %v4498_v43 = vsel %vm4493_vm14, %v4473_v59, %v4129_v48  ;;  %v3670_v48 = vrot.slane %v8885_v54, %v6425_v60  ;;  %v4447_v20 = vsel %vm1260_vm11, %v4423_v32, %v7885_v52  ;;  %v4402_v32 = vsel %vm1144_vm7, %v4378_v23, %v7798_v18 }
 0x3ed   : > { %v4212_v7 = vpop.permute.xlu0 %4211  ;;  %v4472_v39 = vsel %vm4468_vm13, %v4447_v20, %v4030_v30  ;;  %v4426_v63 = vsel %vm1202_vm9, %v4402_v32, %v7925_v2 }
 0x3ee   : > { %3875 = vrot.lane.b32.xlu1 %v7394_v34, %s5403_s8  ;;  %v4523_v3 = vsel %vm4518_vm15, %v4498_v43, %v4212_v7  ;;  %v4497_v61 = vsel %vm4493_vm14, %v4472_v39, %v4127_v19 }
 0x3ef   : > { %4322 = vrot.lane.b32.xlu0 %v3645_v49, %s5411_s10 }
 0x3f0   : > { %v4210_v12 = vpop.permute.xlu1 %4209 }
 0x3f1   : > { %v7936_v0 = vpop.permute.xlu0 %3938  ;;  %v4522_v58 = vsel %vm4518_vm15, %v4497_v61, %v4210_v12 }
 0x3f2   : > { %4049 = vrot.lane.b32.xlu1 %v3645_v49, %s5408_s11  ;;  %v4450_v37 = vsel %vm1260_vm11, %v4426_v63, %v7936_v0  ;;  %v8891_v63 = vld [vmem:[#allocation36_spill] sm:$0xff] }
 0x3f3   : > { %3956 = vrot.lane.b32.xlu0 %v7379_v15, %s5406_s14 }
 0x3f4   : > { %v7948_v29 = vpop.permute.xlu1 %3857 }
 0x3f5   : > { %v4309_v28 = vpop.permute.xlu0 %4308 }
 0x3f6   : > { %3958 = vrot.lane.b32.xlu1 %v7435_v31, %s5406_s14  ;;  %v4548_v49 = vsel %vm4543_vm0, %v4523_v3, %v4309_v28 }
 0x3f7   : > { %4148 = vrot.lane.b32.xlu0 %v7394_v34, %s5409_s23  ;;  %v4594_v42 = vcombine.high %v4548_v49, %v4548_v49 }
 0x3f8   : > { %v4036_v62 = vpop.permute.xlu1 %4035 }
 0x3f9   : > { %v3937_v36 = vpop.permute.xlu0 %3936  ;;  %v4623_v30 = vcombine.low %v4548_v49, %v4594_v42  ;;  %v8886_v49 = vld [vmem:[#allocation5_spill] sm:$0xff]  ;;  %v4379_v42 = vsel %vm1086_vm5, %v8840_v8, %v7702_v33 }
 0x3fa   : > { %4146 = vrot.lane.b32.xlu1 %v8882_v53, %s5409_s23 }
 0x3fb   : > { %4053 = vrot.lane.b32.xlu0 %v3670_v48, %s5408_s11 }
 0x3fc   : > { %v7977_v14 = vpop.permute.xlu1 %3859 }
 0x3fd   : > { %v4307_v7 = vpop.permute.xlu0 %4306 }
 0x3fe   : > { %v4547_v27 = vsel %vm4543_vm0, %v4522_v58, %v4307_v7  ;;  %3780 = vrot.lane.b32.xlu1 %v3670_v48, %s5399_s13 }
 0x3ff   : > { %v4622_v52 = vcombine.low %v4593_v10, %v4547_v27  ;;  %4231 = vrot.lane.b32.xlu0 %v7435_v31, %s5410_s25  ;;  %v4403_v10 = vsel %vm1144_vm7, %v4379_v42, %v7796_v56 }
 0x400   : > { %v4034_v35 = vpop.permute.xlu1 %4033 }
 0x401   : > { %5211 = vmatprep.mubr.msk.f32.mxu1 %vm4638_vm1, %v4622_v52  ;;  %v3941_v19 = vpop.permute.xlu0 %3940 }
 0x402   : > { %4055 = vrot.lane.b32.xlu1 %v7410_v6, %s5408_s11  ;;  %5212 = vmatmul.mubr.msk.f32.gmra.mrb[18].mxu1 %vm4638_vm1, %v4623_v30 }
 0x403   : > { %3782 = vrot.lane.b32.xlu0 %v7410_v6, %s5399_s13 }
 0x404   : > { %v7990_v26 = vpop.permute.xlu1 %3942 }
 0x405   : > { %v4133_v12 = vpop.permute.xlu0 %4132 }
 0x406   : > { %4229 = vrot.lane.b32.xlu1 %v7379_v15, %s5410_s25 }
 0x407   : > { %4150 = vrot.lane.b32.xlu0 %v7397_v40, %s5409_s23 }
 0x408   : > { %v4131_v31 = vpop.permute.xlu1 %4130 }
 0x409   : > { %v4038_v38 = vpop.permute.xlu0 %4037 }
 0x40a   : > { %3877 = vrot.lane.b32.xlu1 %v7397_v40, %s5403_s8 }
 0x40b   : > { %4328 = vrot.lane.b32.xlu0 %v7410_v6, %s5411_s10  ;;  %v4377_v6 = vsel %vm1086_vm5, %v7076_v1, %v7694_v57 }
 0x40c   : > { %v8000_v55 = vpop.permute.xlu1 %4039  ;;  %v4401_v3 = vsel %vm1144_vm7, %v4377_v6, %v7788_v25  ;;  %v4475_v25 = vsel %vm4468_vm13, %v4450_v37, %v4036_v62  ;;  %v8887_v62 = vld [vmem:[#allocation33_spill] sm:$0xff] }
 0x40d   : > { %v4216_v28 = vpop.permute.xlu0 %4215  ;;  %v4425_v1 = vsel %vm1202_vm9, %v4401_v3, %v7931_v4  ;;  %v4500_v2 = vsel %vm4493_vm14, %v4475_v25, %v4133_v12  ;;  %v8888_v54 = vcombine.low %v7277_v11, %v8887_v62  ;;  %v4427_v11 = vsel %vm1202_vm9, %v4403_v10, %v7948_v29  ;;  %v8893_v25 = vld [vmem:[#allocation54_spill] sm:$0xff] }
 0x40e   : > { %4152 = vrot.lane.b32.xlu1 %v7312_v45, %s5409_s23  ;;  %v4525_v4 = vsel %vm4518_vm15, %v4500_v2, %v4216_v28  ;;  %v4451_v7 = vsel %vm1260_vm11, %v4427_v11, %v3941_v19  ;;  %v4380_v19 = vsel %vm1086_vm5, %v8839_v21, %v7712_v44 }
 0x40f   : > { %3879 = vrot.lane.b32.xlu0 %v7312_v45, %s5403_s8  ;;  %v4476_v52 = vsel %vm4468_vm13, %v4451_v7, %v4038_v38 }
 0x410   : > { %v4214_v15 = vpop.permute.xlu1 %4213 }
 0x411   : > { %v4135_v59 = vpop.permute.xlu0 %4134 }
 0x412   : > { %4326 = vrot.lane.b32.xlu1 %v3670_v48, %s5411_s10  ;;  %v3695_v48 = vrot.slane %v8888_v54, %v6425_v60  ;;  %v4501_v33 = vsel %vm4493_vm14, %v4476_v52, %v4135_v59  ;;  %v8889_v59 = vld [vmem:[#allocation14_spill] sm:$0xff]  ;;  %v8896_v54 = vld [vmem:[#allocation52_spill] sm:$0xff] }
 0x413   : > { %4233 = vrot.lane.b32.xlu0 %v7424_v22, %s5410_s25 }
 0x414   : > { %v8009_v16 = vpop.permute.xlu1 %3861 }
 0x415   : > { %v4313_v43 = vpop.permute.xlu0 %4312 }
 0x416   : > { %3960 = vrot.lane.b32.xlu1 %v7424_v22, %s5406_s14  ;;  %v4449_v22 = vsel %vm1260_vm11, %v4425_v1, %v3937_v36  ;;  %v4550_v20 = vsel %vm4543_vm0, %v4525_v4, %v4313_v43 }
 0x417   : > { %3786 = vrot.lane.b32.xlu0 %v8886_v49, %s5399_s13  ;;  %v4474_v18 = vsel %vm4468_vm13, %v4449_v22, %v4034_v35  ;;  %v4595_v8 = vcombine.high %v4550_v20, %v4550_v20  ;;  %v8892_v22 = vld [vmem:[#allocation32_spill] sm:$0xff] }
 0x418   : > { %v4137_v57 = vpop.permute.xlu1 %4136  ;;  %v4499_v9 = vsel %vm4493_vm14, %v4474_v18, %v4131_v31  ;;  %v4404_v31 = vsel %vm1144_vm7, %v4380_v19, %v7806_v46  ;;  %v8894_v18 = vcombine.low %v8892_v22, %v8893_v25  ;;  %v8900_v19 = vld [vmem:[#allocation15_spill] sm:$0xff] }
 0x419   : > { %v8032_v50 = vpop.permute.xlu0 %3863  ;;  %v4524_v0 = vsel %vm4518_vm15, %v4499_v9, %v4214_v15  ;;  %v4428_v38 = vsel %vm1202_vm9, %v4404_v31, %v7977_v14  ;;  %v8909_v25 = vld [vmem:[#allocation59_spill] sm:$0xff] }
 0x41a   : > { %4235 = vrot.lane.b32.xlu1 %v7448_v13, %s5410_s25  ;;  %v4452_v15 = vsel %vm1260_vm11, %v4428_v38, %v7990_v26  ;;  %v3720_v2 = vrot.slane %v8894_v18, %v6425_v60 }
 0x41b   : > { %3962 = vrot.lane.b32.xlu0 %v7448_v13, %s5406_s14  ;;  %v4477_v44 = vsel %vm4468_vm13, %v4452_v15, %v8000_v55  ;;  %v8903_v15 = vld [vmem:[#allocation67_spill] sm:$0xff] }
 0x41c   : > { %v4311_v36 = vpop.permute.xlu1 %4310  ;;  %v4502_v46 = vsel %vm4493_vm14, %v4477_v44, %v4137_v57 }
 0x41d   : > { %v4549_v39 = vsel %vm4543_vm0, %v4524_v0, %v4311_v36  ;;  %v4218_v61 = vpop.permute.xlu0 %4217  ;;  %v8895_v36 = vld [vmem:[#allocation20_spill] sm:$0xff] }
 0x41e   : > { %v4624_v13 = vcombine.low %v4549_v39, %v4550_v20  ;;  %3784 = vrot.lane.b32.xlu1 %v3695_v48, %s5399_s13  ;;  %v4526_v56 = vsel %vm4518_vm15, %v4501_v33, %v4218_v61  ;;  %v4381_v62 = vsel %vm1086_vm5, %v8895_v36, %v7710_v51  ;;  %v8897_v20 = vld [vmem:[#allocation39_spill] sm:$0xff]  ;;  %v8910_v36 = vld [vmem:[#allocation18_spill] sm:$0xff] }
 0x41f   : > { %4330 = vrot.lane.b32.xlu0 %v3695_v48, %s5411_s10  ;;  %v8898_v39 = vld [vmem:[#allocation31_spill] sm:$0xff] }
 0x420   : > { %v3947_v58 = vpop.permute.xlu1 %3946  ;;  %5214 = vmatprep.mubr.msk.f32.mxu1 %vm4638_vm1, %v4624_v13  ;;  %v4405_v61 = vsel %vm1144_vm7, %v4381_v62, %v8898_v39  ;;  %v8911_v62 = vld [vmem:[#allocation24_spill] sm:$0xff] }
 0x421   : > { %v3945_v27 = vpop.permute.xlu0 %3944 }
 0x422   : > { %4057 = vrot.lane.b32.xlu1 %v3695_v48, %s5408_s11 }
 0x423   : > { %3883 = vrot.lane.b32.xlu0 %v7416_v24, %s5403_s8 }
 0x424   : > { %v4315_v30 = vpop.permute.xlu1 %4314 }
 0x425   : > { %v4551_v29 = vsel %vm4543_vm0, %v4526_v56, %v4315_v30  ;;  %v4220_v35 = vpop.permute.xlu0 %4219  ;;  %v8899_v30 = vld [vmem:[#allocation22_spill] sm:$0xff] }
 0x426   : > { %v4625_v12 = vcombine.low %v4595_v8, %v4551_v29  ;;  %4332 = vrot.lane.b32.xlu1 %v8886_v49, %s5411_s10  ;;  %v4527_v14 = vsel %vm4518_vm15, %v4502_v46, %v4220_v35 }
 0x427   : > { %4059 = vrot.lane.b32.xlu0 %v8886_v49, %s5408_s11  ;;  %v8890_v49 = vld [vmem:[#allocation44_spill] sm:$0xff] }
 0x428   : > { %v4042_v28 = vpop.permute.xlu1 %4041  ;;  %5215 = vmatmul.mubr.msk.f32.gmra.mrb[20].mxu1 %vm4638_vm1, %v4625_v12  ;;  %v8901_v12 = vld [vmem:[#allocation35_spill] sm:$0xff] }
 0x429   : > { %v8082_v21 = vpop.permute.xlu0 %3867  ;;  %v8902_v31 = vcombine.low %v8900_v19, %v8901_v12  ;;  %v8918_v12 = vld [vmem:[#allocation19_spill] sm:$0xff] }
 0x42a   : > { %3966 = vrot.lane.b32.xlu1 %v7460_v17, %s5406_s14 }
 0x42b   : > { %3881 = vrot.lane.b32.xlu0 %v8889_v59, %s5403_s8  ;;  %v3745_v38 = vrot.slane %v8902_v31, %v6425_v60 }
 0x42c   : > { %v4317_v43 = vpop.permute.xlu1 %4316 }
 0x42d   : > { %v4552_v6 = vsel %vm4543_vm0, %v4527_v14, %v4317_v43  ;;  %v4044_v23 = vpop.permute.xlu0 %4043 }
 0x42e   : > { %v4596_v26 = vcombine.high %v4552_v6, %v4552_v6  ;;  %4156 = vrot.lane.b32.xlu1 %v7416_v24, %s5409_s23 }
 0x42f   : > { %4154 = vrot.lane.b32.xlu0 %v8889_v59, %s5409_s23 }
 0x430   : > { %v4626_v55 = vcombine.low %v4552_v6, %v4596_v26  ;;  %v8097_v3 = vpop.permute.xlu1 %3950  ;;  %v8904_v6 = vld [vmem:[#allocation68_spill] sm:$0xff] }
 0x431   : > { %v8099_v32 = vpop.permute.xlu0 %3865 }
 0x432   : > { %4063 = vrot.lane.b32.xlu1 %v8890_v49, %s5408_s11  ;;  %5217 = vmatprep.mubr.msk.f32.mxu1 %vm4638_vm1, %v4626_v55 }
 0x433   : > { %3964 = vrot.lane.b32.xlu0 %v8891_v63, %s5406_s14 }
 0x434   : > { %v4141_v1 = vpop.permute.xlu1 %4140 }
 0x435   : > { %v4139_v57 = vpop.permute.xlu0 %4138 }
 0x436   : > { %4239 = vrot.lane.b32.xlu1 %v7460_v17, %s5410_s25  ;;  %v4382_v17 = vsel %vm1086_vm5, %v8851_v5, %v7720_v41  ;;  %v4429_v5 = vsel %vm1202_vm9, %v4405_v61, %v8009_v16  ;;  %v8913_v61 = vld [vmem:[#allocation65_spill] sm:$0xff] }
 0x437   : > { %4237 = vrot.lane.b32.xlu0 %v8891_v63, %s5410_s25  ;;  %v4406_v48 = vsel %vm1144_vm7, %v4382_v17, %v8896_v54  ;;  %v4453_v51 = vsel %vm1260_vm11, %v4429_v5, %v3945_v27  ;;  %v8907_v63 = vld [vmem:[#allocation62_spill] sm:$0xff]  ;;  %v4383_v54 = vsel %vm1086_vm5, %v8911_v62, %v8910_v36 }
 0x438   : > { %v4048_v37 = vpop.permute.xlu1 %4047  ;;  %v4430_v42 = vsel %vm1202_vm9, %v4406_v48, %v8032_v50  ;;  %v4478_v7 = vsel %vm4468_vm13, %v4453_v51, %v4042_v28 }
 0x439   : > { %v8114_v9 = vpop.permute.xlu0 %3948  ;;  %v4454_v41 = vsel %vm1260_vm11, %v4430_v42, %v3947_v58  ;;  %v4503_v50 = vsel %vm4493_vm14, %v4478_v7, %v4139_v57  ;;  %v8908_v57 = vld [vmem:[#allocation25_spill] sm:$0xff]  ;;  %v8915_v7 = vld [vmem:[#allocation46_spill] sm:$0xff] }
 0x43a   : > { %4061 = vrot.lane.b32.xlu1 %v3720_v2, %s5408_s11  ;;  %v4479_v11 = vsel %vm4468_vm13, %v4454_v41, %v4044_v23  ;;  %v8905_v23 = vld [vmem:[#allocation56_spill] sm:$0xff] }
 0x43b   : > { %3790 = vrot.lane.b32.xlu0 %v8890_v49, %s5399_s13  ;;  %v4504_v52 = vsel %vm4493_vm14, %v4479_v11, %v4141_v1 }
 0x43c   : > { %v4224_v4 = vpop.permute.xlu1 %4223 }
 0x43d   : > { %v4222_v0 = vpop.permute.xlu0 %4221  ;;  %v4529_v16 = vsel %vm4518_vm15, %v4504_v52, %v4224_v4 }
 0x43e   : > { %4334 = vrot.lane.b32.xlu1 %v3720_v2, %s5411_s10  ;;  %v4528_v58 = vsel %vm4518_vm15, %v4503_v50, %v4222_v0 }
 0x43f   : > { %4160 = vrot.lane.b32.xlu0 %v8897_v20, %s5409_s23 }
 0x440   : > { %v4145_v13 = vpop.permute.xlu1 %4144 }
 0x441   : > { %v4046_v10 = vpop.permute.xlu0 %4045 }
 0x442   : > { %3788 = vrot.lane.b32.xlu1 %v3720_v2, %s5399_s13 }
 0x443   : > { %4336 = vrot.lane.b32.xlu0 %v8890_v49, %s5411_s10  ;;  %v8906_v49 = vld [vmem:[#allocation37_spill] sm:$0xff] }
 0x444   : > { %v4321_v33 = vpop.permute.xlu1 %4320  ;;  %v4384_v1 = vsel %vm1086_vm5, %v8907_v63, %v8906_v49  ;;  %v8922_v49 = vld [vmem:[#allocation26_spill] sm:$0xff] }
 0x445   : > { %v4554_v27 = vsel %vm4543_vm0, %v4529_v16, %v4321_v33  ;;  %v4319_v8 = vpop.permute.xlu0 %4318  ;;  %v4408_v22 = vsel %vm1144_vm7, %v4384_v1, %v8908_v57  ;;  %v8923_v1 = vld [vmem:[#allocation70_spill] sm:$0xff]  ;;  %v8924_v57 = vld [vmem:[#allocation61_spill] sm:$0xff] }
 0x446   : > { %v4553_v56 = vsel %vm4543_vm0, %v4528_v58, %v4319_v8  ;;  %4158 = vrot.lane.b32.xlu1 %v8899_v30, %s5409_s23  ;;  %v4432_v18 = vsel %vm1202_vm9, %v4408_v22, %v8082_v21  ;;  %v8912_v21 = vld [vmem:[#allocation10_spill] sm:$0xff]  ;;  %v4597_v33 = vcombine.high %v4554_v27, %v4554_v27  ;;  %v4292_v22 = vcombine.low %v8924_v57, %v8923_v1 }
 0x447   : > { %v4627_v29 = vcombine.low %v4553_v56, %v4554_v27  ;;  %3887 = vrot.lane.b32.xlu0 %v8897_v20, %s5403_s8  ;;  %v4456_v4 = vsel %vm1260_vm11, %v4432_v18, %v8097_v3  ;;  %v4407_v20 = vsel %vm1144_vm7, %v4383_v54, %v8912_v21  ;;  %v8919_v27 = vld [vmem:[#allocation38_spill] sm:$0xff] }
 0x448   : > { %v4143_v35 = vpop.permute.xlu1 %4142  ;;  %v4481_v17 = vsel %vm4468_vm13, %v4456_v4, %v4048_v37  ;;  %v8914_v37 = vld [vmem:[#allocation49_spill] sm:$0xff]  ;;  %v4431_v5 = vsel %vm1202_vm9, %v4407_v20, %v8099_v32  ;;  %v4299_v54 = vrot.slane %v4292_v22, %v6425_v60 }
 0x449   : > { %5218 = vmatmul.mubr.msk.f32.gmra.mrb[22].mxu1 %vm4638_vm1, %v4627_v29  ;;  %v8158_v28 = vpop.permute.xlu0 %3871  ;;  %v4506_v48 = vsel %vm4493_vm14, %v4481_v17, %v4145_v13  ;;  %v4015_v42 = vcombine.low %v8914_v37, %v8913_v61  ;;  %v4455_v13 = vsel %vm1260_vm11, %v4431_v5, %v8114_v9  ;;  %v8927_v5 = vld [vmem:[#allocation50_spill] sm:$0xff] }
 0x44a   : > { %3792 = vrot.lane.b32.xlu1 %v3745_v38, %s5399_s13  ;;  %v4480_v11 = vsel %vm4468_vm13, %v4455_v13, %v4046_v10  ;;  %v8916_v10 = vld [vmem:[#allocation34_spill] sm:$0xff] }
 0x44b   : > { %4243 = vrot.lane.b32.xlu0 %v8903_v15, %s5410_s25  ;;  %v4505_v52 = vsel %vm4493_vm14, %v4480_v11, %v4143_v35  ;;  %v4022_v32 = vrot.slane %v4015_v42, %v6425_v60  ;;  %v8917_v35 = vld [vmem:[#allocation13_spill] sm:$0xff] }
 0x44c   : > { %v8163_v44 = vpop.permute.xlu1 %3776  ;;  %v4276_v31 = vcombine.low %v8918_v12, %v8917_v35  ;;  %v8929_v11 = vld [vmem:[#allocation69_spill] sm:$0xff] }
 0x44d   : > { %v4228_v46 = vpop.permute.xlu0 %4227 }
 0x44e   : > { %3970 = vrot.lane.b32.xlu1 %v8903_v15, %s5406_s14  ;;  %v4531_v3 = vsel %vm4518_vm15, %v4506_v48, %v4228_v46  ;;  %v8920_v15 = vld [vmem:[#allocation51_spill] sm:$0xff]  ;;  %v8921_v46 = vld [vmem:[#allocation58_spill] sm:$0xff] }
 0x44f   : > { %3885 = vrot.lane.b32.xlu0 %v8899_v30, %s5403_s8 }
 0x450   : > { %v8169_v14 = vpop.permute.xlu1 %3954 }
 0x451   : > { %v8171_v43 = vpop.permute.xlu0 %3869 }
 0x452   : > { %4340 = vrot.lane.b32.xlu1 %v8904_v6, %s5411_s10 }
 0x453   : > { %4241 = vrot.lane.b32.xlu0 %v8905_v23, %s5410_s25 }
 0x454   : > { %v4325_v26 = vpop.permute.xlu1 %4324 }
 0x455   : > { %v4226_v55 = vpop.permute.xlu0 %4225  ;;  %v4556_v41 = vsel %vm4543_vm0, %v4531_v3, %v4325_v26 }
 0x456   : > { %3968 = vrot.lane.b32.xlu1 %v8905_v23, %s5406_s14  ;;  %v4598_v50 = vcombine.high %v4556_v41, %v4556_v41  ;;  %v4530_v58 = vsel %vm4518_vm15, %v4505_v52, %v4226_v55  ;;  %v4290_v55 = vrot.slane %v4276_v31, %v6425_v60  ;;  %v8931_v52 = vld [vmem:[#allocation21_spill] sm:$0xff] }
 0x457   : > { %3889 = vrot.lane.b32.xlu0 %v8909_v25, %s5403_s8 }
 0x458   : > { %v8188_v2 = vpop.permute.xlu1 %3873  ;;  %v4629_v29 = vcombine.low %v4556_v41, %v4598_v50  ;;  %v8928_v41 = vld [vmem:[#allocation63_spill] sm:$0xff] }
 0x459   : > { %v8192_v0 = vpop.permute.xlu0 %3778  ;;  %v4385_v13 = vsel %vm1086_vm5, %v8928_v41, %v8927_v5 }
 0x45a   : > { %4338 = vrot.lane.b32.xlu1 %v3745_v38, %s5411_s10  ;;  %v4409_v50 = vsel %vm1144_vm7, %v4385_v13, %v8931_v52 }
 0x45b   : > { %4067 = vrot.lane.b32.xlu0 %v8904_v6, %s5408_s11  ;;  %v4275_v6 = vcombine.low %v8921_v46, %v8920_v15 }
 0x45c   : > { %v8205_v39 = vpop.permute.xlu1 %4051 }
 0x45d   : > { %v3953_v51 = vpop.permute.xlu0 %3952  ;;  %v4283_v63 = vrot.slane %v4275_v6, %v6425_v60 }
 0x45e   : > { %4065 = vrot.lane.b32.xlu1 %v3745_v38, %s5408_s11 }
 0x45f   : > { %3972 = vrot.lane.b32.xlu0 %v8915_v7, %s5406_s14  ;;  %v4291_v17 = vcombine.low %v4283_v63, %v4290_v55  ;;  %s215_s14 = sand.u32 1, %s5386_s19  }
 0x460   : > { %v8219_v16 = vpop.permute.xlu1 %3875  ;;  %s4915_s7 = scalar_lea.sflag [#allocation3], %s215_s14 }
 0x461   : > { %v4323_v8 = vpop.permute.xlu0 %4322 }
 0x462   : > { %v4555_v9 = vsel %vm4543_vm0, %v4530_v58, %v4323_v8  ;;  %4069 = vrot.lane.b32.xlu1 %v4022_v32, %s5408_s11  ;;  %v4433_v8 = vsel %vm1202_vm9, %v4409_v50, %v8171_v43  ;;  %s4992_s11 = sshll.u32 %s215_s14, 4 }
 0x463   : > { %v4628_v56 = vcombine.low %v4597_v33, %v4555_v9  ;;  %4164 = vrot.lane.b32.xlu0 %v8916_v10, %s5409_s23  ;;  %v4457_v10 = vsel %vm1260_vm11, %v4433_v8, %v3953_v51 }
 0x464   : > { %v4050_v19 = vpop.permute.xlu1 %4049 }
 0x465   : > { %5220 = vmatprep.mubr.msk.f32.mxu1 %vm4638_vm1, %v4628_v56  ;;  %v3957_v38 = vpop.permute.xlu0 %3956  ;;  %v4482_v12 = vsel %vm4468_vm13, %v4457_v10, %v4050_v19  ;;  %v8933_v19 = vld [vmem:[#allocation60_spill] sm:$0xff] }
 0x466   : > { %4247 = vrot.lane.b32.xlu1 %v8919_v27, %s5410_s25  ;;  %5221 = vmatmul.mubr.msk.f32.gmra.mrb[24].mxu1 %vm4638_vm1, %v4629_v29 }
 0x467   : > { %4162 = vrot.lane.b32.xlu0 %v8909_v25, %s5409_s23  ;;  %v8925_v25 = vld [vmem:[#allocation41_spill] sm:$0xff] }
 0x468   : > { %v8237_v23 = vpop.permute.xlu1 %3958  ;;  %v8926_v36 = vrot.slane %v8925_v25, 1 }
 0x469   : > { %v4149_v26 = vpop.permute.xlu0 %4148 }
 0x46a   : > { %4245 = vrot.lane.b32.xlu1 %v8915_v7, %s5410_s25  ;;  %v8930_v7 = vld [vmem:[#allocation6_spill] sm:$0xff] }
 0x46b   : > { %4166 = vrot.lane.b32.xlu0 %v8922_v49, %s5409_s23  ;;  %v4386_v60 = vsel %vm1086_vm5, %v8930_v7, %v8929_v11  ;;  %s217_s23 = scalar_lea.vmem [#allocation2], %s4992_s11 }
 0x46c   : > { %v4147_v18 = vpop.permute.xlu1 %4146 }
 0x46d   : > { %v4054_v4 = vpop.permute.xlu0 %4053  ;;  %v4507_v27 = vsel %vm4493_vm14, %v4482_v12, %v4147_v18  ;;  %v8936_v12 = vld [vmem:[#allocation23_spill] sm:$0xff] }
 0x46e   : > { %4249 = vrot.lane.b32.xlu1 %v8926_v36, %s5410_s25  ;;  %s5047_s25 = sshll.u32 %s5464_s22, 8  ;;  %s5412_s22 = smov [#allocation2]  }
 0x46f   : > { %4344 = vrot.lane.b32.xlu0 %v4291_v17, %s5411_s10  ;;  %s8432_s6 = scalar_lea.hbm %s8480_s5, %s5047_s25  ;;  %s5336_s9 = sshll.u32 %s5412_s22, 4  ;;  %s5337_s9 = int_to_ptr.vmem [resolvable:$false] %s5336_s9 }
 0x470   : > { %v8251_v62 = vpop.permute.xlu1 %3780  ;;  %s5338_s15 = scalar_lea.vmem %s5337_s9, 512 }
 0x471   : > { %v4232_v48 = vpop.permute.xlu0 %4231 }
 0x472   : > { %4346 = vrot.lane.b32.xlu1 %v4299_v54, %s5411_s10 }
 0x473   : > { %4342 = vrot.lane.b32.xlu0 %v4022_v32, %s5411_s10  ;;  %v8932_v32 = vld [vmem:[#allocation53_spill] sm:$0xff]  ;;  %s4929_s10 = sshll.u32 %s217_s23, 4  ;;  %s8434_s10 = int_to_ptr.vmem [resolvable:$true] %s4929_s10 }
 0x474   : > { %v4056_v21 = vpop.permute.xlu1 %4055  ;;  %v4410_v33 = vsel %vm1144_vm7, %v4386_v60, %v8932_v32  ;;  %s5332_s12 = scalar_lea.vmem %s8434_s10, 256  ;;  %p5339_p0 = scmp.lt.s32.totalorder %s8434_s10, %s5337_s9 }
 0x475   : > { %v8256_v20 = vpop.permute.xlu0 %3782  ;;  %v4434_v58 = vsel %vm1202_vm9, %v4410_v33, %v8158_v28  ;;  %p5333_p11 = scmp.ne.s32.totalorder %s8434_s10, %s5332_s12  ;;  %p5340_p1 = scmp.lt.s32.totalorder %s5338_s15, %s5332_s12 }
 0x476   : > { %v4458_v56 = vsel %vm1260_vm11, %v4434_v58, %v8169_v14 }
 0x477   : > { %v4483_v35 = vsel %vm4468_vm13, %v4458_v56, %v8205_v39  ;;  %p5334_p12 = pnand %p5333_p11, %p5481_p5  ;;  %p5341_p2 = por %p5340_p1, %p5339_p0 }
 0x478   : > { %v4230_v3 = vpop.permute.xlu1 %4229  ;;  %v4508_v31 = vsel %vm4493_vm14, %v4483_v35, %v4149_v26  ;;  %v4387_v26 = vsel %vm1086_vm5, %v8875_v47, %v8933_v19 }
 0x479   : > { %v4151_v61 = vpop.permute.xlu0 %4150  ;;  %v4533_v28 = vsel %vm4518_vm15, %v4508_v31, %v4232_v48  ;;  %v4532_v43 = vsel %vm4518_vm15, %v4507_v27, %v4230_v3  ;;  %v4411_v49 = vsel %vm1144_vm7, %v4387_v26, %v8163_v44  ;;  %v8934_v48 = vld [vmem:[#allocation40_spill] sm:$0xff]  ;;  %v8935_v3 = vld [vmem:[#allocation7_spill] sm:$0xff]  ;;  %v4389_v31 = vsel %vm1086_vm5, %v8882_v53, %v8936_v12  ;;  %p5335_p13 = pneg %p5334_p12 }
 0x47a   : > { %v4435_v1 = vsel %vm1202_vm9, %v4411_v49, %v8188_v2  ;;  %v4388_v44 = vsel %vm1086_vm5, %v8935_v3, %v8934_v48  ;;  %v8937_v27 = vld [vmem:[#allocation43_spill] sm:$0xff] }
 0x47b   : > { %v4459_v22 = vsel %vm1260_vm11, %v4435_v1, %v3957_v38  ;;  %v4412_v2 = vsel %vm1144_vm7, %v4388_v44, %v8192_v0  ;;  %p5342_p3 = pnand %p5341_p2, %p5335_p13 }
 0x47c   : > { %v8258_v37 = vpop.permute.xlu1 %3877  ;;  %v4484_v18 = vsel %vm4468_vm13, %v4459_v22, %v4054_v4  ;;  %v4436_v4 = vsel %vm1202_vm9, %v4412_v2, %v8219_v16 }
 0x47d   : > { %v4329_v42 = vpop.permute.xlu0 %4328  ;;  %v4509_v17 = vsel %vm4493_vm14, %v4484_v18, %v4151_v61  ;;  %v4460_v5 = vsel %vm1260_vm11, %v4436_v4, %v8237_v23 }
 0x47e   : > { %v4558_v46 = vsel %vm4543_vm0, %v4533_v28, %v4329_v42  ;;  %v4485_v13 = vsel %vm4468_vm13, %v4460_v5, %v4056_v21  ;;  %v4390_v28 = vsel %vm1086_vm5, %v7394_v34, %v8937_v27 }
 0x47f   : > { %v4599_v36 = vcombine.high %v4558_v46, %v4558_v46 }
 0x480   : > { %v4153_v9 = vpop.permute.xlu1 %4152 }
 0x481   : > { %v3880_v29 = vpop.permute.xlu0 %3879  ;;  %v4510_v11 = vsel %vm4493_vm14, %v4485_v13, %v4153_v9 }
 0x484   : > { %v4327_v15 = vpop.permute.xlu1 %4326 }
 0x485   : > { %v4557_v14 = vsel %vm4543_vm0, %v4532_v43, %v4327_v15  ;;  %v4234_v51 = vpop.permute.xlu0 %4233  ;;  %v4413_v43 = vsel %vm1144_vm7, %v4389_v31, %v8251_v62  ;;  %v4414_v15 = vsel %vm1144_vm7, %v4390_v28, %v8256_v20 }
 0x486   : > { %v4630_v6 = vcombine.low %v4557_v14, %v4558_v46  ;;  %v4534_v54 = vsel %vm4518_vm15, %v4509_v17, %v4234_v51  ;;  %v4437_v14 = vsel %vm1202_vm9, %v4413_v43, %v8258_v37  ;;  %v4438_v51 = vsel %vm1202_vm9, %v4414_v15, %v3880_v29  ;;  %v8349_v17 = vld [vmem:[%s8479_s4] ss:$0 sm:$0xff] }
 0x488   : > { %v3961_v55 = vpop.permute.xlu1 %3960  ;;  %5223 = vmatprep.mubr.msk.f32.mxu1 %vm4638_vm1, %v4630_v6 }
 0x489   : > { %v8287_v39 = vpop.permute.xlu0 %3786  ;;  %v4461_v19 = vsel %vm1260_vm11, %v4437_v14, %v3961_v55 }
 0x48c   : > { %v4236_v63 = vpop.permute.xlu1 %4235 }
 0x48d   : > { %v3963_v57 = vpop.permute.xlu0 %3962  ;;  %v4535_v7 = vsel %vm4518_vm15, %v4510_v11, %v4236_v63 }
 0x48e   : > { %v4462_v53 = vsel %vm1260_vm11, %v4438_v51, %v3963_v57 }
 0x490   : > { %v8299_v25 = vpop.permute.xlu1 %3784 }
 0x491   : > { %v4331_v47 = vpop.permute.xlu0 %4330 }
 0x492   : > { %v4559_v42 = vsel %vm4543_vm0, %v4534_v54, %v4331_v47 }
 0x493   : > { %v4631_v38 = vcombine.low %v4599_v36, %v4559_v42 }
 0x494   : > { %v4058_v61 = vpop.permute.xlu1 %4057 }
 0x495   : > { %5224 = vmatmul.mubr.msk.f32.gmra.mrb[26].mxu1 %vm4638_vm1, %v4631_v38  ;;  %v3884_v41 = vpop.permute.xlu0 %3883  ;;  %v4486_v26 = vsel %vm4468_vm13, %v4461_v19, %v4058_v61  ;;  %v8938_v38 = vld [vmem:[#allocation42_spill] sm:$0xff] }
 0x496   : > { %v4392_v4 = vsel %vm1086_vm5, %v7312_v45, %v8938_v38 }
 0x497   : > { %v4416_v5 = vsel %vm1144_vm7, %v4392_v4, %v8287_v39 }
 0x498   : > { %v4333_v60 = vpop.permute.xlu1 %4332  ;;  %v4440_v13 = vsel %vm1202_vm9, %v4416_v5, %v3884_v41 }
 0x499   : > { %v4560_v0 = vsel %vm4543_vm0, %v4535_v7, %v4333_v60  ;;  %v4060_v52 = vpop.permute.xlu0 %4059 }
 0x49a   : > { %v4600_v50 = vcombine.high %v4560_v0, %v4560_v0  ;;  %v4487_v34 = vsel %vm4468_vm13, %v4462_v53, %v4060_v52 }
 0x49c   : > { %v4632_v32 = vcombine.low %v4560_v0, %v4600_v50  ;;  %v3967_v16 = vpop.permute.xlu1 %3966  ;;  %v8939_v50 = vld [vmem:[#allocation28_spill] sm:$0xff] }
 0x49d   : > { %v3882_v33 = vpop.permute.xlu0 %3881  ;;  %v4464_v11 = vsel %vm1260_vm11, %v4440_v13, %v3967_v16 }
 0x49e   : > { %5226 = vmatprep.mubr.msk.f32.mxu1 %vm4638_vm1, %v4632_v32  ;;  %v4391_v32 = vsel %vm1086_vm5, %v7397_v40, %v8939_v50 }
 0x49f   : > { %v4415_v39 = vsel %vm1144_vm7, %v4391_v32, %v8299_v25 }
 0x4a0   : > { %v4157_v23 = vpop.permute.xlu1 %4156  ;;  %v4439_v41 = vsel %vm1202_vm9, %v4415_v39, %v3882_v33 }
 0x4a1   : > { %v4155_v58 = vpop.permute.xlu0 %4154  ;;  %v4512_v62 = vsel %vm4493_vm14, %v4487_v34, %v4157_v23 }
 0x4a2   : > { %v4511_v49 = vsel %vm4493_vm14, %v4486_v26, %v4155_v58 }
 0x4a4   : > { %v4064_v8 = vpop.permute.xlu1 %4063 }
 0x4a5   : > { %v3965_v56 = vpop.permute.xlu0 %3964  ;;  %v4489_v0 = vsel %vm4468_vm13, %v4464_v11, %v4064_v8 }
 0x4a6   : > { %v4463_v8 = vsel %vm1260_vm11, %v4439_v41, %v3965_v56 }
 0x4a8   : > { %v4240_v10 = vpop.permute.xlu1 %4239 }
 0x4a9   : > { %v4238_v21 = vpop.permute.xlu0 %4237  ;;  %v4537_v63 = vsel %vm4518_vm15, %v4512_v62, %v4240_v10 }
 0x4aa   : > { %v4536_v37 = vsel %vm4518_vm15, %v4511_v49, %v4238_v21  ;;  %v8940_v49 = vld [vmem:[#allocation17_spill] sm:$0xff] }
 0x4ac   : > { %v4062_v35 = vpop.permute.xlu1 %4061 }
 0x4ad   : > { %v8318_v9 = vpop.permute.xlu0 %3790  ;;  %v4488_v21 = vsel %vm4468_vm13, %v4463_v8, %v4062_v35 }
 0x4b0   : > { %v4335_v46 = vpop.permute.xlu1 %4334 }
 0x4b1   : > { %v4161_v6 = vpop.permute.xlu0 %4160  ;;  %v4561_v1 = vsel %vm4543_vm0, %v4536_v37, %v4335_v46 }
 0x4b2   : > { %v4514_v45 = vsel %vm4493_vm14, %v4489_v0, %v4161_v6 }
 0x4b4   : > { %v8339_v20 = vpop.permute.xlu1 %3788 }
 0x4b5   : > { %v4337_v29 = vpop.permute.xlu0 %4336 }
 0x4b6   : > { %v4562_v55 = vsel %vm4543_vm0, %v4537_v63, %v4337_v29  ;;  %v4394_v63 = vsel %vm1086_vm5, %v7416_v24, %v8940_v49 }
 0x4b7   : > { %v4633_v57 = vcombine.low %v4561_v1, %v4562_v55  ;;  %v4601_v31 = vcombine.high %v4562_v55, %v4562_v55  ;;  %v4418_v37 = vsel %vm1144_vm7, %v4394_v63, %v8318_v9 }
 0x4b8   : > { %v4159_v22 = vpop.permute.xlu1 %4158 }
 0x4b9   : > { %5227 = vmatmul.mubr.msk.f32.gmra.mrb[28].mxu1 %vm4638_vm1, %v4633_v57  ;;  %v3888_v18 = vpop.permute.xlu0 %3887  ;;  %v4513_v40 = vsel %vm4493_vm14, %v4488_v21, %v4159_v22  ;;  %v8941_v22 = vld [vmem:[#allocation29_spill] sm:$0xff] }
 0x4ba   : > { %v4442_v1 = vsel %vm1202_vm9, %v4418_v37, %v3888_v18 }
 0x4bc   : > { %v3793_v36 = vpop.permute.xlu1 %3792  ;;  %v5210_v54 = vpop.f32.mrb[16].mxu1 }
 0x4bd   : > { %v4741_v47 = vpop.f32.mrb[17].mxu1  ;;  %v4244_v48 = vpop.permute.xlu0 %4243  ;;  %v4747_v44 = vadd.f32 %v5210_v54, %v8349_v17  ;;  %v4395_v54 = vsel %vm1086_vm5, %v8899_v30, %v8941_v22 }
 0x4be   : > { %v4742_v3 = vadd.f32 %v8349_v17, %v4741_v47  ;;  %v4539_v23 = vsel %vm4518_vm15, %v4514_v45, %v4244_v48  ;;  %v8942_v48 = vld [vmem:[#allocation27_spill] sm:$0xff]  ;;  %v4419_v24 = vsel %vm1144_vm7, %v4395_v54, %v3793_v36 }
 0x4bf   : > { %v4831_v7 = vmax.f32 %v4747_v44, 0.0 }
 0x4c0   : > { %v4830_v42 = vmax.f32 %v4742_v3, 0.0  ;;  %v3971_v2 = vpop.permute.xlu1 %3970  ;;  %v4393_v3 = vsel %vm1086_vm5, %v8889_v59, %v8942_v48 }
 0x4c1   : > { %v3886_v61 = vpop.permute.xlu0 %3885  ;;  %v4466_v47 = vsel %vm1260_vm11, %v4442_v1, %v3971_v2  ;;  %v4417_v9 = vsel %vm1144_vm7, %v4393_v3, %v8339_v20 }
 0x4c2   : > { %4848 = vxpose.xlu0.b32.start [1/16] (narrow) %v4830_v42, 8  ;;  %v4441_v30 = vsel %vm1202_vm9, %v4417_v9, %v3886_v61 }
 0x4c4   : > { %v4341_v60 = vpop.permute.xlu1 %4340 }
 0x4c5   : > { %v4242_v52 = vpop.permute.xlu0 %4241  ;;  %v4564_v16 = vsel %vm4543_vm0, %v4539_v23, %v4341_v60 }
 0x4c6   : > { %4849 = vxpose.xlu0.b32.cont [2/16] (narrow) %v4831_v7, 8  ;;  %v4602_v12 = vcombine.high %v4564_v16, %v4564_v16  ;;  %v4538_v27 = vsel %vm4518_vm15, %v4513_v40, %v4242_v52 }
 0x4c8   : > { %v3969_v58 = vpop.permute.xlu1 %3968  ;;  %v4635_v33 = vcombine.low %v4564_v16, %v4602_v12 }
 0x4c9   : > { %v3890_v10 = vpop.permute.xlu0 %3889  ;;  %v4465_v36 = vsel %vm1260_vm11, %v4441_v30, %v3969_v58 }
 0x4ca   : > { %v4443_v18 = vsel %vm1202_vm9, %v4419_v24, %v3890_v10 }
 0x4cc   : > { %v4339_v28 = vpop.permute.xlu1 %4338 }
 0x4cd   : > { %v4563_v25 = vsel %vm4543_vm0, %v4538_v27, %v4339_v28  ;;  %v4068_v43 = vpop.permute.xlu0 %4067 }
 0x4ce   : > { %v4634_v15 = vcombine.low %v4601_v31, %v4563_v25  ;;  %v4491_v44 = vsel %vm4468_vm13, %v4466_v47, %v4068_v43 }
 0x4d0   : > { %v4066_v46 = vpop.permute.xlu1 %4065  ;;  %5229 = vmatprep.mubr.msk.f32.mxu1 %vm4638_vm1, %v4634_v15 }
 0x4d1   : > { %5230 = vmatmul.mubr.msk.f32.gmra.mrb[30].mxu1 %vm4638_vm1, %v4635_v33  ;;  %v3973_v56 = vpop.permute.xlu0 %3972  ;;  %v4490_v20 = vsel %vm4468_vm13, %v4465_v36, %v4066_v46 }
 0x4d2   : > { %v4467_v2 = vsel %vm1260_vm11, %v4443_v18, %v3973_v56 }
 0x4d4   : > { %v4070_v14 = vpop.permute.xlu1 %4069 }
 0x4d5   : > { %v5213_v35 = vpop.f32.mrb[18].mxu1  ;;  %v4165_v51 = vpop.permute.xlu0 %4164  ;;  %v4492_v5 = vsel %vm4468_vm13, %v4467_v2, %v4070_v14 }
 0x4d6   : > { %v4751_v6 = vpop.f32.mrb[19].mxu1  ;;  %v4757_v26 = vadd.f32 %v5213_v35, %v8349_v17  ;;  %v4516_v42 = vsel %vm4493_vm14, %v4491_v44, %v4165_v51 }
 0x4d7   : > { %v4752_v19 = vadd.f32 %v8349_v17, %v4751_v6 }
 0x4d8   : > { %v4248_v53 = vpop.permute.xlu1 %4247  ;;  %v4833_v55 = vmax.f32 %v4757_v26, 0.0 }
 0x4d9   : > { %v4832_v34 = vmax.f32 %v4752_v19, 0.0  ;;  %v4163_v62 = vpop.permute.xlu0 %4162  ;;  %v4541_v4 = vsel %vm4518_vm15, %v4516_v42, %v4248_v53 }
 0x4da   : > { %v4515_v7 = vsel %vm4493_vm14, %v4490_v20, %v4163_v62 }
 0x4db   : > { %4850 = vxpose.xlu0.b32.cont [3/16] (narrow) %v4832_v34, 8 }
 0x4dc   : > { %v4246_v29 = vpop.permute.xlu1 %4245 }
 0x4dd   : > { %v4167_v57 = vpop.permute.xlu0 %4166  ;;  %v4540_v52 = vsel %vm4518_vm15, %v4515_v7, %v4246_v29 }
 0x4de   : > { %v4517_v11 = vsel %vm4493_vm14, %v4492_v5, %v4167_v57 }
 0x4df   : > { %4851 = vxpose.xlu0.b32.cont [4/16] (narrow) %v4833_v55, 8 }
 0x4e0   : > { %v4250_v38 = vpop.permute.xlu1 %4249 }
 0x4e1   : > { %v4345_v59 = vpop.permute.xlu0 %4344  ;;  %v4542_v60 = vsel %vm4518_vm15, %v4517_v11, %v4250_v38 }
 0x4e2   : > { %v4566_v13 = vsel %vm4543_vm0, %v4541_v4, %v4345_v59 }
 0x4e3   : > { %v4603_v61 = vcombine.high %v4566_v13, %v4566_v13 }
 0x4e4   : > { %v4347_v0 = vpop.permute.xlu1 %4346 }
 0x4e5   : > { %v4567_v50 = vsel %vm4543_vm0, %v4542_v60, %v4347_v0  ;;  %v4343_v32 = vpop.permute.xlu0 %4342 }
 0x4e6   : > { %v4565_v45 = vsel %vm4543_vm0, %v4540_v52, %v4343_v32  ;;  %v4637_v23 = vcombine.low %v4603_v61, %v4567_v50 }
 0x4e7   : > { %v4636_v39 = vcombine.low %v4565_v45, %v4566_v13 }
 0x4e9   : > { %5232 = vmatprep.mubr.msk.f32.mxu1 %vm4638_vm1, %v4636_v39 }
 0x4ea   : > { %5233 = vmatmul.mubr.msk.f32.gmra.mrb[32].mxu1 %vm4638_vm1, %v4637_v23 }
 0x4fb   : > { %v5216_v41 = vpop.f32.mrb[20].mxu1 }
 0x4fc   : > { %v4761_v16 = vpop.f32.mrb[21].mxu1  ;;  %v4767_v8 = vadd.f32 %v5216_v41, %v8349_v17 }
 0x4fd   : > { %v4762_v58 = vadd.f32 %v8349_v17, %v4761_v16 }
 0x4fe   : > { %v4835_v21 = vmax.f32 %v4767_v8, 0.0 }
 0x4ff   : > { %v4834_v10 = vmax.f32 %v4762_v58, 0.0 }
 0x501   : > { %4852 = vxpose.xlu0.b32.cont [5/16] (narrow) %v4834_v10, 8 }
 0x505   : > { %4853 = vxpose.xlu0.b32.cont [6/16] (narrow) %v4835_v21, 8 }
 0x51c   : > { %v5219_v40 = vpop.f32.mrb[22].mxu1 }
 0x51d   : > { %v4771_v12 = vpop.f32.mrb[23].mxu1  ;;  %v4777_v27 = vadd.f32 %v5219_v40, %v8349_v17 }
 0x51e   : > { %v4772_v31 = vadd.f32 %v8349_v17, %v4771_v12 }
 0x51f   : > { %v4837_v25 = vmax.f32 %v4777_v27, 0.0 }
 0x520   : > { %v4836_v28 = vmax.f32 %v4772_v31, 0.0 }
 0x522   : > { %4854 = vxpose.xlu0.b32.cont [7/16] (narrow) %v4836_v28, 8 }
 0x526   : > { %4855 = vxpose.xlu0.b32.cont [8/16] (narrow) %v4837_v25, 8 }
 0x539   : > { %v5222_v43 = vpop.f32.mrb[24].mxu1 }
 0x53a   : > { %v4781_v15 = vpop.f32.mrb[25].mxu1  ;;  %v4787_v46 = vadd.f32 %v5222_v43, %v8349_v17 }
 0x53b   : > { %v4782_v33 = vadd.f32 %v8349_v17, %v4781_v15 }
 0x53c   : > { %v4839_v14 = vmax.f32 %v4787_v46, 0.0 }
 0x53d   : > { %v4838_v56 = vmax.f32 %v4782_v33, 0.0 }
 0x53f   : > { %4856 = vxpose.xlu0.b32.cont [9/16] (narrow) %v4838_v56, 8 }
 0x543   : > { %4857 = vxpose.xlu0.b32.cont [10/16] (narrow) %v4839_v14, 8 }
 0x568   : > { %v5225_v35 = vpop.f32.mrb[26].mxu1 }
 0x569   : > { %v4791_v51 = vpop.f32.mrb[27].mxu1  ;;  %v4797_v19 = vadd.f32 %v5225_v35, %v8349_v17 }
 0x56a   : > { %v4792_v6 = vadd.f32 %v8349_v17, %v4791_v51 }
 0x56b   : > { %v4841_v26 = vmax.f32 %v4797_v19, 0.0 }
 0x56c   : > { %v4840_v53 = vmax.f32 %v4792_v6, 0.0 }
 0x56e   : > { %4858 = vxpose.xlu0.b32.cont [11/16] (narrow) %v4840_v53, 8 }
 0x572   : > { %4859 = vxpose.xlu0.b32.cont [12/16] (narrow) %v4841_v26, 8 }
 0x58c   : > { %v5228_v34 = vpop.f32.mrb[28].mxu1 }
 0x58d   : > { %v4801_v62 = vpop.f32.mrb[29].mxu1  ;;  %v4807_v63 = vadd.f32 %v5228_v34, %v8349_v17 }
 0x58e   : > { %v4802_v49 = vadd.f32 %v8349_v17, %v4801_v62 }
 0x58f   : > { %v4843_v29 = vmax.f32 %v4807_v63, 0.0 }
 0x590   : > { %v4842_v37 = vmax.f32 %v4802_v49, 0.0 }
 0x592   : > { %4860 = vxpose.xlu0.b32.cont [13/16] (narrow) %v4842_v37, 8 }
 0x596   : > { %4861 = vxpose.xlu0.b32.cont [14/16] (narrow) %v4843_v29, 8 }
 0x5a4   : > { %v5231_v1 = vpop.f32.mrb[30].mxu1 }
 0x5a5   : > { %v4811_v55 = vpop.f32.mrb[31].mxu1  ;;  %v4817_v22 = vadd.f32 %v5231_v1, %v8349_v17 }
 0x5a6   : > { %v4812_v57 = vadd.f32 %v8349_v17, %v4811_v55 }
 0x5a7   : > { %v4845_v47 = vmax.f32 %v4817_v22, 0.0 }
 0x5a8   : > { %v4844_v54 = vmax.f32 %v4812_v57, 0.0 }
 0x5aa   : > { %4862 = vxpose.xlu0.b32.cont [15/16] (narrow) %v4844_v54, 8 }
 0x5ae   : > { %4863 = vxpose.xlu0.b32.end [16/16] (narrow) %v4845_v47, 8 }
 0x5bd   : > { %v5234_v48 = vpop.f32.mrb[32].mxu1 }
 0x5be   : > { %v4821_v3 = vpop.f32.mrb[33].mxu1  ;;  %v4827_v44 = vadd.f32 %v5234_v48, %v8349_v17 }
 0x5bf   : > { %v4822_v24 = vadd.f32 %v8349_v17, %v4821_v3 }
 0x5c0   : > { %v4847_v18 = vmax.f32 %v4827_v44, 0.0 }
 0x5c1   : > { %v4846_v9 = vmax.f32 %v4822_v24, 0.0 }
 0x5c3   : > { %4880 = vxpose.xlu1.b32.start [1/2] (short) (narrow) %v4846_v9, 8 }
 0x5c7   : > { %4881 = vxpose.xlu1.b32.end [2/2] (short) (narrow) %v4847_v18, 8 }
 0x5f2   : > { %v4864_v42 = vpop.trf.xlu0 }
 0x5f3   : > { %4912 = vst [vmem:[%s217_s23] sm:$0xff] %v4864_v42 }
 0x643   : > { %v4896_v17 = vpop.trf.xlu1 }
 0x644   : > { %4913 = vst.msk [vmem:[%s217_s23 + $0x8] sm:$0xff] %vm1144_vm7, %v4896_v17 }
 0x645   : > { %5345 = shalt.err (!%p5342_p3)
}
 0x646   : > { %s5346_s16 = scalar_lea.hbm %s8432_s6, 256  ;;  %s5350_s8 = scalar_lea.hbm %s8480_s5, 512 }
 0x647   : > { %p5347_p4 = scmp.ne.s32.totalorder %s8432_s6, %s5346_s16  ;;  %p5351_p9 = scmp.lt.u32.totalorder %s8432_s6, %s8480_s5 }
 0x648   : > { %p5352_p10 = scmp.lt.u32.totalorder %s5350_s8, %s5346_s16  ;;  %p5354_p12 = scmp.lt.u32.totalorder %s5346_s16, %s8432_s6 }
 0x649   : > { %p5348_p7 = pnand %p5347_p4, %p5481_p5 }
 0x64a   : > { %p5353_p11 = por %p5352_p10, %p5351_p9 }
 0x64b   : > { %p5349_p8 = pneg %p5348_p7 }
 0x64c   : > { %p5355_p13 = por %p5354_p12, %p5353_p11 }
 0x64e   : > { %p5356_p0 = pnand %p5355_p13, %p5349_p8 }
 0x650   : > { %5359 = shalt.err (!%p5356_p0)
}
 0x651   : > { %5263 = dma.vmem_to_hbm [thread:$0]  (%p5481_p5), %s8434_s10, 256, %s8432_s6, %s4915_s7  }
 0x652 PF: > { %p5269_p1 = scmp.ge.s32.totalorder %s5394_s21, 2  ;;  %s4941_s23 = sand.u32 1, %s5382_s18  }
 0x653   : > { %s4942_s25 = scalar_lea.sflag [#allocation3], %s4941_s23 }
 0x654   : > { %p5266_p2 = pnand %p5269_p1, %p5485_p6 }
 0x656   : > { %5377 = dma.done.wait (!%p5266_p2), %s4942_s25, 256  }
 0x657   : > { %5379 = vsyncadd (!%p5266_p2), %s4942_s25, 4294967040  ;;  %p15_p3 = scmp.ge.s32.totalorder %s5468_s24, 4   ;;  %s8943_s18 = smov %s5386_s19 }
 0x658   : > { %s8944_s19 = smov %s5390_s20  ;;  %s8945_s20 = smov %s5479_s27 }
 0x659   : > { %s8946_s21 = smov %s5468_s24  ;;  %17 = sbr.rel (!%p15_p3) target bundleno = 3 (0x3), region = 75 }
 0x660   :  { %4947 = vsyncpa [#allocation3], 1 }
 0x661   :  { %4949 = vsyncpa [#allocation3 + $0x1], 1 }

</bundles_post_ra>
